<compile_context>
chip_gen: v7x
topology: tpu7x:2x2x1
jax: 0.10.0
libtpu: 0.0.40
codegen_flags: <defaults>
</compile_context>

<pallas_src>
import jax
import jax.numpy as jnp
import numpy as np
from jax.experimental import pallas as pl
from jax.experimental.pallas import tpu as pltpu

BN_EPS = 1e-5
LANE = 128
SUBLANE = 8


# --------------------------------------------------------------------------- #
# Small helpers
# --------------------------------------------------------------------------- #
def _round_up(x, m):
    return (x + m - 1) // m * m


def _pad2(a, rows, cols):
    r, c = a.shape
    return jnp.pad(a, ((0, rows - r), (0, cols - c)))


def _vmem_capacity_bytes():
    """Physical VMEM per TensorCore (64 MiB on v7x, 128 MiB on v5e/v6e)."""
    get_info = getattr(pltpu, "get_tpu_info", None)
    if get_info is not None:
        try:
            cap = getattr(get_info(), "vmem_capacity_bytes", None)
            if cap:
                return int(cap)
        except Exception:
            pass
    return 128 * 1024 * 1024


def _pick_row_tile(n_min_pad, f_h, f_next, vmem_limit):
    """Largest row tile that (a) leaves >= 2 row tiles for the 'parallel' axis
    (v7x dual TensorCore) and (b) fits the VMEM budget with a full-resident HW."""
    for tm in (1024, 512, 256, 128):
        n_t = _round_up(n_min_pad, tm)
        if n_t // tm < 2:
            continue
        need = (2 * tm * n_t * 2          # A row slab, double-buffered, bf16
                + n_t * f_h * 2           # VMEM-resident HW (bf16, DMA'd once)
                + 2 * tm * f_next * 2     # output tiles, double-buffered
                + f_h * f_next * 2        # W_next
                + 8 * f_h * 4)            # bias / BN scale / shift
        if need <= int(vmem_limit * 0.85):
            return tm, n_t
    return 128, _round_up(n_min_pad, 128)


# --------------------------------------------------------------------------- #
# Kernels
# --------------------------------------------------------------------------- #
def fused_forward_kernel(x_ref, a_ref, pa_ref,
                         w1_ref, w2_ref, w3_ref, w4_ref,
                         b1_ref, b2_ref, b3_ref, b4_ref,
                         s1_ref, s2_ref, s3_ref,
                         t1_ref, t2_ref, t3_ref,
                         out_ref):
    """Whole GCN forward in one kernel: A resident, intermediates stay in VMEM."""
    # layer-1 feature transform: HW1 = X @ W1
    hw = jnp.dot(x_ref[...], w1_ref[...], preferred_element_type=jnp.float32)
    # GCN layers 1..3: H = BN(relu(A @ HW + b)); HW_next = H @ W_next
    for b_ref, sc_ref, sh_ref, wn_ref in ((b1_ref, s1_ref, t1_ref, w2_ref),
                                          (b2_ref, s2_ref, t2_ref, w3_ref),
                                          (b3_ref, s3_ref, t3_ref, w4_ref)):
        h = jnp.dot(a_ref[...], hw.astype(jnp.bfloat16),
                    preferred_element_type=jnp.float32)
        h = jnp.maximum(h + b_ref[...], 0.0)
        h = h * sc_ref[...] + sh_ref[...]        # pre-folded eval-mode BatchNorm1d
        # TODO(synk): F.dropout(p=0.3) is identity in eval mode; training RNG mask omitted.
        hw = jnp.dot(h.astype(jnp.bfloat16), wn_ref[...],
                     preferred_element_type=jnp.float32)
    # layer 4 aggregation + global_mean_pool folded: out = (P @ A) @ HW4 + b4
    out_ref[...] = (jnp.dot(pa_ref[...], hw, preferred_element_type=jnp.float32)
                    + b4_ref[...]).astype(out_ref.dtype)


def xw_kernel(x_ref, w_ref, o_ref):
    """HW1 = X @ W1, tiled over node rows (streaming path)."""
    o_ref[...] = jnp.dot(x_ref[...], w_ref[...],
                         preferred_element_type=jnp.float32).astype(o_ref.dtype)


def agg_rowslab_kernel(a_ref, hw_ref, b_ref, scale_ref, shift_ref, wnext_ref, o_ref):
    """One GCN layer on a full (tm, n_pad) row slab of A with VMEM-resident HW.

    h = BN(relu(A[i,:] @ HW + b)); out[i] = h @ W_next
    """
    h = jnp.dot(a_ref[...], hw_ref[...], preferred_element_type=jnp.float32)
    h = jnp.maximum(h + b_ref[...], 0.0)
    h = h * scale_ref[...] + shift_ref[...]
    # TODO(synk): F.dropout(p=0.3) is identity in eval mode; training RNG mask omitted.
    o_ref[...] = jnp.dot(h.astype(jnp.bfloat16), wnext_ref[...],
                         preferred_element_type=jnp.float32).astype(o_ref.dtype)


def pool_kernel(pa_ref, hw_ref, b_ref, o_ref):
    """Layer 4 + global_mean_pool folded: out = (P @ A) @ HW4 + b4 (streaming path)."""
    o_ref[...] = (jnp.dot(pa_ref[...], hw_ref[...].astype(jnp.float32),
                          preferred_element_type=jnp.float32)
                  + b_ref[...]).astype(o_ref.dtype)


# --------------------------------------------------------------------------- #
# pallas_call wrappers
# --------------------------------------------------------------------------- #
def _fused_forward(x_p, a_p, pa_p, ws, bs, scales, shifts, g_pad, out_pad, vmem_limit):
    inputs = (x_p, a_p, pa_p) + tuple(ws) + tuple(bs) + tuple(scales) + tuple(shifts)
    in_specs = [pl.BlockSpec(arr.shape, lambda i: (0, 0)) for arr in inputs]
    return pl.pallas_call(
        fused_forward_kernel,
        out_shape=jax.ShapeDtypeStruct((g_pad, out_pad), jnp.float32),
        grid=(1,),
        in_specs=in_specs,
        out_specs=pl.BlockSpec((g_pad, out_pad), lambda i: (0, 0)),
        compiler_params=pltpu.CompilerParams(
            dimension_semantics=("arbitrary",),
            vmem_limit_bytes=vmem_limit),
    )(*inputs)


def _transform(x_bf16, w_bf16, tm, vmem_limit):
    n_pad, f_in = x_bf16.shape
    f_out = w_bf16.shape[1]
    return pl.pallas_call(
        xw_kernel,
        out_shape=jax.ShapeDtypeStruct((n_pad, f_out), jnp.bfloat16),
        grid=(n_pad // tm,),
        in_specs=[pl.BlockSpec((tm, f_in), lambda i: (i, 0)),
                  pl.BlockSpec((f_in, f_out), lambda i: (0, 0))],
        out_specs=pl.BlockSpec((tm, f_out), lambda i: (i, 0)),
        compiler_params=pltpu.CompilerParams(
            dimension_semantics=("parallel",),
            vmem_limit_bytes=vmem_limit),
    )(x_bf16, w_bf16)


def _agg_rowslab(a_p, hw, b, scale, shift, w_next, tm, vmem_limit):
    n_pad = a_p.shape[0]
    f_h = hw.shape[1]
    f_next = w_next.shape[1]
    return pl.pallas_call(
        agg_rowslab_kernel,
        out_shape=jax.ShapeDtypeStruct((n_pad, f_next), jnp.bfloat16),
        grid=(n_pad // tm,),
        in_specs=[
            pl.BlockSpec((tm, n_pad), lambda i: (i, 0)),      # A row slab (streamed)
            pl.BlockSpec((n_pad, f_h), lambda i: (0, 0)),     # HW, VMEM-resident (DMA'd once)
            pl.BlockSpec((1, f_h), lambda i: (0, 0)),         # bias
            pl.BlockSpec((1, f_h), lambda i: (0, 0)),         # BN scale
            pl.BlockSpec((1, f_h), lambda i: (0, 0)),         # BN shift
            pl.BlockSpec((f_h, f_next), lambda i: (0, 0)),    # W_next
        ],
        out_specs=pl.BlockSpec((tm, f_next), lambda i: (i, 0)),
        compiler_params=pltpu.CompilerParams(
            dimension_semantics=("parallel",),
            vmem_limit_bytes=vmem_limit),
    )(a_p, hw, b, scale, shift, w_next)


def _pool(pa_f32, hw_bf16, b4, vmem_limit):
    g_pad, n_pad = pa_f32.shape
    f_out = hw_bf16.shape[1]
    return pl.pallas_call(
        pool_kernel,
        out_shape=jax.ShapeDtypeStruct((g_pad, f_out), jnp.float32),
        grid=(1,),
        in_specs=[pl.BlockSpec((g_pad, n_pad), lambda i: (0, 0)),
                  pl.BlockSpec((n_pad, f_out), lambda i: (0, 0)),
                  pl.BlockSpec((1, f_out), lambda i: (0, 0))],
        out_specs=pl.BlockSpec((g_pad, f_out), lambda i: (0, 0)),
        compiler_params=pltpu.CompilerParams(
            dimension_semantics=("arbitrary",),
            vmem_limit_bytes=vmem_limit),
    )(pa_f32, hw_bf16, b4)


# --------------------------------------------------------------------------- #
# Graph glue (wrapper-side, plain JAX)
# --------------------------------------------------------------------------- #
def build_norm_adjacency(edge_index, num_nodes):
    """Dense D^{-1/2}(A+I)D^{-1/2}; edge_index = [2, E] (src -> dst)."""
    src, dst = edge_index[0], edge_index[1]
    a = jnp.zeros((num_nodes, num_nodes), jnp.float32).at[dst, src].add(1.0)
    a = a + jnp.eye(num_nodes, dtype=jnp.float32)
    deg = a.sum(axis=1)
    dinv = jax.lax.rsqrt(deg)
    return dinv[:, None] * a * dinv[None, :]


def build_pool_matrix(batch, num_nodes, num_graphs):
    one_hot = (batch[None, :] == jnp.arange(num_graphs)[:, None]).astype(jnp.float32)
    counts = one_hot.sum(axis=1, keepdims=True)
    return one_hot / jnp.maximum(counts, 1.0)       # [G, N]


def gcn_model_forward(x, edge_index, batch, params, num_graphs, mode="auto"):
    n, in_dim = x.shape
    hidden = params["w1"].shape[1]
    out_dim = params["w4"].shape[1]

    a_norm = build_norm_adjacency(edge_index, n)      # [n, n] f32
    pool = build_pool_matrix(batch, n, num_graphs)    # [G, n] f32
    pa = pool @ a_norm                                # [G, n] f32 (kept f32 for accuracy)

    in_pad = _round_up(in_dim, LANE)
    hid_pad = _round_up(hidden, LANE)
    out_pad = _round_up(out_dim, LANE)
    g_pad = _round_up(num_graphs, SUBLANE)

    vmem_cap = _vmem_capacity_bytes()                       # 64 MiB (v7x) / 128 MiB (v5e/v6e)
    vmem_limit = min(int(vmem_cap * 0.8), 100 * 1024 * 1024)

    # pre-folded eval-mode BatchNorm1d: h * scale + shift
    scale = params["bn_gamma"] * jax.lax.rsqrt(params["bn_var"] + BN_EPS)   # [3,1,H]
    shift = params["bn_beta"] - params["bn_mean"] * scale                   # [3,1,H]

    w1 = _pad2(params["w1"], in_pad, hid_pad).astype(jnp.bfloat16)
    w2 = _pad2(params["w2"], hid_pad, hid_pad).astype(jnp.bfloat16)
    w3 = _pad2(params["w3"], hid_pad, hid_pad).astype(jnp.bfloat16)
    w4 = _pad2(params["w4"], hid_pad, out_pad).astype(jnp.bfloat16)
    b1 = _pad2(params["b1"], 1, hid_pad)
    b2 = _pad2(params["b2"], 1, hid_pad)
    b3 = _pad2(params["b3"], 1, hid_pad)
    b4 = _pad2(params["b4"], 1, out_pad)
    scales = [_pad2(scale[i], 1, hid_pad) for i in range(3)]
    shifts = [_pad2(shift[i], 1, hid_pad) for i in range(3)]

    # ---------- fused path: whole forward in one pallas_call ---------- #
    n_fused = _round_up(n, LANE)
    fused_bytes = (2 * n_fused * n_fused * 2          # A (bf16, double-buffered)
                   + 2 * n_fused * in_pad * 2         # X
                   + 2 * g_pad * n_fused * 4          # PA (f32)
                   + 4 * n_fused * hid_pad * 4        # live intermediates headroom
                   + 4 * hid_pad * hid_pad * 2)       # weights
    use_fused = (mode == "fused") or (mode == "auto"
                                      and fused_bytes <= int(vmem_limit * 0.75))

    if use_fused:
        n_pad = n_fused
        a_p = _pad2(a_norm, n_pad, n_pad).astype(jnp.bfloat16)
        pa_p = _pad2(pa, g_pad, n_pad)                         # f32
        x_p = _pad2(x, n_pad, in_pad).astype(jnp.bfloat16)
        out = _fused_forward(x_p, a_p, pa_p,
                             (w1, w2, w3, w4), (b1, b2, b3, b4),
                             scales, shifts, g_pad, out_pad, vmem_limit)
        return out[:num_graphs, :out_dim]

    # ---------- streaming path: row-slab layer kernels, HW VMEM-resident ---------- #
    tm, n_pad = _pick_row_tile(_round_up(n, LANE), hid_pad,
                               max(hid_pad, out_pad), vmem_limit)
    a_p = _pad2(a_norm, n_pad, n_pad).astype(jnp.bfloat16)
    pa_p = _pad2(pa, g_pad, n_pad)                             # f32
    x_p = _pad2(x, n_pad, in_pad).astype(jnp.bfloat16)

    hw = _transform(x_p, w1, tm, vmem_limit)                   # HW1 = X @ W1
    for b, sc, sh, w_next in ((b1, scales[0], shifts[0], w2),
                              (b2, scales[1], shifts[1], w3),
                              (b3, scales[2], shifts[2], w4)):
        hw = _agg_rowslab(a_p, hw, b, sc, sh, w_next, tm, vmem_limit)
    out = _pool(pa_p, hw, b4, vmem_limit)                      # (P@A)@HW4 + b4
    return out[:num_graphs, :out_dim]


# --------------------------------------------------------------------------- #
# Plain-JAX f32 reference (mirrors the PyTorch forward exactly)
# --------------------------------------------------------------------------- #
def reference_forward(x, edge_index, batch, params, num_graphs):
    n = x.shape[0]
    a = build_norm_adjacency(edge_index, n)
    p = build_pool_matrix(batch, n, num_graphs)

    def gcn(h, w, b):
        return a @ (h @ w) + b

    def bn(h, i):
        inv = jax.lax.rsqrt(params["bn_var"][i] + BN_EPS)
        return (h - params["bn_mean"][i]) * inv * params["bn_gamma"][i] + params["bn_beta"][i]

    h = bn(jnp.maximum(gcn(x, params["w1"], params["b1"]), 0.0), 0)
    h = bn(jnp.maximum(gcn(h, params["w2"], params["b2"]), 0.0), 1)
    h = bn(jnp.maximum(gcn(h, params["w3"], params["b3"]), 0.0), 2)
    h = gcn(h, params["w4"], params["b4"])
    return p @ h


def init_params(key, in_dim, hidden_dim, out_dim):
    ks = jax.random.split(key, 12)

    def lin(k, fi, fo):
        return (jax.random.normal(k, (fi, fo), jnp.float32) / jnp.sqrt(fi)).astype(jnp.float32)

    return {
        "w1": lin(ks[0], in_dim, hidden_dim),
        "w2": lin(ks[1], hidden_dim, hidden_dim),
        "w3": lin(ks[2], hidden_dim, hidden_dim),
        "w4": lin(ks[3], hidden_dim, out_dim),
        "b1": 0.1 * jax.random.normal(ks[4], (1, hidden_dim), jnp.float32),
        "b2": 0.1 * jax.random.normal(ks[5], (1, hidden_dim), jnp.float32),
        "b3": 0.1 * jax.random.normal(ks[6], (1, hidden_dim), jnp.float32),
        "b4": 0.1 * jax.random.normal(ks[7], (1, out_dim), jnp.float32),
        # eval-mode BatchNorm1d running statistics + affine params, stacked [3, 1, H]
        "bn_gamma": 1.0 + 0.1 * jax.random.normal(ks[8], (3, 1, hidden_dim), jnp.float32),
        "bn_beta": 0.1 * jax.random.normal(ks[9], (3, 1, hidden_dim), jnp.float32),
        "bn_mean": 0.1 * jax.random.normal(ks[10], (3, 1, hidden_dim), jnp.float32),
        "bn_var": 0.5 + jax.random.uniform(ks[11], (3, 1, hidden_dim), jnp.float32),
    }


if __name__ == "__main__":
    key = jax.random.PRNGKey(0)

    IN_DIM, HIDDEN_DIM, OUT_DIM = 8, 32, 4
    NODES_PER_GRAPH, NUM_GRAPHS = 60, 4          # N = 240 -> padded to 256
    N = NODES_PER_GRAPH * NUM_GRAPHS

    key, kx = jax.random.split(key)
    x = jax.random.normal(kx, (N, IN_DIM), jnp.float32)

    # Deterministic ring graphs (bidirectional edges) per graph
    src_list, dst_list = [], []
    for g in range(NUM_GRAPHS):
        base = g * NODES_PER_GRAPH
        for i in range(NODES_PER_GRAPH):
            a_node = base + i
            b_node = base + (i + 1) % NODES_PER_GRAPH
            src_list += [a_node, b_node]
            dst_list += [b_node, a_node]
    edge_index = jnp.asarray(np.stack([src_list, dst_list]), dtype=jnp.int32)  # [2, E]

    batch = jnp.asarray(np.repeat(np.arange(NUM_GRAPHS), NODES_PER_GRAPH), dtype=jnp.int32)

    key, kp = jax.random.split(key)
    params = init_params(kp, IN_DIM, HIDDEN_DIM, OUT_DIM)

    ref = reference_forward(x, edge_index, batch, params, NUM_GRAPHS)

    # Fused single-launch path (default at this size: A resident in VMEM)
    out_fused = gcn_model_forward(x, edge_index, batch, params, NUM_GRAPHS, mode="fused")
    out_fused = jax.block_until_ready(out_fused)
    assert out_fused.shape == (NUM_GRAPHS, OUT_DIM)
    np.testing.assert_allclose(np.asarray(out_fused), np.asarray(ref), rtol=5e-2, atol=5e-2)

    # Streaming (row-slab) path, exercised explicitly for coverage of large-N config
    out_stream = gcn_model_forward(x, edge_index, batch, params, NUM_GRAPHS, mode="streaming")
    out_stream = jax.block_until_ready(out_stream)
    assert out_stream.shape == (NUM_GRAPHS, OUT_DIM)
    np.testing.assert_allclose(np.asarray(out_stream), np.asarray(ref), rtol=5e-2, atol=5e-2)

    print("KERNEL_OK")
</pallas_src>

<mosaic_0001>
module attributes {stable_mosaic.version = 11 : i64} {
  func.func @fused_forward_kernel(%arg0: i32, %arg1: memref<256x128xbf16, #tpu.memory_space<vmem>>, %arg2: memref<256x256xbf16, #tpu.memory_space<vmem>>, %arg3: memref<8x256xf32, #tpu.memory_space<vmem>>, %arg4: memref<128x128xbf16, #tpu.memory_space<vmem>>, %arg5: memref<128x128xbf16, #tpu.memory_space<vmem>>, %arg6: memref<128x128xbf16, #tpu.memory_space<vmem>>, %arg7: memref<128x128xbf16, #tpu.memory_space<vmem>>, %arg8: memref<1x128xf32, #tpu.memory_space<vmem>>, %arg9: memref<1x128xf32, #tpu.memory_space<vmem>>, %arg10: memref<1x128xf32, #tpu.memory_space<vmem>>, %arg11: memref<1x128xf32, #tpu.memory_space<vmem>>, %arg12: memref<1x128xf32, #tpu.memory_space<vmem>>, %arg13: memref<1x128xf32, #tpu.memory_space<vmem>>, %arg14: memref<1x128xf32, #tpu.memory_space<vmem>>, %arg15: memref<1x128xf32, #tpu.memory_space<vmem>>, %arg16: memref<1x128xf32, #tpu.memory_space<vmem>>, %arg17: memref<1x128xf32, #tpu.memory_space<vmem>>, %arg18: memref<8x128xf32, #tpu.memory_space<vmem>>) attributes {dimension_semantics = [#tpu.dimension_semantics<arbitrary>], iteration_bounds = array<i64: 1>, scalar_prefetch = 0 : i64, scratch_operands = 0 : i64, tpu.core_type = #tpu.core_type<tc>, window_params = [{pipeline_mode = #tpu.pipeline_mode<synchronous>, transform_indices = @transform_0, window_bounds = array<i64: 256, 128>}, {pipeline_mode = #tpu.pipeline_mode<synchronous>, transform_indices = @transform_1, window_bounds = array<i64: 256, 256>}, {pipeline_mode = #tpu.pipeline_mode<synchronous>, transform_indices = @transform_2, window_bounds = array<i64: 8, 256>}, {pipeline_mode = #tpu.pipeline_mode<synchronous>, transform_indices = @transform_3, window_bounds = array<i64: 128, 128>}, {pipeline_mode = #tpu.pipeline_mode<synchronous>, transform_indices = @transform_4, window_bounds = array<i64: 128, 128>}, {pipeline_mode = #tpu.pipeline_mode<synchronous>, transform_indices = @transform_5, window_bounds = array<i64: 128, 128>}, {pipeline_mode = #tpu.pipeline_mode<synchronous>, transform_indices = @transform_6, window_bounds = array<i64: 128, 128>}, {pipeline_mode = #tpu.pipeline_mode<synchronous>, transform_indices = @transform_7, window_bounds = array<i64: 1, 128>}, {pipeline_mode = #tpu.pipeline_mode<synchronous>, transform_indices = @transform_8, window_bounds = array<i64: 1, 128>}, {pipeline_mode = #tpu.pipeline_mode<synchronous>, transform_indices = @transform_9, window_bounds = array<i64: 1, 128>}, {pipeline_mode = #tpu.pipeline_mode<synchronous>, transform_indices = @transform_10, window_bounds = array<i64: 1, 128>}, {pipeline_mode = #tpu.pipeline_mode<synchronous>, transform_indices = @transform_11, window_bounds = array<i64: 1, 128>}, {pipeline_mode = #tpu.pipeline_mode<synchronous>, transform_indices = @transform_12, window_bounds = array<i64: 1, 128>}, {pipeline_mode = #tpu.pipeline_mode<synchronous>, transform_indices = @transform_13, window_bounds = array<i64: 1, 128>}, {pipeline_mode = #tpu.pipeline_mode<synchronous>, transform_indices = @transform_14, window_bounds = array<i64: 1, 128>}, {pipeline_mode = #tpu.pipeline_mode<synchronous>, transform_indices = @transform_15, window_bounds = array<i64: 1, 128>}, {pipeline_mode = #tpu.pipeline_mode<synchronous>, transform_indices = @transform_16, window_bounds = array<i64: 1, 128>}, {pipeline_mode = #tpu.pipeline_mode<synchronous>, transform_indices = @transform_17, window_bounds = array<i64: 8, 128>}]} {
    %c0 = arith.constant 0 : index
    %c0_0 = arith.constant 0 : index
    %0 = vector.load %arg1[%c0, %c0_0] : memref<256x128xbf16, #tpu.memory_space<vmem>>, vector<256x128xbf16>
    %c0_1 = arith.constant 0 : index
    %c0_2 = arith.constant 0 : index
    %1 = vector.load %arg4[%c0_1, %c0_2] : memref<128x128xbf16, #tpu.memory_space<vmem>>, vector<128x128xbf16>
    %cst = arith.constant dense<0.000000e+00> : vector<256x128xf32>
    %2 = tpu.matmul %0, %1, %cst {dimension_numbers = #tpu.dot_dimension_numbers<[1], [0], [0], [1], [0, 0, 1, 1], [], []>} : vector<256x128xbf16>, vector<128x128xbf16>, vector<256x128xf32> -> vector<256x128xf32>
    %c0_3 = arith.constant 0 : index
    %c0_4 = arith.constant 0 : index
    %3 = vector.load %arg2[%c0_3, %c0_4] : memref<256x256xbf16, #tpu.memory_space<vmem>>, vector<256x256xbf16>
    %4 = arith.truncf %2 : vector<256x128xf32> to vector<256x128xbf16>
    %cst_5 = arith.constant dense<0.000000e+00> : vector<256x128xf32>
    %5 = tpu.matmul %3, %4, %cst_5 {dimension_numbers = #tpu.dot_dimension_numbers<[1], [0], [0], [1], [0, 0, 1, 1], [], []>} : vector<256x256xbf16>, vector<256x128xbf16>, vector<256x128xf32> -> vector<256x128xf32>
    %c0_6 = arith.constant 0 : index
    %c0_7 = arith.constant 0 : index
    %6 = vector.load %arg8[%c0_6, %c0_7] : memref<1x128xf32, #tpu.memory_space<vmem>>, vector<1x128xf32>
    %7 = vector.broadcast %6 : vector<1x128xf32> to vector<256x128xf32>
    %8 = arith.addf %5, %7 : vector<256x128xf32>
    %cst_8 = arith.constant 0.000000e+00 : f32
    %9 = vector.broadcast %cst_8 : f32 to vector<256x128xf32>
    %10 = arith.maximumf %8, %9 : vector<256x128xf32>
    %c0_9 = arith.constant 0 : index
    %c0_10 = arith.constant 0 : index
    %11 = vector.load %arg12[%c0_9, %c0_10] : memref<1x128xf32, #tpu.memory_space<vmem>>, vector<1x128xf32>
    %12 = vector.broadcast %11 : vector<1x128xf32> to vector<256x128xf32>
    %13 = arith.mulf %10, %12 : vector<256x128xf32>
    %c0_11 = arith.constant 0 : index
    %c0_12 = arith.constant 0 : index
    %14 = vector.load %arg15[%c0_11, %c0_12] : memref<1x128xf32, #tpu.memory_space<vmem>>, vector<1x128xf32>
    %15 = vector.broadcast %14 : vector<1x128xf32> to vector<256x128xf32>
    %16 = arith.addf %13, %15 : vector<256x128xf32>
    %17 = arith.truncf %16 : vector<256x128xf32> to vector<256x128xbf16>
    %c0_13 = arith.constant 0 : index
    %c0_14 = arith.constant 0 : index
    %18 = vector.load %arg5[%c0_13, %c0_14] : memref<128x128xbf16, #tpu.memory_space<vmem>>, vector<128x128xbf16>
    %cst_15 = arith.constant dense<0.000000e+00> : vector<256x128xf32>
    %19 = tpu.matmul %17, %18, %cst_15 {dimension_numbers = #tpu.dot_dimension_numbers<[1], [0], [0], [1], [0, 0, 1, 1], [], []>} : vector<256x128xbf16>, vector<128x128xbf16>, vector<256x128xf32> -> vector<256x128xf32>
    %c0_16 = arith.constant 0 : index
    %c0_17 = arith.constant 0 : index
    %20 = vector.load %arg2[%c0_16, %c0_17] : memref<256x256xbf16, #tpu.memory_space<vmem>>, vector<256x256xbf16>
    %21 = arith.truncf %19 : vector<256x128xf32> to vector<256x128xbf16>
    %cst_18 = arith.constant dense<0.000000e+00> : vector<256x128xf32>
    %22 = tpu.matmul %20, %21, %cst_18 {dimension_numbers = #tpu.dot_dimension_numbers<[1], [0], [0], [1], [0, 0, 1, 1], [], []>} : vector<256x256xbf16>, vector<256x128xbf16>, vector<256x128xf32> -> vector<256x128xf32>
    %c0_19 = arith.constant 0 : index
    %c0_20 = arith.constant 0 : index
    %23 = vector.load %arg9[%c0_19, %c0_20] : memref<1x128xf32, #tpu.memory_space<vmem>>, vector<1x128xf32>
    %24 = vector.broadcast %23 : vector<1x128xf32> to vector<256x128xf32>
    %25 = arith.addf %22, %24 : vector<256x128xf32>
    %cst_21 = arith.constant 0.000000e+00 : f32
    %26 = vector.broadcast %cst_21 : f32 to vector<256x128xf32>
    %27 = arith.maximumf %25, %26 : vector<256x128xf32>
    %c0_22 = arith.constant 0 : index
    %c0_23 = arith.constant 0 : index
    %28 = vector.load %arg13[%c0_22, %c0_23] : memref<1x128xf32, #tpu.memory_space<vmem>>, vector<1x128xf32>
    %29 = vector.broadcast %28 : vector<1x128xf32> to vector<256x128xf32>
    %30 = arith.mulf %27, %29 : vector<256x128xf32>
    %c0_24 = arith.constant 0 : index
    %c0_25 = arith.constant 0 : index
    %31 = vector.load %arg16[%c0_24, %c0_25] : memref<1x128xf32, #tpu.memory_space<vmem>>, vector<1x128xf32>
    %32 = vector.broadcast %31 : vector<1x128xf32> to vector<256x128xf32>
    %33 = arith.addf %30, %32 : vector<256x128xf32>
    %34 = arith.truncf %33 : vector<256x128xf32> to vector<256x128xbf16>
    %c0_26 = arith.constant 0 : index
    %c0_27 = arith.constant 0 : index
    %35 = vector.load %arg6[%c0_26, %c0_27] : memref<128x128xbf16, #tpu.memory_space<vmem>>, vector<128x128xbf16>
    %cst_28 = arith.constant dense<0.000000e+00> : vector<256x128xf32>
    %36 = tpu.matmul %34, %35, %cst_28 {dimension_numbers = #tpu.dot_dimension_numbers<[1], [0], [0], [1], [0, 0, 1, 1], [], []>} : vector<256x128xbf16>, vector<128x128xbf16>, vector<256x128xf32> -> vector<256x128xf32>
    %c0_29 = arith.constant 0 : index
    %c0_30 = arith.constant 0 : index
    %37 = vector.load %arg2[%c0_29, %c0_30] : memref<256x256xbf16, #tpu.memory_space<vmem>>, vector<256x256xbf16>
    %38 = arith.truncf %36 : vector<256x128xf32> to vector<256x128xbf16>
    %cst_31 = arith.constant dense<0.000000e+00> : vector<256x128xf32>
    %39 = tpu.matmul %37, %38, %cst_31 {dimension_numbers = #tpu.dot_dimension_numbers<[1], [0], [0], [1], [0, 0, 1, 1], [], []>} : vector<256x256xbf16>, vector<256x128xbf16>, vector<256x128xf32> -> vector<256x128xf32>
    %c0_32 = arith.constant 0 : index
    %c0_33 = arith.constant 0 : index
    %40 = vector.load %arg10[%c0_32, %c0_33] : memref<1x128xf32, #tpu.memory_space<vmem>>, vector<1x128xf32>
    %41 = vector.broadcast %40 : vector<1x128xf32> to vector<256x128xf32>
    %42 = arith.addf %39, %41 : vector<256x128xf32>
    %cst_34 = arith.constant 0.000000e+00 : f32
    %43 = vector.broadcast %cst_34 : f32 to vector<256x128xf32>
    %44 = arith.maximumf %42, %43 : vector<256x128xf32>
    %c0_35 = arith.constant 0 : index
    %c0_36 = arith.constant 0 : index
    %45 = vector.load %arg14[%c0_35, %c0_36] : memref<1x128xf32, #tpu.memory_space<vmem>>, vector<1x128xf32>
    %46 = vector.broadcast %45 : vector<1x128xf32> to vector<256x128xf32>
    %47 = arith.mulf %44, %46 : vector<256x128xf32>
    %c0_37 = arith.constant 0 : index
    %c0_38 = arith.constant 0 : index
    %48 = vector.load %arg17[%c0_37, %c0_38] : memref<1x128xf32, #tpu.memory_space<vmem>>, vector<1x128xf32>
    %49 = vector.broadcast %48 : vector<1x128xf32> to vector<256x128xf32>
    %50 = arith.addf %47, %49 : vector<256x128xf32>
    %51 = arith.truncf %50 : vector<256x128xf32> to vector<256x128xbf16>
    %c0_39 = arith.constant 0 : index
    %c0_40 = arith.constant 0 : index
    %52 = vector.load %arg7[%c0_39, %c0_40] : memref<128x128xbf16, #tpu.memory_space<vmem>>, vector<128x128xbf16>
    %cst_41 = arith.constant dense<0.000000e+00> : vector<256x128xf32>
    %53 = tpu.matmul %51, %52, %cst_41 {dimension_numbers = #tpu.dot_dimension_numbers<[1], [0], [0], [1], [0, 0, 1, 1], [], []>} : vector<256x128xbf16>, vector<128x128xbf16>, vector<256x128xf32> -> vector<256x128xf32>
    %c0_42 = arith.constant 0 : index
    %c0_43 = arith.constant 0 : index
    %54 = vector.load %arg3[%c0_42, %c0_43] : memref<8x256xf32, #tpu.memory_space<vmem>>, vector<8x256xf32>
    %cst_44 = arith.constant dense<0.000000e+00> : vector<8x128xf32>
    %55 = tpu.matmul %54, %53, %cst_44 {dimension_numbers = #tpu.dot_dimension_numbers<[1], [0], [0], [1], [0, 0, 1, 1], [], []>} : vector<8x256xf32>, vector<256x128xf32>, vector<8x128xf32> -> vector<8x128xf32>
    %c0_45 = arith.constant 0 : index
    %c0_46 = arith.constant 0 : index
    %56 = vector.load %arg11[%c0_45, %c0_46] : memref<1x128xf32, #tpu.memory_space<vmem>>, vector<1x128xf32>
    %57 = vector.broadcast %56 : vector<1x128xf32> to vector<8x128xf32>
    %58 = arith.addf %55, %57 : vector<8x128xf32>
    %c0_47 = arith.constant 0 : index
    %c0_48 = arith.constant 0 : index
    %59 = vector.load %arg18[%c0_47, %c0_48] : memref<8x128xf32, #tpu.memory_space<vmem>>, vector<8x128xf32>
    tpu.vector_store %arg18[%c0_47, %c0_48], %58 {strides = array<i32>} : memref<8x128xf32, #tpu.memory_space<vmem>>, vector<8x128xf32>,
    return
  }
  func.func @transform_0(%arg0: i32) -> (i32, i32) {
    %c0_i32 = arith.constant 0 : i32
    %c0_i32_0 = arith.constant 0 : i32
    %c0_i32_1 = arith.constant 0 : i32
    return %c0_i32, %c0_i32_0 : i32, i32
  }
  func.func @transform_1(%arg0: i32) -> (i32, i32) {
    %c0_i32 = arith.constant 0 : i32
    %c0_i32_0 = arith.constant 0 : i32
    %c0_i32_1 = arith.constant 0 : i32
    return %c0_i32, %c0_i32_0 : i32, i32
  }
  func.func @transform_2(%arg0: i32) -> (i32, i32) {
    %c0_i32 = arith.constant 0 : i32
    %c0_i32_0 = arith.constant 0 : i32
    %c0_i32_1 = arith.constant 0 : i32
    return %c0_i32, %c0_i32_0 : i32, i32
  }
  func.func @transform_3(%arg0: i32) -> (i32, i32) {
    %c0_i32 = arith.constant 0 : i32
    %c0_i32_0 = arith.constant 0 : i32
    %c0_i32_1 = arith.constant 0 : i32
    return %c0_i32, %c0_i32_0 : i32, i32
  }
  func.func @transform_4(%arg0: i32) -> (i32, i32) {
    %c0_i32 = arith.constant 0 : i32
    %c0_i32_0 = arith.constant 0 : i32
    %c0_i32_1 = arith.constant 0 : i32
    return %c0_i32, %c0_i32_0 : i32, i32
  }
  func.func @transform_5(%arg0: i32) -> (i32, i32) {
    %c0_i32 = arith.constant 0 : i32
    %c0_i32_0 = arith.constant 0 : i32
    %c0_i32_1 = arith.constant 0 : i32
    return %c0_i32, %c0_i32_0 : i32, i32
  }
  func.func @transform_6(%arg0: i32) -> (i32, i32) {
    %c0_i32 = arith.constant 0 : i32
    %c0_i32_0 = arith.constant 0 : i32
    %c0_i32_1 = arith.constant 0 : i32
    return %c0_i32, %c0_i32_0 : i32, i32
  }
  func.func @transform_7(%arg0: i32) -> (i32, i32) {
    %c0_i32 = arith.constant 0 : i32
    %c0_i32_0 = arith.constant 0 : i32
    %c0_i32_1 = arith.constant 0 : i32
    return %c0_i32, %c0_i32_0 : i32, i32
  }
  func.func @transform_8(%arg0: i32) -> (i32, i32) {
    %c0_i32 = arith.constant 0 : i32
    %c0_i32_0 = arith.constant 0 : i32
    %c0_i32_1 = arith.constant 0 : i32
    return %c0_i32, %c0_i32_0 : i32, i32
  }
  func.func @transform_9(%arg0: i32) -> (i32, i32) {
    %c0_i32 = arith.constant 0 : i32
    %c0_i32_0 = arith.constant 0 : i32
    %c0_i32_1 = arith.constant 0 : i32
    return %c0_i32, %c0_i32_0 : i32, i32
  }
  func.func @transform_10(%arg0: i32) -> (i32, i32) {
    %c0_i32 = arith.constant 0 : i32
    %c0_i32_0 = arith.constant 0 : i32
    %c0_i32_1 = arith.constant 0 : i32
    return %c0_i32, %c0_i32_0 : i32, i32
  }
  func.func @transform_11(%arg0: i32) -> (i32, i32) {
    %c0_i32 = arith.constant 0 : i32
    %c0_i32_0 = arith.constant 0 : i32
    %c0_i32_1 = arith.constant 0 : i32
    return %c0_i32, %c0_i32_0 : i32, i32
  }
  func.func @transform_12(%arg0: i32) -> (i32, i32) {
    %c0_i32 = arith.constant 0 : i32
    %c0_i32_0 = arith.constant 0 : i32
    %c0_i32_1 = arith.constant 0 : i32
    return %c0_i32, %c0_i32_0 : i32, i32
  }
  func.func @transform_13(%arg0: i32) -> (i32, i32) {
    %c0_i32 = arith.constant 0 : i32
    %c0_i32_0 = arith.constant 0 : i32
    %c0_i32_1 = arith.constant 0 : i32
    return %c0_i32, %c0_i32_0 : i32, i32
  }
  func.func @transform_14(%arg0: i32) -> (i32, i32) {
    %c0_i32 = arith.constant 0 : i32
    %c0_i32_0 = arith.constant 0 : i32
    %c0_i32_1 = arith.constant 0 : i32
    return %c0_i32, %c0_i32_0 : i32, i32
  }
  func.func @transform_15(%arg0: i32) -> (i32, i32) {
    %c0_i32 = arith.constant 0 : i32
    %c0_i32_0 = arith.constant 0 : i32
    %c0_i32_1 = arith.constant 0 : i32
    return %c0_i32, %c0_i32_0 : i32, i32
  }
  func.func @transform_16(%arg0: i32) -> (i32, i32) {
    %c0_i32 = arith.constant 0 : i32
    %c0_i32_0 = arith.constant 0 : i32
    %c0_i32_1 = arith.constant 0 : i32
    return %c0_i32, %c0_i32_0 : i32, i32
  }
  func.func @transform_17(%arg0: i32) -> (i32, i32) {
    %c0_i32 = arith.constant 0 : i32
    %c0_i32_0 = arith.constant 0 : i32
    %c0_i32_1 = arith.constant 0 : i32
    return %c0_i32, %c0_i32_0 : i32, i32
  }
}

</mosaic_0001>

<bundles_post_ra>
// kernel: tpu_custom_call.1
= control target key start
LH: loop header
LB: loop body
LE: loop exit
PB: predicated region body
PF: predicated region fallthrough
CT: control target
= control target key end

     0   :  { %s4643_s0 = inlined_call_operand.hbm [shape: bf16[256,128], index: 0, kind: input, shape index: {}]   ;;  %s4644_s1 = inlined_call_operand.hbm [shape: bf16[256,256], index: 1, kind: input, shape index: {}]   ;;  %s4645_s2 = inlined_call_operand.hbm [shape: f32[8,256], index: 2, kind: input, shape index: {}]   ;;  %s4646_s3 = inlined_call_operand.hbm [shape: bf16[128,128], index: 3, kind: input, shape index: {}]   ;;  %s4647_s4 = inlined_call_operand.hbm [shape: bf16[128,128], index: 4, kind: input, shape index: {}]   ;;  %s4648_s5 = inlined_call_operand.hbm [shape: bf16[128,128], index: 5, kind: input, shape index: {}]   ;;  %s4649_s6 = inlined_call_operand.hbm [shape: bf16[128,128], index: 6, kind: input, shape index: {}]   ;;  %s4650_s7 = inlined_call_operand.hbm [shape: f32[1,128], index: 7, kind: input, shape index: {}]   ;;  %s4651_s8 = inlined_call_operand.hbm [shape: f32[1,128], index: 8, kind: input, shape index: {}]   ;;  %s4652_s9 = inlined_call_operand.hbm [shape: f32[1,128], index: 9, kind: input, shape index: {}]   ;;  %s4653_s10 = inlined_call_operand.hbm [shape: f32[1,128], index: 10, kind: input, shape index: {}]   ;;  %s4654_s11 = inlined_call_operand.hbm [shape: f32[1,128], index: 11, kind: input, shape index: {}]   ;;  %s4655_s12 = inlined_call_operand.hbm [shape: f32[1,128], index: 12, kind: input, shape index: {}]   ;;  %s4656_s13 = inlined_call_operand.hbm [shape: f32[1,128], index: 13, kind: input, shape index: {}]   ;;  %s4657_s14 = inlined_call_operand.hbm [shape: f32[1,128], index: 14, kind: input, shape index: {}]   ;;  %s4658_s15 = inlined_call_operand.hbm [shape: f32[1,128], index: 15, kind: input, shape index: {}]   ;;  %s4659_s16 = inlined_call_operand.hbm [shape: f32[1,128], index: 16, kind: input, shape index: {}]   ;;  %s4660_s17 = inlined_call_operand.hbm [shape: f32[8,128], index: 17, kind: output, shape index: {}]  }
   0x1   :  { %4665 = sst [smem:[#allocation40_spill]] %s4643_s0 }
   0x2   :  { %4666 = sst [smem:[#allocation41_spill]] %s4644_s1 }
   0x3   :  { %4667 = sst [smem:[#allocation42_spill]] %s4659_s16 }
   0x4   :  { %4668 = sst [smem:[#allocation43_spill]] %s4660_s17 }
   0x5   :  { %22 = vsyncpa [#allocation3], 0 }
   0x6   :  { %23 = vsyncpa [#allocation6], 0 }
   0x7   :  { %24 = vsyncpa [#allocation9], 0 }
   0x8   :  { %25 = vsyncpa [#allocation12], 0 }
   0x9   :  { %26 = vsyncpa [#allocation15], 0 }
   0xa   :  { %27 = vsyncpa [#allocation18], 0 }
   0xb   :  { %28 = vsyncpa [#allocation21], 0 }
   0xc   :  { %29 = vsyncpa [#allocation24], 0 }
   0xd   :  { %30 = vsyncpa [#allocation27], 0 }
   0xe   :  { %31 = vsyncpa [#allocation4], 0  ;;  %s3866_s24 = smov [#allocation5]   ;;  %s4669_s28 = sld [smem:[#allocation41_spill]] }
   0xf   :  { %s49_s25 = sshll.u32 %s3866_s24, 4  ;;  %s50_s25 = int_to_ptr.vmem [resolvable:$true] %s49_s25 }
  0x14   :  { %s3450_s29 = scalar_lea.hbm %s4669_s28, 4096 }
  0x15   :  { %p3451_p0 = scmp.ne.s32.totalorder %s4669_s28, %s3450_s29  ;;  %p3454_p1 = scmp.lt.u32.totalorder %s3450_s29, %s4669_s28 }
  0x17   :  { %p3456_p2 = pnand %p3454_p1, %p3451_p0 }
  0x19   :  { %3459 = shalt.err (!%p3456_p2)
}
  0x1a   :  { %s3460_s1 = scalar_lea.vmem %s50_s25, 4096  ;;  %p3465_p4 = scmp.lt.s32.totalorder %s50_s25, %s50_s25 }
  0x1b   :  { %p3461_p3 = scmp.ne.s32.totalorder %s50_s25, %s3460_s1  ;;  %p3466_p5 = scmp.lt.s32.totalorder %s3460_s1, %s3460_s1 }
  0x1d   :  { %p3467_p6 = por %p3466_p5, %p3465_p4 }
  0x1f   :  { %p3468_p7 = pnand %p3467_p6, %p3461_p3 }
  0x21   :  { %3471 = shalt.err (!%p3468_p7)
}
  0x22   :  { %s3867_s20 = smov 128   ;;  %s3868_s21 = smov 8  }
  0x23   :  { %55 = dma.hbm_to_vmem [thread:$0]  %s4669_s28, 4096, %s50_s25, [#allocation6], %s3867_s20, %s3867_s20, %s3868_s21  }
  0x24   :  { %s3869_s24 = smov [#allocation8]   ;;  %s3870_s27 = smov [#allocation11]  }
  0x25   :  { %s71_s26 = sshll.u32 %s3869_s24, 4  ;;  %s95_s29 = sshll.u32 %s3870_s27, 4  ;;  %s72_s26 = int_to_ptr.vmem [resolvable:$true] %s71_s26  ;;  %s96_s29 = int_to_ptr.vmem [resolvable:$true] %s95_s29 }
  0x26   :  { %s3472_s18 = scalar_lea.hbm %s4646_s3, 1024 }
  0x27   :  { %p3473_p8 = scmp.ne.s32.totalorder %s4646_s3, %s3472_s18  ;;  %p3476_p9 = scmp.lt.u32.totalorder %s3472_s18, %s4646_s3 }
  0x29   :  { %p3478_p10 = pnand %p3476_p9, %p3473_p8 }
  0x2b   :  { %3481 = shalt.err (!%p3478_p10)
}
  0x2c   :  { %s3482_s25 = scalar_lea.vmem %s72_s26, 1024  ;;  %p3487_p12 = scmp.lt.s32.totalorder %s72_s26, %s72_s26 }
  0x2d   :  { %p3483_p11 = scmp.ne.s32.totalorder %s72_s26, %s3482_s25  ;;  %p3488_p13 = scmp.lt.s32.totalorder %s3482_s25, %s3482_s25 }
  0x2f   :  { %p3489_p0 = por %p3488_p13, %p3487_p12 }
  0x31   :  { %p3490_p1 = pnand %p3489_p0, %p3483_p11 }
  0x33   :  { %3493 = shalt.err (!%p3490_p1)
}
  0x34   :  { %s3871_s28 = smov 64   ;;  %s3872_s20 = smov 4  }
  0x35   :  { %77 = dma.hbm_to_vmem [thread:$0]  %s4646_s3, 1024, %s72_s26, [#allocation9], %s3871_s28, %s3871_s28, %s3872_s20  }
  0x36   :  { %s3494_s23 = scalar_lea.hbm %s4648_s5, 1024 }
  0x37   :  { %p3495_p2 = scmp.ne.s32.totalorder %s4648_s5, %s3494_s23  ;;  %p3498_p3 = scmp.lt.u32.totalorder %s3494_s23, %s4648_s5 }
  0x39   :  { %p3500_p4 = pnand %p3498_p3, %p3495_p2 }
  0x3b   :  { %3503 = shalt.err (!%p3500_p4)
}
  0x3c   :  { %s3504_s18 = scalar_lea.vmem %s96_s29, 1024  ;;  %p3509_p6 = scmp.lt.s32.totalorder %s96_s29, %s96_s29 }
  0x3d   :  { %p3505_p5 = scmp.ne.s32.totalorder %s96_s29, %s3504_s18  ;;  %p3510_p7 = scmp.lt.s32.totalorder %s3504_s18, %s3504_s18 }
  0x3f   :  { %p3511_p8 = por %p3510_p7, %p3509_p6 }
  0x41   :  { %p3512_p9 = pnand %p3511_p8, %p3505_p5 }
  0x43   :  { %3515 = shalt.err (!%p3512_p9)
}
  0x44   :  { %101 = dma.hbm_to_vmem [thread:$0]  %s4648_s5, 1024, %s96_s29, [#allocation12], %s3871_s28, %s3871_s28, %s3872_s20  }
  0x45   :  { %s3873_s19 = smov [#allocation14]   ;;  %s3874_s25 = smov [#allocation17]  }
  0x46   :  { %s120_s1 = sshll.u32 %s3873_s19, 4  ;;  %s140_s21 = sshll.u32 %s3874_s25, 4  ;;  %s121_s1 = int_to_ptr.vmem [resolvable:$true] %s120_s1  ;;  %s141_s21 = int_to_ptr.vmem [resolvable:$true] %s140_s21 }
  0x47   :  { %s3516_s17 = scalar_lea.hbm %s4650_s7, 16 }
  0x48   :  { %p3517_p10 = scmp.ne.s32.totalorder %s4650_s7, %s3516_s17  ;;  %p3520_p11 = scmp.lt.u32.totalorder %s3516_s17, %s4650_s7 }
  0x4a   :  { %p3522_p12 = pnand %p3520_p11, %p3517_p10 }
  0x4c   :  { %3525 = shalt.err (!%p3522_p12)
}
  0x4d   :  { %s3526_s5 = scalar_lea.vmem %s121_s1, 16  ;;  %s3530_s29 = scalar_lea.vmem %s121_s1, 32 }
  0x4e   :  { %p3527_p13 = scmp.ne.s32.totalorder %s121_s1, %s3526_s5  ;;  %p3531_p0 = scmp.lt.s32.totalorder %s121_s1, %s121_s1 }
  0x4f   :  { %p3532_p1 = scmp.lt.s32.totalorder %s3530_s29, %s3526_s5 }
  0x51   :  { %p3533_p2 = por %p3532_p1, %p3531_p0 }
  0x53   :  { %p3534_p3 = pnand %p3533_p2, %p3527_p13 }
  0x55   :  { %3537 = shalt.err (!%p3534_p3)
}
  0x56   :  { %123 = dma.hbm_to_vmem [thread:$0]  %s4650_s7, 16, %s121_s1, [#allocation15]  }
  0x57   :  { %s3538_s19 = scalar_lea.hbm %s4652_s9, 16 }
  0x58   :  { %p3539_p4 = scmp.ne.s32.totalorder %s4652_s9, %s3538_s19  ;;  %p3542_p5 = scmp.lt.u32.totalorder %s3538_s19, %s4652_s9 }
  0x5a   :  { %p3544_p6 = pnand %p3542_p5, %p3539_p4 }
  0x5c   :  { %3547 = shalt.err (!%p3544_p6)
}
  0x5d   :  { %s3548_s23 = scalar_lea.vmem %s141_s21, 16  ;;  %s3552_s24 = scalar_lea.vmem %s141_s21, 32 }
  0x5e   :  { %p3549_p7 = scmp.ne.s32.totalorder %s141_s21, %s3548_s23  ;;  %p3553_p8 = scmp.lt.s32.totalorder %s141_s21, %s141_s21 }
  0x5f   :  { %p3554_p9 = scmp.lt.s32.totalorder %s3552_s24, %s3548_s23 }
  0x61   :  { %p3555_p10 = por %p3554_p9, %p3553_p8 }
  0x63   :  { %p3556_p11 = pnand %p3555_p10, %p3549_p7 }
  0x65   :  { %3559 = shalt.err (!%p3556_p11)
}
  0x66   :  { %143 = dma.hbm_to_vmem [thread:$0]  %s4652_s9, 16, %s141_s21, [#allocation18]  }
  0x67   :  { %s3875_s27 = smov [#allocation20]   ;;  %s3876_s5 = smov [#allocation23]  }
  0x68   :  { %s160_s0 = sshll.u32 %s3875_s27, 4  ;;  %s180_s29 = sshll.u32 %s3876_s5, 4  ;;  %s161_s0 = int_to_ptr.vmem [resolvable:$true] %s160_s0  ;;  %s181_s29 = int_to_ptr.vmem [resolvable:$true] %s180_s29 }
  0x69   :  { %s3560_s3 = scalar_lea.hbm %s4654_s11, 16 }
  0x6a   :  { %p3561_p12 = scmp.ne.s32.totalorder %s4654_s11, %s3560_s3  ;;  %p3564_p13 = scmp.lt.u32.totalorder %s3560_s3, %s4654_s11 }
  0x6c   :  { %p3566_p0 = pnand %p3564_p13, %p3561_p12 }
  0x6e   :  { %3569 = shalt.err (!%p3566_p0)
}
  0x6f   :  { %s3570_s9 = scalar_lea.vmem %s161_s0, 16  ;;  %s3574_s21 = scalar_lea.vmem %s161_s0, 32 }
  0x70   :  { %p3571_p1 = scmp.ne.s32.totalorder %s161_s0, %s3570_s9  ;;  %p3575_p2 = scmp.lt.s32.totalorder %s161_s0, %s161_s0 }
  0x71   :  { %p3576_p3 = scmp.lt.s32.totalorder %s3574_s21, %s3570_s9 }
  0x73   :  { %p3577_p4 = por %p3576_p3, %p3575_p2 }
  0x75   :  { %p3578_p5 = pnand %p3577_p4, %p3571_p1 }
  0x77   :  { %3581 = shalt.err (!%p3578_p5)
}
  0x78   :  { %163 = dma.hbm_to_vmem [thread:$0]  %s4654_s11, 16, %s161_s0, [#allocation21]  }
  0x79   :  { %s3582_s7 = scalar_lea.hbm %s4656_s13, 16 }
  0x7a   :  { %p3583_p6 = scmp.ne.s32.totalorder %s4656_s13, %s3582_s7  ;;  %p3586_p7 = scmp.lt.u32.totalorder %s3582_s7, %s4656_s13 }
  0x7c   :  { %p3588_p8 = pnand %p3586_p7, %p3583_p6 }
  0x7e   :  { %3591 = shalt.err (!%p3588_p8)
}
  0x7f   :  { %s3592_s18 = scalar_lea.vmem %s181_s29, 16  ;;  %s3596_s3 = scalar_lea.vmem %s181_s29, 32 }
  0x80   :  { %p3593_p9 = scmp.ne.s32.totalorder %s181_s29, %s3592_s18  ;;  %p3597_p10 = scmp.lt.s32.totalorder %s181_s29, %s181_s29 }
  0x81   :  { %p3598_p11 = scmp.lt.s32.totalorder %s3596_s3, %s3592_s18 }
  0x83   :  { %p3599_p12 = por %p3598_p11, %p3597_p10 }
  0x85   :  { %p3600_p13 = pnand %p3599_p12, %p3593_p9 }
  0x87   :  { %3603 = shalt.err (!%p3600_p13)
}
  0x88   :  { %183 = dma.hbm_to_vmem [thread:$0]  %s4656_s13, 16, %s181_s29, [#allocation24]  }
  0x89   :  { %s3877_s26 = smov [#allocation26]   ;;  %s3878_s25 = smov [#allocation2]  }
  0x8a   :  { %s200_s19 = sshll.u32 %s3877_s26, 4  ;;  %s37_s22 = sshll.u32 %s3878_s25, 4  ;;  %s201_s19 = int_to_ptr.vmem [resolvable:$true] %s200_s19  ;;  %s38_s22 = int_to_ptr.vmem [resolvable:$true] %s37_s22 }
  0x8b   :  { %s3604_s16 = scalar_lea.hbm %s4658_s15, 16 }
  0x8c   :  { %p3605_p0 = scmp.ne.s32.totalorder %s4658_s15, %s3604_s16  ;;  %p3608_p1 = scmp.lt.u32.totalorder %s3604_s16, %s4658_s15 }
  0x8e   :  { %p3610_p2 = pnand %p3608_p1, %p3605_p0 }
  0x90   :  { %3613 = shalt.err (!%p3610_p2)
}
  0x91   :  { %s3614_s13 = scalar_lea.vmem %s201_s19, 16  ;;  %s3618_s29 = scalar_lea.vmem %s201_s19, 32 }
  0x92   :  { %p3615_p3 = scmp.ne.s32.totalorder %s201_s19, %s3614_s13  ;;  %p3619_p4 = scmp.lt.s32.totalorder %s201_s19, %s201_s19 }
  0x93   :  { %p3620_p5 = scmp.lt.s32.totalorder %s3618_s29, %s3614_s13 }
  0x95   :  { %p3621_p6 = por %p3620_p5, %p3619_p4 }
  0x97   :  { %p3622_p7 = pnand %p3621_p6, %p3615_p3 }
  0x99   :  { %3625 = shalt.err (!%p3622_p7)
}
  0x9a   :  { %203 = dma.hbm_to_vmem [thread:$0]  %s4658_s15, 16, %s201_s19, [#allocation27]  }
  0x9b   :  { %s4670_s18 = sld [smem:[#allocation40_spill]] }
  0xa1   :  { %s3626_s3 = scalar_lea.hbm %s4670_s18, 2048 }
  0xa2   :  { %p3627_p8 = scmp.ne.s32.totalorder %s4670_s18, %s3626_s3  ;;  %p3630_p9 = scmp.lt.u32.totalorder %s3626_s3, %s4670_s18 }
  0xa4   :  { %p3632_p10 = pnand %p3630_p9, %p3627_p8 }
  0xa6   :  { %3635 = shalt.err (!%p3632_p10)
}
  0xa7   :  { %s3636_s9 = scalar_lea.vmem %s38_s22, 2048  ;;  %p3641_p12 = scmp.lt.s32.totalorder %s38_s22, %s38_s22 }
  0xa8   :  { %p3637_p11 = scmp.ne.s32.totalorder %s38_s22, %s3636_s9  ;;  %p3642_p13 = scmp.lt.s32.totalorder %s3636_s9, %s3636_s9 }
  0xaa   :  { %p3643_p0 = por %p3642_p13, %p3641_p12 }
  0xac   :  { %p3644_p1 = pnand %p3643_p0, %p3637_p11 }
  0xae   :  { %3647 = shalt.err (!%p3644_p1)
}
  0xaf   :  { %43 = dma.hbm_to_vmem [thread:$0]  %s4670_s18, 2048, %s38_s22, [#allocation3], %s3871_s28, %s3871_s28, %s3872_s20  }
  0xb0   :  { %s3879_s21 = smov [#allocation7]   ;;  %s3880_s17 = smov [#allocation10]  }
  0xb1   :  { %s62_s16 = sshll.u32 %s3879_s21, 4  ;;  %s83_s23 = sshll.u32 %s3880_s17, 4  ;;  %s63_s16 = int_to_ptr.vmem [resolvable:$true] %s62_s16  ;;  %s84_s23 = int_to_ptr.vmem [resolvable:$true] %s83_s23 }
  0xb2   :  { %s3648_s13 = scalar_lea.hbm %s4645_s2, 256 }
  0xb3   :  { %p3649_p2 = scmp.ne.s32.totalorder %s4645_s2, %s3648_s13  ;;  %p3652_p3 = scmp.lt.u32.totalorder %s3648_s13, %s4645_s2 }
  0xb5   :  { %p3654_p4 = pnand %p3652_p3, %p3649_p2 }
  0xb7   :  { %3657 = shalt.err (!%p3654_p4)
}
  0xb8   :  { %s3658_s22 = scalar_lea.vmem %s63_s16, 256  ;;  %p3663_p6 = scmp.lt.s32.totalorder %s63_s16, %s63_s16 }
  0xb9   :  { %p3659_p5 = scmp.ne.s32.totalorder %s63_s16, %s3658_s22  ;;  %p3664_p7 = scmp.lt.s32.totalorder %s3658_s22, %s3658_s22 }
  0xbb   :  { %p3665_p8 = por %p3664_p7, %p3663_p6 }
  0xbd   :  { %p3666_p9 = pnand %p3665_p8, %p3659_p5 }
  0xbf   :  { %3669 = shalt.err (!%p3666_p9)
}
  0xc0   :  { %65 = dma.hbm_to_vmem [thread:$0]  %s4645_s2, 256, %s63_s16, [#allocation6]  }
  0xc1   :  { %s3670_s0 = scalar_lea.hbm %s4647_s4, 1024 }
  0xc2   :  { %p3671_p10 = scmp.ne.s32.totalorder %s4647_s4, %s3670_s0  ;;  %p3674_p11 = scmp.lt.u32.totalorder %s3670_s0, %s4647_s4 }
  0xc4   :  { %p3676_p12 = pnand %p3674_p11, %p3671_p10 }
  0xc6   :  { %3679 = shalt.err (!%p3676_p12)
}
  0xc7   :  { %s3680_s19 = scalar_lea.vmem %s84_s23, 1024  ;;  %p3685_p0 = scmp.lt.s32.totalorder %s84_s23, %s84_s23 }
  0xc8   :  { %p3681_p13 = scmp.ne.s32.totalorder %s84_s23, %s3680_s19  ;;  %p3686_p1 = scmp.lt.s32.totalorder %s3680_s19, %s3680_s19 }
  0xca   :  { %p3687_p2 = por %p3686_p1, %p3685_p0 }
  0xcc   :  { %p3688_p3 = pnand %p3687_p2, %p3681_p13 }
  0xce   :  { %3691 = shalt.err (!%p3688_p3)
}
  0xcf   :  { %89 = dma.hbm_to_vmem [thread:$0]  %s4647_s4, 1024, %s84_s23, [#allocation9], %s3871_s28, %s3871_s28, %s3872_s20  }
  0xd0   :  { %s3881_s16 = smov [#allocation13]   ;;  %s3882_s24 = smov [#allocation16]  }
  0xd1   :  { %s107_s17 = sshll.u32 %s3881_s16, 4  ;;  %s130_s7 = sshll.u32 %s3882_s24, 4  ;;  %s108_s17 = int_to_ptr.vmem [resolvable:$true] %s107_s17  ;;  %s131_s7 = int_to_ptr.vmem [resolvable:$true] %s130_s7 }
  0xd2   :  { %s3692_s1 = scalar_lea.hbm %s4649_s6, 1024 }
  0xd3   :  { %p3693_p4 = scmp.ne.s32.totalorder %s4649_s6, %s3692_s1  ;;  %p3696_p5 = scmp.lt.u32.totalorder %s3692_s1, %s4649_s6 }
  0xd5   :  { %p3698_p6 = pnand %p3696_p5, %p3693_p4 }
  0xd7   :  { %3701 = shalt.err (!%p3698_p6)
}
  0xd8   :  { %s3702_s4 = scalar_lea.vmem %s108_s17, 1024  ;;  %p3707_p8 = scmp.lt.s32.totalorder %s108_s17, %s108_s17 }
  0xd9   :  { %p3703_p7 = scmp.ne.s32.totalorder %s108_s17, %s3702_s4  ;;  %p3708_p9 = scmp.lt.s32.totalorder %s3702_s4, %s3702_s4 }
  0xdb   :  { %p3709_p10 = por %p3708_p9, %p3707_p8 }
  0xdd   :  { %p3710_p11 = pnand %p3709_p10, %p3703_p7 }
  0xdf   :  { %3713 = shalt.err (!%p3710_p11)
}
  0xe0   :  { %113 = dma.hbm_to_vmem [thread:$0]  %s4649_s6, 1024, %s108_s17, [#allocation12], %s3871_s28, %s3871_s28, %s3872_s20  }
  0xe1   :  { %s3714_s0 = scalar_lea.hbm %s4651_s8, 16 }
  0xe2   :  { %p3715_p12 = scmp.ne.s32.totalorder %s4651_s8, %s3714_s0  ;;  %p3718_p13 = scmp.lt.u32.totalorder %s3714_s0, %s4651_s8 }
  0xe4   :  { %p3720_p0 = pnand %p3718_p13, %p3715_p12 }
  0xe6   :  { %3723 = shalt.err (!%p3720_p0)
}
  0xe7   :  { %s3724_s19 = scalar_lea.vmem %s131_s7, 16  ;;  %s3728_s2 = scalar_lea.vmem %s131_s7, 32 }
  0xe8   :  { %p3725_p1 = scmp.ne.s32.totalorder %s131_s7, %s3724_s19  ;;  %p3729_p2 = scmp.lt.s32.totalorder %s131_s7, %s131_s7 }
  0xe9   :  { %p3730_p3 = scmp.lt.s32.totalorder %s3728_s2, %s3724_s19 }
  0xeb   :  { %p3731_p4 = por %p3730_p3, %p3729_p2 }
  0xed   :  { %p3732_p5 = pnand %p3731_p4, %p3725_p1 }
  0xef   :  { %3735 = shalt.err (!%p3732_p5)
}
  0xf0   :  { %133 = dma.hbm_to_vmem [thread:$0]  %s4651_s8, 16, %s131_s7, [#allocation15]  }
  0xf1   :  { %s3883_s20 = smov [#allocation19]   ;;  %s3884_s16 = smov [#allocation22]  }
  0xf2   :  { %s150_s21 = sshll.u32 %s3883_s20, 4  ;;  %s170_s17 = sshll.u32 %s3884_s16, 4  ;;  %s151_s21 = int_to_ptr.vmem [resolvable:$true] %s150_s21  ;;  %s171_s17 = int_to_ptr.vmem [resolvable:$true] %s170_s17 }
  0xf3   :  { %s3736_s29 = scalar_lea.hbm %s4653_s10, 16 }
  0xf4   :  { %p3737_p6 = scmp.ne.s32.totalorder %s4653_s10, %s3736_s29  ;;  %p3740_p7 = scmp.lt.u32.totalorder %s3736_s29, %s4653_s10 }
  0xf6   :  { %p3742_p8 = pnand %p3740_p7, %p3737_p6 }
  0xf8   :  { %3745 = shalt.err (!%p3742_p8)
}
  0xf9   :  { %s3746_s8 = scalar_lea.vmem %s151_s21, 16  ;;  %s3750_s7 = scalar_lea.vmem %s151_s21, 32 }
  0xfa   :  { %p3747_p9 = scmp.ne.s32.totalorder %s151_s21, %s3746_s8  ;;  %p3751_p10 = scmp.lt.s32.totalorder %s151_s21, %s151_s21 }
  0xfb   :  { %p3752_p11 = scmp.lt.s32.totalorder %s3750_s7, %s3746_s8 }
  0xfd   :  { %p3753_p12 = por %p3752_p11, %p3751_p10 }
  0xff   :  { %p3754_p13 = pnand %p3753_p12, %p3747_p9 }
 0x101   :  { %3757 = shalt.err (!%p3754_p13)
}
 0x102   :  { %153 = dma.hbm_to_vmem [thread:$0]  %s4653_s10, 16, %s151_s21, [#allocation18]  }
 0x103   :  { %s3758_s3 = scalar_lea.hbm %s4655_s12, 16 }
 0x104   :  { %p3759_p0 = scmp.ne.s32.totalorder %s4655_s12, %s3758_s3  ;;  %p3762_p1 = scmp.lt.u32.totalorder %s3758_s3, %s4655_s12 }
 0x106   :  { %p3764_p2 = pnand %p3762_p1, %p3759_p0 }
 0x108   :  { %3767 = shalt.err (!%p3764_p2)
}
 0x109   :  { %s3768_s9 = scalar_lea.vmem %s171_s17, 16  ;;  %s3772_s15 = scalar_lea.vmem %s171_s17, 32 }
 0x10a   :  { %p3769_p3 = scmp.ne.s32.totalorder %s171_s17, %s3768_s9  ;;  %p3773_p4 = scmp.lt.s32.totalorder %s171_s17, %s171_s17 }
 0x10b   :  { %p3774_p5 = scmp.lt.s32.totalorder %s3772_s15, %s3768_s9 }
 0x10d   :  { %p3775_p6 = por %p3774_p5, %p3773_p4 }
 0x10f   :  { %p3776_p7 = pnand %p3775_p6, %p3769_p3 }
 0x111   :  { %3779 = shalt.err (!%p3776_p7)
}
 0x112   :  { %173 = dma.hbm_to_vmem [thread:$0]  %s4655_s12, 16, %s171_s17, [#allocation21]  }
 0x113   :  { %s3885_s2 = smov [#allocation25]   ;;  %s3886_s28 = smov [#allocation28]  }
 0x114   :  { %s190_s6 = sshll.u32 %s3885_s2, 4  ;;  %s210_s20 = sshll.u32 %s3886_s28, 4  ;;  %s191_s6 = int_to_ptr.vmem [resolvable:$true] %s190_s6  ;;  %s211_s20 = int_to_ptr.vmem [resolvable:$true] %s210_s20 }
 0x115   :  { %s3780_s24 = scalar_lea.hbm %s4657_s14, 16 }
 0x116   :  { %p3781_p8 = scmp.ne.s32.totalorder %s4657_s14, %s3780_s24  ;;  %p3784_p9 = scmp.lt.u32.totalorder %s3780_s24, %s4657_s14 }
 0x118   :  { %p3786_p10 = pnand %p3784_p9, %p3781_p8 }
 0x11a   :  { %3789 = shalt.err (!%p3786_p10)
}
 0x11b   :  { %s3790_s12 = scalar_lea.vmem %s191_s6, 16  ;;  %s3794_s17 = scalar_lea.vmem %s191_s6, 32 }
 0x11c   :  { %p3791_p11 = scmp.ne.s32.totalorder %s191_s6, %s3790_s12  ;;  %p3795_p12 = scmp.lt.s32.totalorder %s191_s6, %s191_s6 }
 0x11d   :  { %p3796_p13 = scmp.lt.s32.totalorder %s3794_s17, %s3790_s12 }
 0x11f   :  { %p3797_p0 = por %p3796_p13, %p3795_p12 }
 0x121   :  { %p3798_p1 = pnand %p3797_p0, %p3791_p11 }
 0x123   :  { %3801 = shalt.err (!%p3798_p1)
}
 0x124   :  { %193 = dma.hbm_to_vmem [thread:$0]  %s4657_s14, 16, %s191_s6, [#allocation24]  }
 0x125   :  { %s4671_s30 = sld [smem:[#allocation42_spill]] }
 0x12b   :  { %s3802_s4 = scalar_lea.hbm %s4671_s30, 16 }
 0x12c   :  { %p3803_p2 = scmp.ne.s32.totalorder %s4671_s30, %s3802_s4  ;;  %p3806_p3 = scmp.lt.u32.totalorder %s3802_s4, %s4671_s30 }
 0x12e   :  { %p3808_p4 = pnand %p3806_p3, %p3803_p2 }
 0x130   :  { %3811 = shalt.err (!%p3808_p4)
}
 0x131   :  { %s3812_s0 = scalar_lea.vmem %s211_s20, 16  ;;  %s3816_s26 = scalar_lea.vmem %s211_s20, 32 }
 0x132   :  { %p3813_p5 = scmp.ne.s32.totalorder %s211_s20, %s3812_s0  ;;  %p3817_p6 = scmp.lt.s32.totalorder %s211_s20, %s211_s20 }
 0x133   :  { %p3818_p7 = scmp.lt.s32.totalorder %s3816_s26, %s3812_s0 }
 0x135   :  { %p3819_p8 = por %p3818_p7, %p3817_p6 }
 0x137   :  { %p3820_p9 = pnand %p3819_p8, %p3813_p5 }
 0x139   :  { %3823 = shalt.err (!%p3820_p9)
}
 0x13a   :  { %213 = dma.hbm_to_vmem [thread:$0]  %s4671_s30, 16, %s211_s20, [#allocation27]  }
 0x13b   :  { %3846 = dma.done.wait [#allocation3], 2048  }
 0x13c   :  { %3847 = vsyncadd [#allocation3], 4294965248 }
 0x13d   :  { %3848 = dma.done.wait [#allocation6], 4352  }
 0x13e   :  { %3849 = vsyncadd [#allocation6], 4294962944 }
 0x13f   :  { %3850 = dma.done.wait [#allocation9], 2048  }
 0x140   :  { %3851 = vsyncadd [#allocation9], 4294965248 }
 0x141   :  { %3852 = dma.done.wait [#allocation12], 2048  }
 0x142   :  { %3853 = vsyncadd [#allocation12], 4294965248 }
 0x143   :  { %3854 = dma.done.wait [#allocation15], 32  }
 0x144   :  { %3855 = vsyncadd [#allocation15], 4294967264 }
 0x145   :  { %3856 = dma.done.wait [#allocation18], 32  }
 0x146   :  { %3857 = vsyncadd [#allocation18], 4294967264 }
 0x147   :  { %3858 = dma.done.wait [#allocation21], 32  }
 0x148   :  { %3859 = vsyncadd [#allocation21], 4294967264 }
 0x149   :  { %3860 = dma.done.wait [#allocation24], 32  }
 0x14a   :  { %3861 = vsyncadd [#allocation24], 4294967264 }
 0x14b   :  { %3862 = dma.done.wait [#allocation27], 32  }
 0x14c   :  { %3863 = vsyncadd [#allocation27], 4294967264  ;;  %v3322_v0 = vld [vmem:[#allocation8] sm:$0xff]   ;;  %v3323_v1 = vld [vmem:[#allocation8 + $0x8] sm:$0xff]   ;;  %s3887_s9 = smov [#allocation29]  }
 0x14d   :  { %3076 = vmatprep.subr.bf16.mxu0 %v3322_v0  ;;  %v3324_v2 = vld [vmem:[#allocation8 + $0x10] sm:$0xff]   ;;  %v3325_v3 = vld [vmem:[#allocation8 + $0x18] sm:$0xff]   ;;  %v3326_v5 = vld [vmem:[#allocation8 + $0x20] sm:$0xff]   ;;  %s2502_s15 = sshll.u32 %s3887_s9, 4  ;;  %s2503_s15 = int_to_ptr.vmem [resolvable:$true] %s2502_s15 }
 0x14e   :  { %3077 = vmatpush3.bf16.msra.mxu0 %v3322_v0  ;;  %v3330_v4 = vld [vmem:[#allocation2] sm:$0xff]   ;;  %v3327_v6 = vld [vmem:[#allocation8 + $0x28] sm:$0xff]   ;;  %v3329_v8 = vld [vmem:[#allocation8 + $0x38] sm:$0xff]   ;;  %s3824_s10 = scalar_lea.vmem %s2503_s15, 128  ;;  %p3829_p11 = scmp.lt.s32.totalorder %s2503_s15, %s2503_s15 }
 0x14f   :  { %3078 = vmatprep.subr.bf16.mxu0 %v3323_v1  ;;  %3092 = vmatprep.mubr.bf16.mxu0 %v3330_v4  ;;  %v3328_v7 = vld [vmem:[#allocation8 + $0x30] sm:$0xff]   ;;  %v3331_v9 = vld [vmem:[#allocation2 + $0x8] sm:$0xff]   ;;  %v3332_v10 = vld [vmem:[#allocation2 + $0x10] sm:$0xff]   ;;  %p3825_p10 = scmp.ne.s32.totalorder %s2503_s15, %s3824_s10  ;;  %p3830_p12 = scmp.lt.s32.totalorder %s3824_s10, %s3824_s10 }
 0x150   :  { %v3333_v11 = vld [vmem:[#allocation2 + $0x18] sm:$0xff]   ;;  %v3334_v12 = vld [vmem:[#allocation2 + $0x20] sm:$0xff]   ;;  %v3335_v13 = vld [vmem:[#allocation2 + $0x28] sm:$0xff]  }
 0x151   :  { %v3336_v14 = vld [vmem:[#allocation2 + $0x30] sm:$0xff]   ;;  %v3337_v15 = vld [vmem:[#allocation2 + $0x38] sm:$0xff]   ;;  %v3338_v16 = vld [vmem:[#allocation2 + $0x40] sm:$0xff]   ;;  %p3831_p13 = por %p3830_p12, %p3829_p11 }
 0x152   :  { %3079 = vmatpush3.bf16.msra.mxu0 %v3323_v1  ;;  %v3339_v17 = vld [vmem:[#allocation2 + $0x48] sm:$0xff]   ;;  %v3340_v18 = vld [vmem:[#allocation2 + $0x50] sm:$0xff]   ;;  %v3341_v19 = vld [vmem:[#allocation2 + $0x58] sm:$0xff]  }
 0x153   :  { %3080 = vmatprep.subr.bf16.mxu0 %v3324_v2  ;;  %v3342_v20 = vld [vmem:[#allocation2 + $0x60] sm:$0xff]   ;;  %v3343_v21 = vld [vmem:[#allocation2 + $0x68] sm:$0xff]   ;;  %v3344_v22 = vld [vmem:[#allocation2 + $0x70] sm:$0xff]   ;;  %p3832_p0 = pnand %p3831_p13, %p3825_p10 }
 0x154   :  { %v3345_v23 = vld [vmem:[#allocation2 + $0x78] sm:$0xff]   ;;  %v4197_v24 = vld [vmem:[#allocation5 + $0x4] ss:$8 sps:$4 sm:$0xff]  }
 0x155   :  { %866 = vmatprep.mubr.bf16.mxu1 %v4197_v24 }
 0x156   :  { %3081 = vmatpush3.bf16.msra.mxu0 %v3324_v2 }
 0x157   :  { %3082 = vmatprep.subr.bf16.mxu0 %v3325_v3 }
 0x15a   :  { %3083 = vmatpush3.bf16.msra.mxu0 %v3325_v3 }
 0x15b   :  { %3084 = vmatprep.subr.bf16.mxu0 %v3326_v5 }
 0x15e   :  { %3085 = vmatpush3.bf16.msra.mxu0 %v3326_v5 }
 0x15f   :  { %3086 = vmatprep.subr.bf16.mxu0 %v3327_v6 }
 0x162   :  { %3087 = vmatpush3.bf16.msra.mxu0 %v3327_v6 }
 0x163   :  { %3088 = vmatprep.subr.bf16.mxu0 %v3328_v7 }
 0x166   :  { %3089 = vmatpush3.bf16.msra.mxu0 %v3328_v7 }
 0x167   :  { %3090 = vmatprep.subr.bf16.mxu0 %v3329_v8 }
 0x16a   :  { %3091 = vmatpush3.bf16.msra.mxu0 %v3329_v8 }
 0x16d   :  { %3093 = vmatmul.mubr.bf16.vlgmr.msra.gmra.mrb[0].mxu0 %v3331_v9  ;;  %v3394_v9 = vld [vmem:[#allocation10] sm:$0xff]  }
 0x16e   :  { %3096 = vmatprep.mubr.bf16.mxu0 %v3332_v10  ;;  %v3395_v10 = vld [vmem:[#allocation10 + $0x8] sm:$0xff]   ;;  %3124 = vmatprep.subr.bf16.mxu0 %v3394_v9 }
 0x16f   :  { %3125 = vmatpush3.bf16.msra.mxu0 %v3394_v9 }
 0x170   :  { %3126 = vmatprep.subr.bf16.mxu0 %v3395_v10 }
 0x173   :  { %3127 = vmatpush3.bf16.msra.mxu0 %v3395_v10 }
 0x175   :  { %3097 = vmatmul.mubr.bf16.gmra.mrb[4].mxu0 %v3333_v11  ;;  %v4200_v11 = vld [vmem:[#allocation5] ss:$8 sps:$4 sm:$0xff]  }
 0x176   :  { %3100 = vmatprep.mubr.bf16.mxu0 %v3334_v12  ;;  %v4202_v12 = vld [vmem:[#allocation5 + $0x14] ss:$8 sps:$4 sm:$0xff]  }
 0x17d   :  { %3101 = vmatmul.mubr.bf16.gmra.mrb[8].mxu0 %v3335_v13  ;;  %v4206_v13 = vld [vmem:[#allocation5 + $0x10] ss:$8 sps:$4 sm:$0xff]  }
 0x17e   :  { %3104 = vmatprep.mubr.bf16.mxu0 %v3336_v14  ;;  %v4208_v14 = vld [vmem:[#allocation5 + $0x24] ss:$8 sps:$4 sm:$0xff]  }
 0x185   :  { %3105 = vmatmul.mubr.bf16.gmra.mrb[12].mxu0 %v3337_v15  ;;  %v4212_v15 = vld [vmem:[#allocation5 + $0x20] ss:$8 sps:$4 sm:$0xff]  }
 0x186   :  { %3108 = vmatprep.mubr.bf16.mxu0 %v3338_v16  ;;  %v4214_v16 = vld [vmem:[#allocation5 + $0x34] ss:$8 sps:$4 sm:$0xff]  }
 0x18d   :  { %3109 = vmatmul.mubr.bf16.gmra.mrb[16].mxu0 %v3339_v17  ;;  %v4218_v17 = vld [vmem:[#allocation5 + $0x30] ss:$8 sps:$4 sm:$0xff]  }
 0x18e   :  { %3112 = vmatprep.mubr.bf16.mxu0 %v3340_v18  ;;  %v4220_v18 = vld [vmem:[#allocation5 + $0x44] ss:$8 sps:$4 sm:$0xff]  }
 0x195   :  { %3113 = vmatmul.mubr.bf16.gmra.mrb[20].mxu0 %v3341_v19  ;;  %v4224_v19 = vld [vmem:[#allocation5 + $0x40] ss:$8 sps:$4 sm:$0xff]  }
 0x196   :  { %3116 = vmatprep.mubr.bf16.mxu0 %v3342_v20  ;;  %v4226_v20 = vld [vmem:[#allocation5 + $0x54] ss:$8 sps:$4 sm:$0xff]  }
 0x19d   :  { %3117 = vmatmul.mubr.bf16.gmra.mrb[24].mxu0 %v3343_v21  ;;  %v4230_v21 = vld [vmem:[#allocation5 + $0x50] ss:$8 sps:$4 sm:$0xff]  }
 0x19e   :  { %3120 = vmatprep.mubr.bf16.mxu0 %v3344_v22  ;;  %v4232_v22 = vld [vmem:[#allocation5 + $0x64] ss:$8 sps:$4 sm:$0xff]  }
 0x1a5   :  { %3121 = vmatmul.mubr.bf16.gmra.mrb[28].mxu0 %v3345_v23  ;;  %v4236_v23 = vld [vmem:[#allocation5 + $0x60] ss:$8 sps:$4 sm:$0xff]  }
 0x240   :  { %v3094_v25 = vpop.f32.mrb[0].mxu0 }
 0x241   :  { %v492_v26 = vpop.f32.mrb[1].mxu0 }
 0x242   :  { %v3095_v27 = vpop.f32.mrb[2].mxu0 }
 0x243   :  { %v652_v28 = vpack.c.bf16 %v3095_v27, %v3094_v25  ;;  %v495_v29 = vpop.f32.mrb[3].mxu0  ;;  %v4238_v25 = vld [vmem:[#allocation5 + $0x74] ss:$8 sps:$4 sm:$0xff]   ;;  %v4244_v27 = vld [vmem:[#allocation5 + $0x84] ss:$8 sps:$4 sm:$0xff]  }
 0x244   :  { %v651_v30 = vpack.c.bf16 %v495_v29, %v492_v26  ;;  %v4242_v26 = vld [vmem:[#allocation5 + $0x70] ss:$8 sps:$4 sm:$0xff]   ;;  %v4250_v29 = vld [vmem:[#allocation5 + $0x94] ss:$8 sps:$4 sm:$0xff]  }
 0x248   :  { %v3098_v31 = vpop.f32.mrb[4].mxu0 }
 0x249   :  { %v508_v32 = vpop.f32.mrb[5].mxu0 }
 0x24a   :  { %v3099_v33 = vpop.f32.mrb[6].mxu0 }
 0x24b   :  { %v654_v34 = vpack.c.bf16 %v3099_v33, %v3098_v31  ;;  %v511_v35 = vpop.f32.mrb[7].mxu0  ;;  %v4256_v31 = vld [vmem:[#allocation5 + $0xa4] ss:$8 sps:$4 sm:$0xff]   ;;  %v4262_v33 = vld [vmem:[#allocation5 + $0xb4] ss:$8 sps:$4 sm:$0xff]  }
 0x24c   :  { %v653_v36 = vpack.c.bf16 %v511_v35, %v508_v32  ;;  %v4260_v32 = vld [vmem:[#allocation5 + $0xa0] ss:$8 sps:$4 sm:$0xff]   ;;  %v4266_v35 = vld [vmem:[#allocation5 + $0xb0] ss:$8 sps:$4 sm:$0xff]  }
 0x250   :  { %v3102_v37 = vpop.f32.mrb[8].mxu0 }
 0x251   :  { %v524_v38 = vpop.f32.mrb[9].mxu0 }
 0x252   :  { %v3103_v39 = vpop.f32.mrb[10].mxu0 }
 0x253   :  { %v656_v40 = vpack.c.bf16 %v3103_v39, %v3102_v37  ;;  %v527_v41 = vpop.f32.mrb[11].mxu0  ;;  %v3397_v37 = vld [vmem:[#allocation10 + $0x18] sm:$0xff]  }
 0x254   :  { %v655_v42 = vpack.c.bf16 %v527_v41, %v524_v38  ;;  %v3398_v38 = vld [vmem:[#allocation10 + $0x20] sm:$0xff]   ;;  %v4272_v39 = vld [vmem:[#allocation5 + $0xc0] ss:$8 sps:$4 sm:$0xff]   ;;  %v3399_v41 = vld [vmem:[#allocation10 + $0x28] sm:$0xff]  }
 0x258   :  { %v3106_v43 = vpop.f32.mrb[12].mxu0 }
 0x259   :  { %v540_v44 = vpop.f32.mrb[13].mxu0 }
 0x25a   :  { %v3107_v45 = vpop.f32.mrb[14].mxu0 }
 0x25b   :  { %v658_v46 = vpack.c.bf16 %v3107_v45, %v3106_v43  ;;  %v543_v47 = vpop.f32.mrb[15].mxu0  ;;  %v4278_v43 = vld [vmem:[#allocation5 + $0xd0] ss:$8 sps:$4 sm:$0xff]   ;;  %v3401_v45 = vld [vmem:[#allocation10 + $0x38] sm:$0xff]  }
 0x25c   :  { %v657_v48 = vpack.c.bf16 %v543_v47, %v540_v44  ;;  %v4280_v44 = vld [vmem:[#allocation5 + $0xe4] ss:$8 sps:$4 sm:$0xff]   ;;  %v4286_v47 = vld [vmem:[#allocation5 + $0xf4] ss:$8 sps:$4 sm:$0xff]  }
 0x260   :  { %v3110_v49 = vpop.f32.mrb[16].mxu0 }
 0x261   :  { %v556_v50 = vpop.f32.mrb[17].mxu0 }
 0x262   :  { %v3111_v51 = vpop.f32.mrb[18].mxu0 }
 0x263   :  { %v660_v52 = vpack.c.bf16 %v3111_v51, %v3110_v49  ;;  %v559_v53 = vpop.f32.mrb[19].mxu0 }
 0x264   :  { %v659_v54 = vpack.c.bf16 %v559_v53, %v556_v50  ;;  %v4293_v50 = vld [vmem:[#allocation14] ss:$0 sm:$0xff] }
 0x266   :  { %2633 = vmatprep.subr.bf16.mxu1 %v659_v54 }
 0x267   :  { %2634 = vmatpush3.bf16.msra.mxu1 %v651_v30  ;;  %v4254_v30 = vld [vmem:[#allocation5 + $0x90] ss:$8 sps:$4 sm:$0xff]  }
 0x268   :  { %v3114_v55 = vpop.f32.mrb[20].mxu0  ;;  %2635 = vmatprep.subr.bf16.mxu1 %v660_v52 }
 0x269   :  { %v572_v56 = vpop.f32.mrb[21].mxu0 }
 0x26a   :  { %v3115_v57 = vpop.f32.mrb[22].mxu0 }
 0x26b   :  { %v662_v58 = vpack.c.bf16 %v3115_v57, %v3114_v55  ;;  %v575_v59 = vpop.f32.mrb[23].mxu0  ;;  %2636 = vmatpush3.bf16.msra.mxu1 %v652_v28  ;;  %v4248_v28 = vld [vmem:[#allocation5 + $0x80] ss:$8 sps:$4 sm:$0xff]   ;;  %v4296_v57 = vld [vmem:[#allocation20] ss:$0 sm:$0xff] }
 0x26c   :  { %v661_v60 = vpack.c.bf16 %v575_v59, %v572_v56 }
 0x26e   :  { %2637 = vmatprep.subr.bf16.mxu1 %v661_v60 }
 0x26f   :  { %2638 = vmatpush3.bf16.msra.mxu1 %v653_v36  ;;  %v4268_v36 = vld [vmem:[#allocation5 + $0xc4] ss:$8 sps:$4 sm:$0xff]  }
 0x270   :  { %v3118_v61 = vpop.f32.mrb[24].mxu0  ;;  %2639 = vmatprep.subr.bf16.mxu1 %v662_v58 }
 0x271   :  { %v588_v62 = vpop.f32.mrb[25].mxu0 }
 0x272   :  { %v3119_v63 = vpop.f32.mrb[26].mxu0 }
 0x273   :  { %v664_v0 = vpack.c.bf16 %v3119_v63, %v3118_v61  ;;  %v591_v1 = vpop.f32.mrb[27].mxu0  ;;  %2640 = vmatpush3.bf16.msra.mxu1 %v654_v34  ;;  %v3396_v34 = vld [vmem:[#allocation10 + $0x10] sm:$0xff]  }
 0x274   :  { %v663_v2 = vpack.c.bf16 %v591_v1, %v588_v62  ;;  %3128 = vmatprep.subr.bf16.mxu0 %v3396_v34 }
 0x275   :  { %3129 = vmatpush3.bf16.msra.mxu0 %v3396_v34 }
 0x276   :  { %2641 = vmatprep.subr.bf16.mxu1 %v663_v2  ;;  %3130 = vmatprep.subr.bf16.mxu0 %v3397_v37 }
 0x277   :  { %2642 = vmatpush3.bf16.msra.mxu1 %v655_v42  ;;  %v3400_v42 = vld [vmem:[#allocation10 + $0x30] sm:$0xff]  }
 0x278   :  { %v3122_v3 = vpop.f32.mrb[28].mxu0  ;;  %2643 = vmatprep.subr.bf16.mxu1 %v664_v0  ;;  %v4300_v0 = vld [vmem:[#allocation25] ss:$0 sm:$0xff] }
 0x279   :  { %v604_v4 = vpop.f32.mrb[29].mxu0  ;;  %3131 = vmatpush3.bf16.msra.mxu0 %v3397_v37 }
 0x27a   :  { %v3123_v5 = vpop.f32.mrb[30].mxu0  ;;  %3132 = vmatprep.subr.bf16.mxu0 %v3398_v38 }
 0x27b   :  { %v666_v6 = vpack.c.bf16 %v3123_v5, %v3122_v3  ;;  %v607_v7 = vpop.f32.mrb[31].mxu0  ;;  %2644 = vmatpush3.bf16.msra.mxu1 %v656_v40  ;;  %v4274_v40 = vld [vmem:[#allocation5 + $0xd4] ss:$8 sps:$4 sm:$0xff]  }
 0x27c   :  { %v665_v8 = vpack.c.bf16 %v607_v7, %v604_v4 }
 0x27d   :  { %3133 = vmatpush3.bf16.msra.mxu0 %v3398_v38 }
 0x27e   :  { %2645 = vmatprep.subr.bf16.mxu1 %v665_v8  ;;  %3134 = vmatprep.subr.bf16.mxu0 %v3399_v41 }
 0x27f   :  { %2646 = vmatpush3.bf16.msra.mxu1 %v657_v48  ;;  %v4290_v48 = vld [vmem:[#allocation5 + $0xf0] ss:$8 sps:$4 sm:$0xff]  }
 0x280   :  { %2647 = vmatprep.subr.bf16.mxu1 %v666_v6 }
 0x281   :  { %3135 = vmatpush3.bf16.msra.mxu0 %v3399_v41 }
 0x282   :  { %3136 = vmatprep.subr.bf16.mxu0 %v3400_v42 }
 0x283   :  { %2648 = vmatpush3.bf16.msra.mxu1 %v658_v46  ;;  %v4284_v46 = vld [vmem:[#allocation5 + $0xe0] ss:$8 sps:$4 sm:$0xff]  }
 0x285   :  { %3137 = vmatpush3.bf16.msra.mxu0 %v3400_v42 }
 0x286   :  { %867 = vmatmul.mubr.bf16.vlgmr.msra.gmra.mrb[0].mxu1 %v4200_v11  ;;  %3138 = vmatprep.subr.bf16.mxu0 %v3401_v45 }
 0x287   :  { %874 = vmatprep.mubr.bf16.mxu1 %v4202_v12 }
 0x289   :  { %3139 = vmatpush3.bf16.msra.mxu0 %v3401_v45 }
 0x28e   :  { %875 = vmatmul.mubr.bf16.gmra.mrb[4].mxu1 %v4206_v13 }
 0x28f   :  { %882 = vmatprep.mubr.bf16.mxu1 %v4208_v14 }
 0x296   :  { %883 = vmatmul.mubr.bf16.gmra.mrb[8].mxu1 %v4212_v15 }
 0x297   :  { %890 = vmatprep.mubr.bf16.mxu1 %v4214_v16 }
 0x29e   :  { %891 = vmatmul.mubr.bf16.gmra.mrb[12].mxu1 %v4218_v17 }
 0x29f   :  { %898 = vmatprep.mubr.bf16.mxu1 %v4220_v18 }
 0x2a6   :  { %899 = vmatmul.mubr.bf16.gmra.mrb[16].mxu1 %v4224_v19 }
 0x2a7   :  { %906 = vmatprep.mubr.bf16.mxu1 %v4226_v20 }
 0x2ae   :  { %907 = vmatmul.mubr.bf16.gmra.mrb[20].mxu1 %v4230_v21 }
 0x2af   :  { %914 = vmatprep.mubr.bf16.mxu1 %v4232_v22 }
 0x2b6   :  { %915 = vmatmul.mubr.bf16.gmra.mrb[24].mxu1 %v4236_v23 }
 0x2b7   :  { %922 = vmatprep.mubr.bf16.mxu1 %v4238_v25 }
 0x2be   :  { %923 = vmatmul.mubr.bf16.gmra.mrb[28].mxu1 %v4242_v26 }
 0x2bf   :  { %930 = vmatprep.mubr.bf16.mxu1 %v4244_v27 }
 0x2c6   :  { %931 = vmatmul.mubr.bf16.gmra.mrb[32].mxu1 %v4248_v28 }
 0x2c7   :  { %938 = vmatprep.mubr.bf16.mxu1 %v4250_v29 }
 0x2ce   :  { %939 = vmatmul.mubr.bf16.gmra.mrb[36].mxu1 %v4254_v30 }
 0x2cf   :  { %946 = vmatprep.mubr.bf16.mxu1 %v4256_v31 }
 0x2d6   :  { %947 = vmatmul.mubr.bf16.gmra.mrb[40].mxu1 %v4260_v32 }
 0x2d7   :  { %954 = vmatprep.mubr.bf16.mxu1 %v4262_v33 }
 0x2de   :  { %955 = vmatmul.mubr.bf16.gmra.mrb[44].mxu1 %v4266_v35 }
 0x2df   :  { %962 = vmatprep.mubr.bf16.mxu1 %v4268_v36 }
 0x2e6   :  { %963 = vmatmul.mubr.bf16.gmra.mrb[48].mxu1 %v4272_v39 }
 0x2e7   :  { %970 = vmatprep.mubr.bf16.mxu1 %v4274_v40 }
 0x2ee   :  { %971 = vmatmul.mubr.bf16.gmra.mrb[52].mxu1 %v4278_v43 }
 0x2ef   :  { %978 = vmatprep.mubr.bf16.mxu1 %v4280_v44 }
 0x2f6   :  { %979 = vmatmul.mubr.bf16.gmra.mrb[56].mxu1 %v4284_v46 }
 0x2f7   :  { %986 = vmatprep.mubr.bf16.mxu1 %v4286_v47 }
 0x2fe   :  { %987 = vmatmul.mubr.bf16.gmra.mrb[60].mxu1 %v4290_v48 }
 0x359   :  { %v2649_v49 = vpop.f32.mrb[0].mxu1 }
 0x35a   :  { %v2650_v51 = vpop.f32.mrb[1].mxu1 }
 0x35b   :  { %v2651_v52 = vadd.f32 %v2650_v51, %v2649_v49  ;;  %v2652_v53 = vpop.f32.mrb[2].mxu1 }
 0x35c   :  { %v2653_v54 = vpop.f32.mrb[3].mxu1 }
 0x35d   :  { %v869_v55 = vadd.f32 %v2651_v52, %v4293_v50  ;;  %v2654_v56 = vadd.f32 %v2653_v54, %v2652_v53 }
 0x35f   :  { %v995_v58 = vmax.f32 %v869_v55, 0.0  ;;  %v872_v59 = vadd.f32 %v2654_v56, %v4293_v50 }
 0x361   :  { %v1034_v60 = vmul.f32 %v4296_v57, %v995_v58  ;;  %v996_v61 = vmax.f32 %v872_v59, 0.0  ;;  %v2655_v62 = vpop.f32.mrb[4].mxu1 }
 0x362   :  { %v2656_v63 = vpop.f32.mrb[5].mxu1 }
 0x363   :  { %v1035_v1 = vmul.f32 %v4296_v57, %v996_v61  ;;  %v2657_v2 = vadd.f32 %v2656_v63, %v2655_v62  ;;  %v2658_v3 = vpop.f32.mrb[6].mxu1  ;;  %v1073_v7 = vadd.f32 %v4300_v0, %v1034_v60 }
 0x364   :  { %v2659_v4 = vpop.f32.mrb[7].mxu1 }
 0x365   :  { %v877_v5 = vadd.f32 %v2657_v2, %v4293_v50  ;;  %v2660_v6 = vadd.f32 %v2659_v4, %v2658_v3  ;;  %v1074_v8 = vadd.f32 %v4300_v0, %v1035_v1 }
 0x367   :  { %v997_v9 = vmax.f32 %v877_v5, 0.0  ;;  %v880_v10 = vadd.f32 %v2660_v6, %v4293_v50  ;;  %v1105_v34 = vpack.c.bf16 %v1074_v8, %v1073_v7 }
 0x369   :  { %v1036_v37 = vmul.f32 %v4296_v57, %v997_v9  ;;  %v998_v38 = vmax.f32 %v880_v10, 0.0  ;;  %v2661_v41 = vpop.f32.mrb[8].mxu1  ;;  %3140 = vmatprep.mubr.bf16.mxu0 %v1105_v34 }
 0x36a   :  { %v2662_v42 = vpop.f32.mrb[9].mxu1 }
 0x36b   :  { %v1037_v45 = vmul.f32 %v4296_v57, %v998_v38  ;;  %v2663_v49 = vadd.f32 %v2662_v42, %v2661_v41  ;;  %v2664_v51 = vpop.f32.mrb[10].mxu1  ;;  %v1075_v53 = vadd.f32 %v4300_v0, %v1036_v37 }
 0x36c   :  { %v2665_v52 = vpop.f32.mrb[11].mxu1 }
 0x36d   :  { %v1076_v54 = vadd.f32 %v4300_v0, %v1037_v45  ;;  %v885_v55 = vadd.f32 %v2663_v49, %v4293_v50  ;;  %v2666_v56 = vadd.f32 %v2665_v52, %v2664_v51 }
 0x36f   :  { %v1106_v58 = vpack.c.bf16 %v1076_v54, %v1075_v53  ;;  %v999_v59 = vmax.f32 %v885_v55, 0.0  ;;  %v888_v60 = vadd.f32 %v2666_v56, %v4293_v50 }
 0x371   :  { %v1038_v61 = vmul.f32 %v4296_v57, %v999_v59  ;;  %v1000_v62 = vmax.f32 %v888_v60, 0.0  ;;  %v2667_v63 = vpop.f32.mrb[12].mxu1  ;;  %3141 = vmatmul.mubr.bf16.vlgmr.msra.gmra.mrb[32].mxu0 %v1106_v58 }
 0x372   :  { %v2668_v1 = vpop.f32.mrb[13].mxu1 }
 0x373   :  { %v1039_v2 = vmul.f32 %v4296_v57, %v1000_v62  ;;  %v2669_v3 = vadd.f32 %v2668_v1, %v2667_v63  ;;  %v2670_v4 = vpop.f32.mrb[14].mxu1  ;;  %v1077_v8 = vadd.f32 %v4300_v0, %v1038_v61 }
 0x374   :  { %v2671_v5 = vpop.f32.mrb[15].mxu1 }
 0x375   :  { %v893_v6 = vadd.f32 %v2669_v3, %v4293_v50  ;;  %v2672_v7 = vadd.f32 %v2671_v5, %v2670_v4  ;;  %v1078_v9 = vadd.f32 %v4300_v0, %v1039_v2 }
 0x377   :  { %v1001_v10 = vmax.f32 %v893_v6, 0.0  ;;  %v896_v34 = vadd.f32 %v2672_v7, %v4293_v50  ;;  %v1107_v37 = vpack.c.bf16 %v1078_v9, %v1077_v8 }
 0x379   :  { %v1040_v38 = vmul.f32 %v4296_v57, %v1001_v10  ;;  %v1002_v41 = vmax.f32 %v896_v34, 0.0  ;;  %v2673_v42 = vpop.f32.mrb[16].mxu1  ;;  %3144 = vmatprep.mubr.bf16.mxu0 %v1107_v37 }
 0x37a   :  { %v2674_v45 = vpop.f32.mrb[17].mxu1 }
 0x37b   :  { %v1041_v49 = vmul.f32 %v4296_v57, %v1002_v41  ;;  %v2675_v51 = vadd.f32 %v2674_v45, %v2673_v42  ;;  %v2676_v52 = vpop.f32.mrb[18].mxu1  ;;  %v1079_v56 = vadd.f32 %v4300_v0, %v1040_v38 }
 0x37c   :  { %v2677_v53 = vpop.f32.mrb[19].mxu1 }
 0x37d   :  { %v901_v54 = vadd.f32 %v2675_v51, %v4293_v50  ;;  %v2678_v55 = vadd.f32 %v2677_v53, %v2676_v52  ;;  %v1080_v58 = vadd.f32 %v4300_v0, %v1041_v49 }
 0x37f   :  { %v1003_v59 = vmax.f32 %v901_v54, 0.0  ;;  %v904_v60 = vadd.f32 %v2678_v55, %v4293_v50  ;;  %v1108_v61 = vpack.c.bf16 %v1080_v58, %v1079_v56 }
 0x381   :  { %v1042_v62 = vmul.f32 %v4296_v57, %v1003_v59  ;;  %v1004_v63 = vmax.f32 %v904_v60, 0.0  ;;  %v2679_v1 = vpop.f32.mrb[20].mxu1  ;;  %3145 = vmatmul.mubr.bf16.gmra.mrb[36].mxu0 %v1108_v61 }
 0x382   :  { %v2680_v2 = vpop.f32.mrb[21].mxu1 }
 0x383   :  { %v1043_v3 = vmul.f32 %v4296_v57, %v1004_v63  ;;  %v2681_v4 = vadd.f32 %v2680_v2, %v2679_v1  ;;  %v2682_v5 = vpop.f32.mrb[22].mxu1  ;;  %v1081_v9 = vadd.f32 %v4300_v0, %v1042_v62 }
 0x384   :  { %v2683_v6 = vpop.f32.mrb[23].mxu1 }
 0x385   :  { %v909_v7 = vadd.f32 %v2681_v4, %v4293_v50  ;;  %v2684_v8 = vadd.f32 %v2683_v6, %v2682_v5  ;;  %v1082_v10 = vadd.f32 %v4300_v0, %v1043_v3 }
 0x387   :  { %v1005_v34 = vmax.f32 %v909_v7, 0.0  ;;  %v912_v37 = vadd.f32 %v2684_v8, %v4293_v50  ;;  %v1109_v38 = vpack.c.bf16 %v1082_v10, %v1081_v9 }
 0x389   :  { %v1044_v41 = vmul.f32 %v4296_v57, %v1005_v34  ;;  %v1006_v42 = vmax.f32 %v912_v37, 0.0  ;;  %v2685_v45 = vpop.f32.mrb[24].mxu1  ;;  %3148 = vmatprep.mubr.bf16.mxu0 %v1109_v38 }
 0x38a   :  { %v2686_v49 = vpop.f32.mrb[25].mxu1 }
 0x38b   :  { %v1045_v51 = vmul.f32 %v4296_v57, %v1006_v42  ;;  %v2687_v52 = vadd.f32 %v2686_v49, %v2685_v45  ;;  %v2688_v53 = vpop.f32.mrb[26].mxu1  ;;  %v1083_v58 = vadd.f32 %v4300_v0, %v1044_v41 }
 0x38c   :  { %v2689_v54 = vpop.f32.mrb[27].mxu1 }
 0x38d   :  { %v917_v55 = vadd.f32 %v2687_v52, %v4293_v50  ;;  %v2690_v56 = vadd.f32 %v2689_v54, %v2688_v53  ;;  %v1084_v59 = vadd.f32 %v4300_v0, %v1045_v51 }
 0x38f   :  { %v1007_v60 = vmax.f32 %v917_v55, 0.0  ;;  %v920_v61 = vadd.f32 %v2690_v56, %v4293_v50  ;;  %v1110_v62 = vpack.c.bf16 %v1084_v59, %v1083_v58 }
 0x391   :  { %v1046_v63 = vmul.f32 %v4296_v57, %v1007_v60  ;;  %v1008_v1 = vmax.f32 %v920_v61, 0.0  ;;  %v2691_v2 = vpop.f32.mrb[28].mxu1  ;;  %3149 = vmatmul.mubr.bf16.gmra.mrb[40].mxu0 %v1110_v62 }
 0x392   :  { %v2692_v3 = vpop.f32.mrb[29].mxu1 }
 0x393   :  { %v1047_v4 = vmul.f32 %v4296_v57, %v1008_v1  ;;  %v2693_v5 = vadd.f32 %v2692_v3, %v2691_v2  ;;  %v2694_v6 = vpop.f32.mrb[30].mxu1  ;;  %v1085_v10 = vadd.f32 %v4300_v0, %v1046_v63 }
 0x394   :  { %v2695_v7 = vpop.f32.mrb[31].mxu1 }
 0x395   :  { %v925_v8 = vadd.f32 %v2693_v5, %v4293_v50  ;;  %v2696_v9 = vadd.f32 %v2695_v7, %v2694_v6  ;;  %v1086_v34 = vadd.f32 %v4300_v0, %v1047_v4 }
 0x397   :  { %v1009_v37 = vmax.f32 %v925_v8, 0.0  ;;  %v928_v38 = vadd.f32 %v2696_v9, %v4293_v50  ;;  %v1111_v41 = vpack.c.bf16 %v1086_v34, %v1085_v10 }
 0x399   :  { %v1048_v42 = vmul.f32 %v4296_v57, %v1009_v37  ;;  %v1010_v45 = vmax.f32 %v928_v38, 0.0  ;;  %v2697_v49 = vpop.f32.mrb[32].mxu1  ;;  %3152 = vmatprep.mubr.bf16.mxu0 %v1111_v41 }
 0x39a   :  { %v2698_v51 = vpop.f32.mrb[33].mxu1 }
 0x39b   :  { %v1049_v52 = vmul.f32 %v4296_v57, %v1010_v45  ;;  %v2699_v53 = vadd.f32 %v2698_v51, %v2697_v49  ;;  %v2700_v54 = vpop.f32.mrb[34].mxu1  ;;  %v1087_v59 = vadd.f32 %v4300_v0, %v1048_v42 }
 0x39c   :  { %v2701_v55 = vpop.f32.mrb[35].mxu1 }
 0x39d   :  { %v933_v56 = vadd.f32 %v2699_v53, %v4293_v50  ;;  %v2702_v58 = vadd.f32 %v2701_v55, %v2700_v54  ;;  %v1088_v60 = vadd.f32 %v4300_v0, %v1049_v52 }
 0x39f   :  { %v1011_v61 = vmax.f32 %v933_v56, 0.0  ;;  %v936_v62 = vadd.f32 %v2702_v58, %v4293_v50  ;;  %v1112_v63 = vpack.c.bf16 %v1088_v60, %v1087_v59 }
 0x3a1   :  { %v1050_v1 = vmul.f32 %v4296_v57, %v1011_v61  ;;  %v1012_v2 = vmax.f32 %v936_v62, 0.0  ;;  %v2703_v3 = vpop.f32.mrb[36].mxu1  ;;  %3153 = vmatmul.mubr.bf16.gmra.mrb[44].mxu0 %v1112_v63 }
 0x3a2   :  { %v2704_v4 = vpop.f32.mrb[37].mxu1 }
 0x3a3   :  { %v1051_v5 = vmul.f32 %v4296_v57, %v1012_v2  ;;  %v2705_v6 = vadd.f32 %v2704_v4, %v2703_v3  ;;  %v2706_v7 = vpop.f32.mrb[38].mxu1  ;;  %v1089_v34 = vadd.f32 %v4300_v0, %v1050_v1 }
 0x3a4   :  { %v2707_v8 = vpop.f32.mrb[39].mxu1 }
 0x3a5   :  { %v941_v9 = vadd.f32 %v2705_v6, %v4293_v50  ;;  %v2708_v10 = vadd.f32 %v2707_v8, %v2706_v7  ;;  %v1090_v37 = vadd.f32 %v4300_v0, %v1051_v5 }
 0x3a7   :  { %v1013_v38 = vmax.f32 %v941_v9, 0.0  ;;  %v944_v41 = vadd.f32 %v2708_v10, %v4293_v50  ;;  %v1113_v42 = vpack.c.bf16 %v1090_v37, %v1089_v34 }
 0x3a9   :  { %v1052_v45 = vmul.f32 %v4296_v57, %v1013_v38  ;;  %v1014_v49 = vmax.f32 %v944_v41, 0.0  ;;  %v2709_v51 = vpop.f32.mrb[40].mxu1  ;;  %3156 = vmatprep.mubr.bf16.mxu0 %v1113_v42 }
 0x3aa   :  { %v2710_v52 = vpop.f32.mrb[41].mxu1 }
 0x3ab   :  { %v1053_v53 = vmul.f32 %v4296_v57, %v1014_v49  ;;  %v2711_v54 = vadd.f32 %v2710_v52, %v2709_v51  ;;  %v2712_v55 = vpop.f32.mrb[42].mxu1  ;;  %v1091_v60 = vadd.f32 %v4300_v0, %v1052_v45 }
 0x3ac   :  { %v2713_v56 = vpop.f32.mrb[43].mxu1 }
 0x3ad   :  { %v949_v58 = vadd.f32 %v2711_v54, %v4293_v50  ;;  %v2714_v59 = vadd.f32 %v2713_v56, %v2712_v55  ;;  %v1092_v61 = vadd.f32 %v4300_v0, %v1053_v53 }
 0x3af   :  { %v1015_v62 = vmax.f32 %v949_v58, 0.0  ;;  %v952_v63 = vadd.f32 %v2714_v59, %v4293_v50  ;;  %v1114_v1 = vpack.c.bf16 %v1092_v61, %v1091_v60 }
 0x3b1   :  { %v1054_v2 = vmul.f32 %v4296_v57, %v1015_v62  ;;  %v1016_v3 = vmax.f32 %v952_v63, 0.0  ;;  %v2715_v4 = vpop.f32.mrb[44].mxu1  ;;  %3157 = vmatmul.mubr.bf16.gmra.mrb[48].mxu0 %v1114_v1 }
 0x3b2   :  { %v2716_v5 = vpop.f32.mrb[45].mxu1 }
 0x3b3   :  { %v1055_v6 = vmul.f32 %v4296_v57, %v1016_v3  ;;  %v2717_v7 = vadd.f32 %v2716_v5, %v2715_v4  ;;  %v2718_v8 = vpop.f32.mrb[46].mxu1  ;;  %v1093_v37 = vadd.f32 %v4300_v0, %v1054_v2 }
 0x3b4   :  { %v2719_v9 = vpop.f32.mrb[47].mxu1 }
 0x3b5   :  { %v957_v10 = vadd.f32 %v2717_v7, %v4293_v50  ;;  %v2720_v34 = vadd.f32 %v2719_v9, %v2718_v8  ;;  %v1094_v38 = vadd.f32 %v4300_v0, %v1055_v6 }
 0x3b7   :  { %v1017_v41 = vmax.f32 %v957_v10, 0.0  ;;  %v960_v42 = vadd.f32 %v2720_v34, %v4293_v50  ;;  %v1115_v45 = vpack.c.bf16 %v1094_v38, %v1093_v37 }
 0x3b9   :  { %v1056_v49 = vmul.f32 %v4296_v57, %v1017_v41  ;;  %v1018_v51 = vmax.f32 %v960_v42, 0.0  ;;  %v2721_v52 = vpop.f32.mrb[48].mxu1  ;;  %3160 = vmatprep.mubr.bf16.mxu0 %v1115_v45 }
 0x3ba   :  { %v2722_v53 = vpop.f32.mrb[49].mxu1 }
 0x3bb   :  { %v1057_v54 = vmul.f32 %v4296_v57, %v1018_v51  ;;  %v2723_v55 = vadd.f32 %v2722_v53, %v2721_v52  ;;  %v2724_v56 = vpop.f32.mrb[50].mxu1  ;;  %v1095_v61 = vadd.f32 %v4300_v0, %v1056_v49 }
 0x3bc   :  { %v2725_v58 = vpop.f32.mrb[51].mxu1 }
 0x3bd   :  { %v965_v59 = vadd.f32 %v2723_v55, %v4293_v50  ;;  %v2726_v60 = vadd.f32 %v2725_v58, %v2724_v56  ;;  %v1096_v62 = vadd.f32 %v4300_v0, %v1057_v54 }
 0x3bf   :  { %v1019_v63 = vmax.f32 %v965_v59, 0.0  ;;  %v968_v1 = vadd.f32 %v2726_v60, %v4293_v50  ;;  %v1116_v2 = vpack.c.bf16 %v1096_v62, %v1095_v61 }
 0x3c1   :  { %v1058_v3 = vmul.f32 %v4296_v57, %v1019_v63  ;;  %v1020_v4 = vmax.f32 %v968_v1, 0.0  ;;  %v2727_v5 = vpop.f32.mrb[52].mxu1  ;;  %3161 = vmatmul.mubr.bf16.gmra.mrb[52].mxu0 %v1116_v2 }
 0x3c2   :  { %v2728_v6 = vpop.f32.mrb[53].mxu1 }
 0x3c3   :  { %v1059_v7 = vmul.f32 %v4296_v57, %v1020_v4  ;;  %v2729_v8 = vadd.f32 %v2728_v6, %v2727_v5  ;;  %v2730_v9 = vpop.f32.mrb[54].mxu1  ;;  %v1097_v38 = vadd.f32 %v4300_v0, %v1058_v3 }
 0x3c4   :  { %v2731_v10 = vpop.f32.mrb[55].mxu1 }
 0x3c5   :  { %v973_v34 = vadd.f32 %v2729_v8, %v4293_v50  ;;  %v2732_v37 = vadd.f32 %v2731_v10, %v2730_v9  ;;  %v1098_v41 = vadd.f32 %v4300_v0, %v1059_v7 }
 0x3c7   :  { %v1021_v42 = vmax.f32 %v973_v34, 0.0  ;;  %v976_v45 = vadd.f32 %v2732_v37, %v4293_v50  ;;  %v1117_v49 = vpack.c.bf16 %v1098_v41, %v1097_v38 }
 0x3c9   :  { %v1060_v51 = vmul.f32 %v4296_v57, %v1021_v42  ;;  %v1022_v52 = vmax.f32 %v976_v45, 0.0  ;;  %v2733_v53 = vpop.f32.mrb[56].mxu1  ;;  %3164 = vmatprep.mubr.bf16.mxu0 %v1117_v49 }
 0x3ca   :  { %v2734_v54 = vpop.f32.mrb[57].mxu1 }
 0x3cb   :  { %v1061_v55 = vmul.f32 %v4296_v57, %v1022_v52  ;;  %v2735_v56 = vadd.f32 %v2734_v54, %v2733_v53  ;;  %v2736_v58 = vpop.f32.mrb[58].mxu1  ;;  %v1099_v62 = vadd.f32 %v4300_v0, %v1060_v51 }
 0x3cc   :  { %v2737_v59 = vpop.f32.mrb[59].mxu1 }
 0x3cd   :  { %v981_v60 = vadd.f32 %v2735_v56, %v4293_v50  ;;  %v2738_v61 = vadd.f32 %v2737_v59, %v2736_v58  ;;  %v1100_v63 = vadd.f32 %v4300_v0, %v1061_v55 }
 0x3cf   :  { %v1023_v1 = vmax.f32 %v981_v60, 0.0  ;;  %v984_v2 = vadd.f32 %v2738_v61, %v4293_v50  ;;  %v1118_v3 = vpack.c.bf16 %v1100_v63, %v1099_v62 }
 0x3d1   :  { %v1062_v4 = vmul.f32 %v4296_v57, %v1023_v1  ;;  %v1024_v5 = vmax.f32 %v984_v2, 0.0  ;;  %v2739_v6 = vpop.f32.mrb[60].mxu1  ;;  %3165 = vmatmul.mubr.bf16.gmra.mrb[56].mxu0 %v1118_v3 }
 0x3d2   :  { %v2740_v7 = vpop.f32.mrb[61].mxu1 }
 0x3d3   :  { %v1063_v8 = vmul.f32 %v4296_v57, %v1024_v5  ;;  %v2741_v9 = vadd.f32 %v2740_v7, %v2739_v6  ;;  %v2742_v10 = vpop.f32.mrb[62].mxu1  ;;  %v1101_v41 = vadd.f32 %v4300_v0, %v1062_v4 }
 0x3d4   :  { %v2743_v34 = vpop.f32.mrb[63].mxu1 }
 0x3d5   :  { %v989_v37 = vadd.f32 %v2741_v9, %v4293_v50  ;;  %v2744_v38 = vadd.f32 %v2743_v34, %v2742_v10  ;;  %v1102_v42 = vadd.f32 %v4300_v0, %v1063_v8 }
 0x3d7   :  { %v1025_v45 = vmax.f32 %v989_v37, 0.0  ;;  %v992_v49 = vadd.f32 %v2744_v38, %v4293_v50  ;;  %v1119_v51 = vpack.c.bf16 %v1102_v42, %v1101_v41 }
 0x3d9   :  { %v1064_v52 = vmul.f32 %v4296_v57, %v1025_v45  ;;  %v1026_v53 = vmax.f32 %v992_v49, 0.0  ;;  %3168 = vmatprep.mubr.bf16.mxu0 %v1119_v51 }
 0x3db   :  { %v1065_v54 = vmul.f32 %v4296_v57, %v1026_v53  ;;  %v1103_v55 = vadd.f32 %v4300_v0, %v1064_v52 }
 0x3dd   :  { %v1104_v56 = vadd.f32 %v4300_v0, %v1065_v54 }
 0x3df   :  { %v1120_v58 = vpack.c.bf16 %v1104_v56, %v1103_v55 }
 0x3e1   :  { %3169 = vmatmul.mubr.bf16.gmra.mrb[60].mxu0 %v1120_v58 }
 0x3e2   :  { %1401 = vmatprep.mubr.bf16.mxu0 %v4197_v24 }
 0x444   :  { %v3142_v59 = vpop.f32.mrb[32].mxu0 }
 0x445   :  { %v1219_v60 = vpop.f32.mrb[33].mxu0 }
 0x446   :  { %v3143_v61 = vpop.f32.mrb[34].mxu0 }
 0x447   :  { %v1347_v62 = vpack.c.bf16 %v3143_v61, %v3142_v59  ;;  %v1222_v50 = vpop.f32.mrb[35].mxu0 }
 0x448   :  { %v1346_v63 = vpack.c.bf16 %v1222_v50, %v1219_v60 }
 0x454   :  { %v3146_v1 = vpop.f32.mrb[36].mxu0 }
 0x455   :  { %v1235_v2 = vpop.f32.mrb[37].mxu0 }
 0x456   :  { %v3147_v3 = vpop.f32.mrb[38].mxu0 }
 0x457   :  { %v1349_v4 = vpack.c.bf16 %v3147_v3, %v3146_v1  ;;  %v1238_v5 = vpop.f32.mrb[39].mxu0 }
 0x458   :  { %v1348_v57 = vpack.c.bf16 %v1238_v5, %v1235_v2 }
 0x464   :  { %v3150_v6 = vpop.f32.mrb[40].mxu0 }
 0x465   :  { %v1251_v7 = vpop.f32.mrb[41].mxu0 }
 0x466   :  { %v3151_v8 = vpop.f32.mrb[42].mxu0 }
 0x467   :  { %v1351_v0 = vpack.c.bf16 %v3151_v8, %v3150_v6  ;;  %v1254_v9 = vpop.f32.mrb[43].mxu0 }
 0x468   :  { %v1350_v10 = vpack.c.bf16 %v1254_v9, %v1251_v7 }
 0x474   :  { %v3154_v34 = vpop.f32.mrb[44].mxu0 }
 0x475   :  { %v1267_v24 = vpop.f32.mrb[45].mxu0 }
 0x476   :  { %v3155_v37 = vpop.f32.mrb[46].mxu0 }
 0x477   :  { %v1353_v38 = vpack.c.bf16 %v3155_v37, %v3154_v34  ;;  %v1270_v41 = vpop.f32.mrb[47].mxu0 }
 0x478   :  { %v1352_v42 = vpack.c.bf16 %v1270_v41, %v1267_v24  ;;  %v3403_v24 = vld [vmem:[#allocation11 + $0x8] sm:$0xff]  }
 0x484   :  { %v3158_v45 = vpop.f32.mrb[48].mxu0 }
 0x485   :  { %v1283_v49 = vpop.f32.mrb[49].mxu0 }
 0x486   :  { %v3159_v51 = vpop.f32.mrb[50].mxu0 }
 0x487   :  { %v1355_v52 = vpack.c.bf16 %v3159_v51, %v3158_v45  ;;  %v1286_v53 = vpop.f32.mrb[51].mxu0 }
 0x488   :  { %v1354_v54 = vpack.c.bf16 %v1286_v53, %v1283_v49 }
 0x48a   :  { %2769 = vmatprep.subr.bf16.mxu0 %v1354_v54 }
 0x48b   :  { %2770 = vmatpush3.bf16.msra.mxu0 %v1346_v63 }
 0x48c   :  { %2771 = vmatprep.subr.bf16.mxu0 %v1355_v52 }
 0x48f   :  { %2772 = vmatpush3.bf16.msra.mxu0 %v1347_v62 }
 0x494   :  { %v3162_v55 = vpop.f32.mrb[52].mxu0 }
 0x495   :  { %v1299_v56 = vpop.f32.mrb[53].mxu0 }
 0x496   :  { %v3163_v58 = vpop.f32.mrb[54].mxu0 }
 0x497   :  { %v1357_v59 = vpack.c.bf16 %v3163_v58, %v3162_v55  ;;  %v1302_v60 = vpop.f32.mrb[55].mxu0 }
 0x498   :  { %v1356_v61 = vpack.c.bf16 %v1302_v60, %v1299_v56 }
 0x49a   :  { %2773 = vmatprep.subr.bf16.mxu0 %v1356_v61 }
 0x49b   :  { %2774 = vmatpush3.bf16.msra.mxu0 %v1348_v57  ;;  %v3402_v57 = vld [vmem:[#allocation11] sm:$0xff]  }
 0x49c   :  { %2775 = vmatprep.subr.bf16.mxu0 %v1357_v59  ;;  %3172 = vmatprep.subr.bf16.mxu1 %v3402_v57 }
 0x49d   :  { %3173 = vmatpush3.bf16.msra.mxu1 %v3402_v57 }
 0x49e   :  { %3174 = vmatprep.subr.bf16.mxu1 %v3403_v24 }
 0x49f   :  { %2776 = vmatpush3.bf16.msra.mxu0 %v1349_v4  ;;  %v3404_v4 = vld [vmem:[#allocation11 + $0x10] sm:$0xff]  }
 0x4a1   :  { %3175 = vmatpush3.bf16.msra.mxu1 %v3403_v24 }
 0x4a2   :  { %3176 = vmatprep.subr.bf16.mxu1 %v3404_v4 }
 0x4a4   :  { %v3166_v50 = vpop.f32.mrb[56].mxu0 }
 0x4a5   :  { %v1315_v1 = vpop.f32.mrb[57].mxu0  ;;  %3177 = vmatpush3.bf16.msra.mxu1 %v3404_v4 }
 0x4a6   :  { %v3167_v2 = vpop.f32.mrb[58].mxu0 }
 0x4a7   :  { %v1359_v3 = vpack.c.bf16 %v3167_v2, %v3166_v50  ;;  %v1318_v5 = vpop.f32.mrb[59].mxu0 }
 0x4a8   :  { %v1358_v6 = vpack.c.bf16 %v1318_v5, %v1315_v1 }
 0x4aa   :  { %2777 = vmatprep.subr.bf16.mxu0 %v1358_v6 }
 0x4ab   :  { %2778 = vmatpush3.bf16.msra.mxu0 %v1350_v10 }
 0x4ac   :  { %2779 = vmatprep.subr.bf16.mxu0 %v1359_v3 }
 0x4af   :  { %2780 = vmatpush3.bf16.msra.mxu0 %v1351_v0 }
 0x4b4   :  { %v3170_v62 = vpop.f32.mrb[60].mxu0 }
 0x4b5   :  { %v1331_v63 = vpop.f32.mrb[61].mxu0 }
 0x4b6   :  { %v3171_v7 = vpop.f32.mrb[62].mxu0 }
 0x4b7   :  { %v1361_v8 = vpack.c.bf16 %v3171_v7, %v3170_v62  ;;  %v1334_v9 = vpop.f32.mrb[63].mxu0 }
 0x4b8   :  { %v1360_v34 = vpack.c.bf16 %v1334_v9, %v1331_v63 }
 0x4ba   :  { %2781 = vmatprep.subr.bf16.mxu0 %v1360_v34 }
 0x4bb   :  { %2782 = vmatpush3.bf16.msra.mxu0 %v1352_v42 }
 0x4bc   :  { %2783 = vmatprep.subr.bf16.mxu0 %v1361_v8 }
 0x4bf   :  { %2784 = vmatpush3.bf16.msra.mxu0 %v1353_v38 }
 0x4c2   :  { %1402 = vmatmul.mubr.bf16.vlgmr.msra.gmra.mrb[64].mxu0 %v4200_v11  ;;  %v3405_v11 = vld [vmem:[#allocation11 + $0x18] sm:$0xff]  }
 0x4c3   :  { %1409 = vmatprep.mubr.bf16.mxu0 %v4202_v12  ;;  %3178 = vmatprep.subr.bf16.mxu1 %v3405_v11  ;;  %v3406_v12 = vld [vmem:[#allocation11 + $0x20] sm:$0xff]  }
 0x4c4   :  { %3179 = vmatpush3.bf16.msra.mxu1 %v3405_v11 }
 0x4c5   :  { %3180 = vmatprep.subr.bf16.mxu1 %v3406_v12 }
 0x4c8   :  { %3181 = vmatpush3.bf16.msra.mxu1 %v3406_v12 }
 0x4ca   :  { %1410 = vmatmul.mubr.bf16.gmra.mrb[68].mxu0 %v4206_v13  ;;  %v3407_v13 = vld [vmem:[#allocation11 + $0x28] sm:$0xff]  }
 0x4cb   :  { %1417 = vmatprep.mubr.bf16.mxu0 %v4208_v14  ;;  %3182 = vmatprep.subr.bf16.mxu1 %v3407_v13  ;;  %v3408_v14 = vld [vmem:[#allocation11 + $0x30] sm:$0xff]  }
 0x4cc   :  { %3183 = vmatpush3.bf16.msra.mxu1 %v3407_v13 }
 0x4cd   :  { %3184 = vmatprep.subr.bf16.mxu1 %v3408_v14 }
 0x4d0   :  { %3185 = vmatpush3.bf16.msra.mxu1 %v3408_v14 }
 0x4d2   :  { %1418 = vmatmul.mubr.bf16.gmra.mrb[72].mxu0 %v4212_v15  ;;  %v3409_v15 = vld [vmem:[#allocation11 + $0x38] sm:$0xff]  }
 0x4d3   :  { %1425 = vmatprep.mubr.bf16.mxu0 %v4214_v16  ;;  %3186 = vmatprep.subr.bf16.mxu1 %v3409_v15 }
 0x4d4   :  { %3187 = vmatpush3.bf16.msra.mxu1 %v3409_v15 }
 0x4da   :  { %1426 = vmatmul.mubr.bf16.gmra.mrb[76].mxu0 %v4218_v17  ;;  %v4427_v17 = vld [vmem:[#allocation16] ss:$0 sm:$0xff] }
 0x4db   :  { %1433 = vmatprep.mubr.bf16.mxu0 %v4220_v18 }
 0x4e2   :  { %1434 = vmatmul.mubr.bf16.gmra.mrb[80].mxu0 %v4224_v19 }
 0x4e3   :  { %1441 = vmatprep.mubr.bf16.mxu0 %v4226_v20 }
 0x4ea   :  { %1442 = vmatmul.mubr.bf16.gmra.mrb[84].mxu0 %v4230_v21 }
 0x4eb   :  { %1449 = vmatprep.mubr.bf16.mxu0 %v4232_v22 }
 0x4f2   :  { %1450 = vmatmul.mubr.bf16.gmra.mrb[88].mxu0 %v4236_v23 }
 0x4f3   :  { %1457 = vmatprep.mubr.bf16.mxu0 %v4238_v25  ;;  %v4430_v25 = vld [vmem:[#allocation22] ss:$0 sm:$0xff] }
 0x4fa   :  { %1458 = vmatmul.mubr.bf16.gmra.mrb[92].mxu0 %v4242_v26 }
 0x4fb   :  { %1465 = vmatprep.mubr.bf16.mxu0 %v4244_v27 }
 0x502   :  { %1466 = vmatmul.mubr.bf16.gmra.mrb[96].mxu0 %v4248_v28 }
 0x503   :  { %1473 = vmatprep.mubr.bf16.mxu0 %v4250_v29 }
 0x50a   :  { %1474 = vmatmul.mubr.bf16.gmra.mrb[100].mxu0 %v4254_v30 }
 0x50b   :  { %1481 = vmatprep.mubr.bf16.mxu0 %v4256_v31 }
 0x512   :  { %1482 = vmatmul.mubr.bf16.gmra.mrb[104].mxu0 %v4260_v32  ;;  %v4434_v32 = vld [vmem:[#allocation26] ss:$0 sm:$0xff] }
 0x513   :  { %1489 = vmatprep.mubr.bf16.mxu0 %v4262_v33 }
 0x51a   :  { %1490 = vmatmul.mubr.bf16.gmra.mrb[108].mxu0 %v4266_v35 }
 0x51b   :  { %1497 = vmatprep.mubr.bf16.mxu0 %v4268_v36 }
 0x522   :  { %1498 = vmatmul.mubr.bf16.gmra.mrb[112].mxu0 %v4272_v39 }
 0x523   :  { %1505 = vmatprep.mubr.bf16.mxu0 %v4274_v40 }
 0x52a   :  { %1506 = vmatmul.mubr.bf16.gmra.mrb[116].mxu0 %v4278_v43 }
 0x52b   :  { %1513 = vmatprep.mubr.bf16.mxu0 %v4280_v44 }
 0x532   :  { %1514 = vmatmul.mubr.bf16.gmra.mrb[120].mxu0 %v4284_v46 }
 0x533   :  { %1521 = vmatprep.mubr.bf16.mxu0 %v4286_v47 }
 0x53a   :  { %1522 = vmatmul.mubr.bf16.gmra.mrb[124].mxu0 %v4290_v48 }
 0x595   :  { %v2785_v16 = vpop.f32.mrb[64].mxu0 }
 0x596   :  { %v2786_v18 = vpop.f32.mrb[65].mxu0 }
 0x597   :  { %v2787_v19 = vadd.f32 %v2786_v18, %v2785_v16  ;;  %v2788_v20 = vpop.f32.mrb[66].mxu0 }
 0x598   :  { %v2789_v21 = vpop.f32.mrb[67].mxu0 }
 0x599   :  { %v1404_v22 = vadd.f32 %v2787_v19, %v4427_v17  ;;  %v2790_v23 = vadd.f32 %v2789_v21, %v2788_v20 }
 0x59b   :  { %v1530_v26 = vmax.f32 %v1404_v22, 0.0  ;;  %v1407_v27 = vadd.f32 %v2790_v23, %v4427_v17 }
 0x59d   :  { %v1569_v28 = vmul.f32 %v4430_v25, %v1530_v26  ;;  %v1531_v29 = vmax.f32 %v1407_v27, 0.0  ;;  %v2791_v30 = vpop.f32.mrb[68].mxu0 }
 0x59e   :  { %v2792_v31 = vpop.f32.mrb[69].mxu0 }
 0x59f   :  { %v1570_v33 = vmul.f32 %v4430_v25, %v1531_v29  ;;  %v2793_v35 = vadd.f32 %v2792_v31, %v2791_v30  ;;  %v2794_v36 = vpop.f32.mrb[70].mxu0  ;;  %v1608_v44 = vadd.f32 %v4434_v32, %v1569_v28 }
 0x5a0   :  { %v2795_v39 = vpop.f32.mrb[71].mxu0 }
 0x5a1   :  { %v1412_v40 = vadd.f32 %v2793_v35, %v4427_v17  ;;  %v2796_v43 = vadd.f32 %v2795_v39, %v2794_v36  ;;  %v1609_v46 = vadd.f32 %v4434_v32, %v1570_v33 }
 0x5a3   :  { %v1532_v47 = vmax.f32 %v1412_v40, 0.0  ;;  %v1415_v48 = vadd.f32 %v2796_v43, %v4427_v17  ;;  %v1640_v0 = vpack.c.bf16 %v1609_v46, %v1608_v44 }
 0x5a5   :  { %v1571_v10 = vmul.f32 %v4430_v25, %v1532_v47  ;;  %v1533_v37 = vmax.f32 %v1415_v48, 0.0  ;;  %v2797_v38 = vpop.f32.mrb[72].mxu0  ;;  %3188 = vmatprep.mubr.bf16.mxu1 %v1640_v0 }
 0x5a6   :  { %v2798_v41 = vpop.f32.mrb[73].mxu0 }
 0x5a7   :  { %v1572_v42 = vmul.f32 %v4430_v25, %v1533_v37  ;;  %v2799_v45 = vadd.f32 %v2798_v41, %v2797_v38  ;;  %v2800_v49 = vpop.f32.mrb[74].mxu0  ;;  %v1610_v52 = vadd.f32 %v4434_v32, %v1571_v10 }
 0x5a8   :  { %v2801_v51 = vpop.f32.mrb[75].mxu0 }
 0x5a9   :  { %v1611_v53 = vadd.f32 %v4434_v32, %v1572_v42  ;;  %v1420_v54 = vadd.f32 %v2799_v45, %v4427_v17  ;;  %v2802_v55 = vadd.f32 %v2801_v51, %v2800_v49 }
 0x5ab   :  { %v1641_v56 = vpack.c.bf16 %v1611_v53, %v1610_v52  ;;  %v1534_v58 = vmax.f32 %v1420_v54, 0.0  ;;  %v1423_v59 = vadd.f32 %v2802_v55, %v4427_v17 }
 0x5ad   :  { %v1573_v60 = vmul.f32 %v4430_v25, %v1534_v58  ;;  %v1535_v61 = vmax.f32 %v1423_v59, 0.0  ;;  %v2803_v50 = vpop.f32.mrb[76].mxu0  ;;  %3189 = vmatmul.mubr.bf16.vlgmr.msra.gmra.mrb[64].mxu1 %v1641_v56 }
 0x5ae   :  { %v2804_v1 = vpop.f32.mrb[77].mxu0 }
 0x5af   :  { %v1574_v2 = vmul.f32 %v4430_v25, %v1535_v61  ;;  %v2805_v3 = vadd.f32 %v2804_v1, %v2803_v50  ;;  %v2806_v5 = vpop.f32.mrb[78].mxu0  ;;  %v1612_v7 = vadd.f32 %v4434_v32, %v1573_v60 }
 0x5b0   :  { %v2807_v6 = vpop.f32.mrb[79].mxu0 }
 0x5b1   :  { %v1428_v62 = vadd.f32 %v2805_v3, %v4427_v17  ;;  %v2808_v63 = vadd.f32 %v2807_v6, %v2806_v5  ;;  %v1613_v8 = vadd.f32 %v4434_v32, %v1574_v2 }
 0x5b3   :  { %v1536_v9 = vmax.f32 %v1428_v62, 0.0  ;;  %v1431_v34 = vadd.f32 %v2808_v63, %v4427_v17  ;;  %v1642_v57 = vpack.c.bf16 %v1613_v8, %v1612_v7 }
 0x5b5   :  { %v1575_v24 = vmul.f32 %v4430_v25, %v1536_v9  ;;  %v1537_v4 = vmax.f32 %v1431_v34, 0.0  ;;  %v2809_v11 = vpop.f32.mrb[80].mxu0  ;;  %3192 = vmatprep.mubr.bf16.mxu1 %v1642_v57 }
 0x5b6   :  { %v2810_v12 = vpop.f32.mrb[81].mxu0 }
 0x5b7   :  { %v1576_v13 = vmul.f32 %v4430_v25, %v1537_v4  ;;  %v2811_v14 = vadd.f32 %v2810_v12, %v2809_v11  ;;  %v2812_v15 = vpop.f32.mrb[82].mxu0  ;;  %v1614_v20 = vadd.f32 %v4434_v32, %v1575_v24 }
 0x5b8   :  { %v2813_v16 = vpop.f32.mrb[83].mxu0 }
 0x5b9   :  { %v1436_v18 = vadd.f32 %v2811_v14, %v4427_v17  ;;  %v2814_v19 = vadd.f32 %v2813_v16, %v2812_v15  ;;  %v1615_v21 = vadd.f32 %v4434_v32, %v1576_v13 }
 0x5bb   :  { %v1538_v22 = vmax.f32 %v1436_v18, 0.0  ;;  %v1439_v23 = vadd.f32 %v2814_v19, %v4427_v17  ;;  %v1643_v26 = vpack.c.bf16 %v1615_v21, %v1614_v20 }
 0x5bd   :  { %v1577_v27 = vmul.f32 %v4430_v25, %v1538_v22  ;;  %v1539_v28 = vmax.f32 %v1439_v23, 0.0  ;;  %v2815_v29 = vpop.f32.mrb[84].mxu0  ;;  %3193 = vmatmul.mubr.bf16.gmra.mrb[68].mxu1 %v1643_v26 }
 0x5be   :  { %v2816_v30 = vpop.f32.mrb[85].mxu0 }
 0x5bf   :  { %v1578_v31 = vmul.f32 %v4430_v25, %v1539_v28  ;;  %v2817_v33 = vadd.f32 %v2816_v30, %v2815_v29  ;;  %v2818_v35 = vpop.f32.mrb[86].mxu0  ;;  %v1616_v43 = vadd.f32 %v4434_v32, %v1577_v27 }
 0x5c0   :  { %v2819_v36 = vpop.f32.mrb[87].mxu0 }
 0x5c1   :  { %v1444_v39 = vadd.f32 %v2817_v33, %v4427_v17  ;;  %v2820_v40 = vadd.f32 %v2819_v36, %v2818_v35  ;;  %v1617_v44 = vadd.f32 %v4434_v32, %v1578_v31 }
 0x5c3   :  { %v1540_v46 = vmax.f32 %v1444_v39, 0.0  ;;  %v1447_v47 = vadd.f32 %v2820_v40, %v4427_v17  ;;  %v1644_v48 = vpack.c.bf16 %v1617_v44, %v1616_v43 }
 0x5c5   :  { %v1579_v0 = vmul.f32 %v4430_v25, %v1540_v46  ;;  %v1541_v10 = vmax.f32 %v1447_v47, 0.0  ;;  %v2821_v37 = vpop.f32.mrb[88].mxu0  ;;  %3196 = vmatprep.mubr.bf16.mxu1 %v1644_v48 }
 0x5c6   :  { %v2822_v38 = vpop.f32.mrb[89].mxu0 }
 0x5c7   :  { %v1580_v41 = vmul.f32 %v4430_v25, %v1541_v10  ;;  %v2823_v42 = vadd.f32 %v2822_v38, %v2821_v37  ;;  %v2824_v45 = vpop.f32.mrb[90].mxu0  ;;  %v1618_v53 = vadd.f32 %v4434_v32, %v1579_v0 }
 0x5c8   :  { %v2825_v49 = vpop.f32.mrb[91].mxu0 }
 0x5c9   :  { %v1452_v51 = vadd.f32 %v2823_v42, %v4427_v17  ;;  %v2826_v52 = vadd.f32 %v2825_v49, %v2824_v45  ;;  %v1619_v54 = vadd.f32 %v4434_v32, %v1580_v41 }
 0x5cb   :  { %v1542_v55 = vmax.f32 %v1452_v51, 0.0  ;;  %v1455_v56 = vadd.f32 %v2826_v52, %v4427_v17  ;;  %v1645_v58 = vpack.c.bf16 %v1619_v54, %v1618_v53 }
 0x5cd   :  { %v1581_v59 = vmul.f32 %v4430_v25, %v1542_v55  ;;  %v1543_v60 = vmax.f32 %v1455_v56, 0.0  ;;  %v2827_v61 = vpop.f32.mrb[92].mxu0  ;;  %3197 = vmatmul.mubr.bf16.gmra.mrb[72].mxu1 %v1645_v58 }
 0x5ce   :  { %v2828_v50 = vpop.f32.mrb[93].mxu0 }
 0x5cf   :  { %v1582_v1 = vmul.f32 %v4430_v25, %v1543_v60  ;;  %v2829_v2 = vadd.f32 %v2828_v50, %v2827_v61  ;;  %v2830_v3 = vpop.f32.mrb[94].mxu0  ;;  %v1620_v63 = vadd.f32 %v4434_v32, %v1581_v59 }
 0x5d0   :  { %v2831_v5 = vpop.f32.mrb[95].mxu0 }
 0x5d1   :  { %v1460_v6 = vadd.f32 %v2829_v2, %v4427_v17  ;;  %v2832_v62 = vadd.f32 %v2831_v5, %v2830_v3  ;;  %v1621_v7 = vadd.f32 %v4434_v32, %v1582_v1 }
 0x5d3   :  { %v1544_v8 = vmax.f32 %v1460_v6, 0.0  ;;  %v1463_v9 = vadd.f32 %v2832_v62, %v4427_v17  ;;  %v1646_v34 = vpack.c.bf16 %v1621_v7, %v1620_v63 }
 0x5d5   :  { %v1583_v57 = vmul.f32 %v4430_v25, %v1544_v8  ;;  %v1545_v24 = vmax.f32 %v1463_v9, 0.0  ;;  %v2833_v4 = vpop.f32.mrb[96].mxu0  ;;  %3200 = vmatprep.mubr.bf16.mxu1 %v1646_v34 }
 0x5d6   :  { %v2834_v11 = vpop.f32.mrb[97].mxu0 }
 0x5d7   :  { %v1584_v12 = vmul.f32 %v4430_v25, %v1545_v24  ;;  %v2835_v13 = vadd.f32 %v2834_v11, %v2833_v4  ;;  %v2836_v14 = vpop.f32.mrb[98].mxu0  ;;  %v1622_v19 = vadd.f32 %v4434_v32, %v1583_v57 }
 0x5d8   :  { %v2837_v15 = vpop.f32.mrb[99].mxu0 }
 0x5d9   :  { %v1468_v16 = vadd.f32 %v2835_v13, %v4427_v17  ;;  %v2838_v18 = vadd.f32 %v2837_v15, %v2836_v14  ;;  %v1623_v20 = vadd.f32 %v4434_v32, %v1584_v12 }
 0x5db   :  { %v1546_v21 = vmax.f32 %v1468_v16, 0.0  ;;  %v1471_v22 = vadd.f32 %v2838_v18, %v4427_v17  ;;  %v1647_v23 = vpack.c.bf16 %v1623_v20, %v1622_v19 }
 0x5dd   :  { %v1585_v26 = vmul.f32 %v4430_v25, %v1546_v21  ;;  %v1547_v27 = vmax.f32 %v1471_v22, 0.0  ;;  %v2839_v28 = vpop.f32.mrb[100].mxu0  ;;  %3201 = vmatmul.mubr.bf16.gmra.mrb[76].mxu1 %v1647_v23 }
 0x5de   :  { %v2840_v29 = vpop.f32.mrb[101].mxu0 }
 0x5df   :  { %v1586_v30 = vmul.f32 %v4430_v25, %v1547_v27  ;;  %v2841_v31 = vadd.f32 %v2840_v29, %v2839_v28  ;;  %v2842_v33 = vpop.f32.mrb[102].mxu0  ;;  %v1624_v40 = vadd.f32 %v4434_v32, %v1585_v26 }
 0x5e0   :  { %v2843_v35 = vpop.f32.mrb[103].mxu0 }
 0x5e1   :  { %v1476_v36 = vadd.f32 %v2841_v31, %v4427_v17  ;;  %v2844_v39 = vadd.f32 %v2843_v35, %v2842_v33  ;;  %v1625_v43 = vadd.f32 %v4434_v32, %v1586_v30 }
 0x5e3   :  { %v1548_v44 = vmax.f32 %v1476_v36, 0.0  ;;  %v1479_v46 = vadd.f32 %v2844_v39, %v4427_v17  ;;  %v1648_v47 = vpack.c.bf16 %v1625_v43, %v1624_v40 }
 0x5e5   :  { %v1587_v48 = vmul.f32 %v4430_v25, %v1548_v44  ;;  %v1549_v0 = vmax.f32 %v1479_v46, 0.0  ;;  %v2845_v10 = vpop.f32.mrb[104].mxu0  ;;  %3204 = vmatprep.mubr.bf16.mxu1 %v1648_v47 }
 0x5e6   :  { %v2846_v37 = vpop.f32.mrb[105].mxu0 }
 0x5e7   :  { %v1588_v38 = vmul.f32 %v4430_v25, %v1549_v0  ;;  %v2847_v41 = vadd.f32 %v2846_v37, %v2845_v10  ;;  %v2848_v42 = vpop.f32.mrb[106].mxu0  ;;  %v1626_v52 = vadd.f32 %v4434_v32, %v1587_v48 }
 0x5e8   :  { %v2849_v45 = vpop.f32.mrb[107].mxu0 }
 0x5e9   :  { %v1484_v49 = vadd.f32 %v2847_v41, %v4427_v17  ;;  %v2850_v51 = vadd.f32 %v2849_v45, %v2848_v42  ;;  %v1627_v53 = vadd.f32 %v4434_v32, %v1588_v38 }
 0x5eb   :  { %v1550_v54 = vmax.f32 %v1484_v49, 0.0  ;;  %v1487_v55 = vadd.f32 %v2850_v51, %v4427_v17  ;;  %v1649_v56 = vpack.c.bf16 %v1627_v53, %v1626_v52 }
 0x5ed   :  { %v1589_v58 = vmul.f32 %v4430_v25, %v1550_v54  ;;  %v1551_v59 = vmax.f32 %v1487_v55, 0.0  ;;  %v2851_v60 = vpop.f32.mrb[108].mxu0  ;;  %3205 = vmatmul.mubr.bf16.gmra.mrb[80].mxu1 %v1649_v56 }
 0x5ee   :  { %v2852_v61 = vpop.f32.mrb[109].mxu0 }
 0x5ef   :  { %v1590_v50 = vmul.f32 %v4430_v25, %v1551_v59  ;;  %v2853_v1 = vadd.f32 %v2852_v61, %v2851_v60  ;;  %v2854_v2 = vpop.f32.mrb[110].mxu0  ;;  %v1628_v62 = vadd.f32 %v4434_v32, %v1589_v58 }
 0x5f0   :  { %v2855_v3 = vpop.f32.mrb[111].mxu0 }
 0x5f1   :  { %v1492_v5 = vadd.f32 %v2853_v1, %v4427_v17  ;;  %v2856_v6 = vadd.f32 %v2855_v3, %v2854_v2  ;;  %v1629_v63 = vadd.f32 %v4434_v32, %v1590_v50 }
 0x5f3   :  { %v1552_v7 = vmax.f32 %v1492_v5, 0.0  ;;  %v1495_v8 = vadd.f32 %v2856_v6, %v4427_v17  ;;  %v1650_v9 = vpack.c.bf16 %v1629_v63, %v1628_v62 }
 0x5f5   :  { %v1591_v34 = vmul.f32 %v4430_v25, %v1552_v7  ;;  %v1553_v57 = vmax.f32 %v1495_v8, 0.0  ;;  %v2857_v24 = vpop.f32.mrb[112].mxu0  ;;  %3208 = vmatprep.mubr.bf16.mxu1 %v1650_v9 }
 0x5f6   :  { %v2858_v4 = vpop.f32.mrb[113].mxu0 }
 0x5f7   :  { %v1592_v11 = vmul.f32 %v4430_v25, %v1553_v57  ;;  %v2859_v12 = vadd.f32 %v2858_v4, %v2857_v24  ;;  %v2860_v13 = vpop.f32.mrb[114].mxu0  ;;  %v1630_v18 = vadd.f32 %v4434_v32, %v1591_v34 }
 0x5f8   :  { %v2861_v14 = vpop.f32.mrb[115].mxu0 }
 0x5f9   :  { %v1500_v15 = vadd.f32 %v2859_v12, %v4427_v17  ;;  %v2862_v16 = vadd.f32 %v2861_v14, %v2860_v13  ;;  %v1631_v19 = vadd.f32 %v4434_v32, %v1592_v11  ;;  %v3418_v12 = vld [vmem:[#allocation5 + $0x4] ss:$8 sps:$4 sm:$0xff]  }
 0x5fb   :  { %v1554_v20 = vmax.f32 %v1500_v15, 0.0  ;;  %v1503_v21 = vadd.f32 %v2862_v16, %v4427_v17  ;;  %v1651_v22 = vpack.c.bf16 %v1631_v19, %v1630_v18 }
 0x5fd   :  { %v1593_v23 = vmul.f32 %v4430_v25, %v1554_v20  ;;  %v1555_v26 = vmax.f32 %v1503_v21, 0.0  ;;  %v2863_v27 = vpop.f32.mrb[116].mxu0  ;;  %3209 = vmatmul.mubr.bf16.gmra.mrb[84].mxu1 %v1651_v22 }
 0x5fe   :  { %v2864_v28 = vpop.f32.mrb[117].mxu0 }
 0x5ff   :  { %v1594_v29 = vmul.f32 %v4430_v25, %v1555_v26  ;;  %v2865_v30 = vadd.f32 %v2864_v28, %v2863_v27  ;;  %v2866_v31 = vpop.f32.mrb[118].mxu0  ;;  %v1632_v39 = vadd.f32 %v4434_v32, %v1593_v23 }
 0x600   :  { %v2867_v33 = vpop.f32.mrb[119].mxu0 }
 0x601   :  { %v1508_v35 = vadd.f32 %v2865_v30, %v4427_v17  ;;  %v2868_v36 = vadd.f32 %v2867_v33, %v2866_v31  ;;  %v1633_v40 = vadd.f32 %v4434_v32, %v1594_v29 }
 0x603   :  { %v1556_v43 = vmax.f32 %v1508_v35, 0.0  ;;  %v1511_v44 = vadd.f32 %v2868_v36, %v4427_v17  ;;  %v1652_v46 = vpack.c.bf16 %v1633_v40, %v1632_v39 }
 0x605   :  { %v1595_v47 = vmul.f32 %v4430_v25, %v1556_v43  ;;  %v1557_v48 = vmax.f32 %v1511_v44, 0.0  ;;  %v2869_v0 = vpop.f32.mrb[120].mxu0  ;;  %3212 = vmatprep.mubr.bf16.mxu1 %v1652_v46 }
 0x606   :  { %v2870_v10 = vpop.f32.mrb[121].mxu0 }
 0x607   :  { %v1596_v37 = vmul.f32 %v4430_v25, %v1557_v48  ;;  %v2871_v38 = vadd.f32 %v2870_v10, %v2869_v0  ;;  %v2872_v41 = vpop.f32.mrb[122].mxu0  ;;  %v1634_v51 = vadd.f32 %v4434_v32, %v1595_v47 }
 0x608   :  { %v2873_v42 = vpop.f32.mrb[123].mxu0 }
 0x609   :  { %v1516_v45 = vadd.f32 %v2871_v38, %v4427_v17  ;;  %v2874_v49 = vadd.f32 %v2873_v42, %v2872_v41  ;;  %v1635_v52 = vadd.f32 %v4434_v32, %v1596_v37 }
 0x60b   :  { %v1558_v53 = vmax.f32 %v1516_v45, 0.0  ;;  %v1519_v54 = vadd.f32 %v2874_v49, %v4427_v17  ;;  %v1653_v55 = vpack.c.bf16 %v1635_v52, %v1634_v51 }
 0x60d   :  { %v1597_v56 = vmul.f32 %v4430_v25, %v1558_v53  ;;  %v1559_v58 = vmax.f32 %v1519_v54, 0.0  ;;  %v2875_v59 = vpop.f32.mrb[124].mxu0  ;;  %3213 = vmatmul.mubr.bf16.gmra.mrb[88].mxu1 %v1653_v55 }
 0x60e   :  { %v2876_v60 = vpop.f32.mrb[125].mxu0 }
 0x60f   :  { %v1598_v61 = vmul.f32 %v4430_v25, %v1559_v58  ;;  %v2877_v50 = vadd.f32 %v2876_v60, %v2875_v59  ;;  %v2878_v1 = vpop.f32.mrb[126].mxu0  ;;  %v1636_v6 = vadd.f32 %v4434_v32, %v1597_v56 }
 0x610   :  { %v2879_v2 = vpop.f32.mrb[127].mxu0 }
 0x611   :  { %v1524_v3 = vadd.f32 %v2877_v50, %v4427_v17  ;;  %v2880_v5 = vadd.f32 %v2879_v2, %v2878_v1  ;;  %v1637_v62 = vadd.f32 %v4434_v32, %v1598_v61  ;;  %v3410_v1 = vld [vmem:[#allocation13] sm:$0xff]   ;;  %v3411_v2 = vld [vmem:[#allocation13 + $0x8] sm:$0xff]  }
 0x612   :  { %3220 = vmatprep.subr.bf16.mxu0 %v3410_v1 }
 0x613   :  { %v1560_v63 = vmax.f32 %v1524_v3, 0.0  ;;  %v1527_v7 = vadd.f32 %v2880_v5, %v4427_v17  ;;  %v1654_v8 = vpack.c.bf16 %v1637_v62, %v1636_v6  ;;  %3221 = vmatpush3.bf16.msra.mxu0 %v3410_v1  ;;  %v3412_v3 = vld [vmem:[#allocation13 + $0x10] sm:$0xff]   ;;  %v3420_v6 = vld [vmem:[#allocation5 + $0x14] ss:$8 sps:$4 sm:$0xff]   ;;  %v3421_v62 = vld [vmem:[#allocation5 + $0x10] ss:$8 sps:$4 sm:$0xff]  }
 0x614   :  { %3222 = vmatprep.subr.bf16.mxu0 %v3411_v2  ;;  %v3419_v5 = vld [vmem:[#allocation5] ss:$8 sps:$4 sm:$0xff]  }
 0x615   :  { %v1599_v9 = vmul.f32 %v4430_v25, %v1560_v63  ;;  %v1561_v34 = vmax.f32 %v1527_v7, 0.0  ;;  %3216 = vmatprep.mubr.bf16.mxu1 %v1654_v8  ;;  %v3422_v63 = vld [vmem:[#allocation5 + $0x24] ss:$8 sps:$4 sm:$0xff]   ;;  %v3423_v7 = vld [vmem:[#allocation5 + $0x20] ss:$8 sps:$4 sm:$0xff]  }
 0x616   :  { %v3424_v8 = vld [vmem:[#allocation5 + $0x34] ss:$8 sps:$4 sm:$0xff]  }
 0x617   :  { %v1600_v57 = vmul.f32 %v4430_v25, %v1561_v34  ;;  %v1638_v24 = vadd.f32 %v4434_v32, %v1599_v9  ;;  %3223 = vmatpush3.bf16.msra.mxu0 %v3411_v2  ;;  %v3425_v9 = vld [vmem:[#allocation5 + $0x30] ss:$8 sps:$4 sm:$0xff]   ;;  %v3426_v34 = vld [vmem:[#allocation5 + $0x44] ss:$8 sps:$4 sm:$0xff]  }
 0x618   :  { %3224 = vmatprep.subr.bf16.mxu0 %v3412_v3 }
 0x619   :  { %v1639_v4 = vadd.f32 %v4434_v32, %v1600_v57  ;;  %v3427_v57 = vld [vmem:[#allocation5 + $0x40] ss:$8 sps:$4 sm:$0xff]  }
 0x61b   :  { %v1655_v11 = vpack.c.bf16 %v1639_v4, %v1638_v24  ;;  %3225 = vmatpush3.bf16.msra.mxu0 %v3412_v3  ;;  %v3428_v24 = vld [vmem:[#allocation5 + $0x54] ss:$8 sps:$4 sm:$0xff]   ;;  %v3429_v4 = vld [vmem:[#allocation5 + $0x50] ss:$8 sps:$4 sm:$0xff]  }
 0x61d   :  { %3217 = vmatmul.mubr.bf16.gmra.mrb[92].mxu1 %v1655_v11  ;;  %v3430_v11 = vld [vmem:[#allocation5 + $0x64] ss:$8 sps:$4 sm:$0xff]  }
 0x61e   :  { %1936 = vmatprep.mubr.bf16.mxu1 %v3418_v12  ;;  %v3431_v12 = vld [vmem:[#allocation5 + $0x60] ss:$8 sps:$4 sm:$0xff]  }
 0x680   :  { %v3190_v13 = vpop.f32.mrb[64].mxu1 }
 0x681   :  { %v1754_v14 = vpop.f32.mrb[65].mxu1 }
 0x682   :  { %v3191_v15 = vpop.f32.mrb[66].mxu1 }
 0x683   :  { %v1882_v16 = vpack.c.bf16 %v3191_v15, %v3190_v13  ;;  %v1757_v17 = vpop.f32.mrb[67].mxu1  ;;  %v3432_v13 = vld [vmem:[#allocation5 + $0x74] ss:$8 sps:$4 sm:$0xff]   ;;  %v3434_v15 = vld [vmem:[#allocation5 + $0x84] ss:$8 sps:$4 sm:$0xff]  }
 0x684   :  { %v1881_v18 = vpack.c.bf16 %v1757_v17, %v1754_v14  ;;  %v3433_v14 = vld [vmem:[#allocation5 + $0x70] ss:$8 sps:$4 sm:$0xff]   ;;  %v3436_v17 = vld [vmem:[#allocation5 + $0x94] ss:$8 sps:$4 sm:$0xff]  }
 0x690   :  { %v3194_v19 = vpop.f32.mrb[68].mxu1 }
 0x691   :  { %v1770_v20 = vpop.f32.mrb[69].mxu1 }
 0x692   :  { %v3195_v21 = vpop.f32.mrb[70].mxu1 }
 0x693   :  { %v1884_v22 = vpack.c.bf16 %v3195_v21, %v3194_v19  ;;  %v1773_v23 = vpop.f32.mrb[71].mxu1  ;;  %v3438_v19 = vld [vmem:[#allocation5 + $0xa4] ss:$8 sps:$4 sm:$0xff]   ;;  %v3440_v21 = vld [vmem:[#allocation5 + $0xb4] ss:$8 sps:$4 sm:$0xff]  }
 0x694   :  { %v1883_v25 = vpack.c.bf16 %v1773_v23, %v1770_v20  ;;  %v3439_v20 = vld [vmem:[#allocation5 + $0xa0] ss:$8 sps:$4 sm:$0xff]   ;;  %v3441_v23 = vld [vmem:[#allocation5 + $0xb0] ss:$8 sps:$4 sm:$0xff]  }
 0x6a0   :  { %v3198_v26 = vpop.f32.mrb[72].mxu1 }
 0x6a1   :  { %v1786_v27 = vpop.f32.mrb[73].mxu1 }
 0x6a2   :  { %v3199_v28 = vpop.f32.mrb[74].mxu1 }
 0x6a3   :  { %v1886_v32 = vpack.c.bf16 %v3199_v28, %v3198_v26  ;;  %v1789_v29 = vpop.f32.mrb[75].mxu1  ;;  %v3414_v26 = vld [vmem:[#allocation13 + $0x20] sm:$0xff]   ;;  %v3443_v28 = vld [vmem:[#allocation5 + $0xc0] ss:$8 sps:$4 sm:$0xff]  }
 0x6a4   :  { %v1885_v30 = vpack.c.bf16 %v1789_v29, %v1786_v27  ;;  %v3415_v27 = vld [vmem:[#allocation13 + $0x28] sm:$0xff]   ;;  %v3416_v29 = vld [vmem:[#allocation13 + $0x30] sm:$0xff]  }
 0x6b0   :  { %v3202_v31 = vpop.f32.mrb[76].mxu1 }
 0x6b1   :  { %v1802_v33 = vpop.f32.mrb[77].mxu1 }
 0x6b2   :  { %v3203_v35 = vpop.f32.mrb[78].mxu1 }
 0x6b3   :  { %v1888_v36 = vpack.c.bf16 %v3203_v35, %v3202_v31  ;;  %v1805_v39 = vpop.f32.mrb[79].mxu1  ;;  %v3445_v31 = vld [vmem:[#allocation5 + $0xd0] ss:$8 sps:$4 sm:$0xff]   ;;  %v3447_v35 = vld [vmem:[#allocation5 + $0xe0] ss:$8 sps:$4 sm:$0xff]  }
 0x6b4   :  { %v1887_v40 = vpack.c.bf16 %v1805_v39, %v1802_v33  ;;  %v3446_v33 = vld [vmem:[#allocation5 + $0xe4] ss:$8 sps:$4 sm:$0xff]   ;;  %v3449_v39 = vld [vmem:[#allocation5 + $0xf0] ss:$8 sps:$4 sm:$0xff]  }
 0x6c0   :  { %v3206_v43 = vpop.f32.mrb[80].mxu1 }
 0x6c1   :  { %v1818_v44 = vpop.f32.mrb[81].mxu1 }
 0x6c2   :  { %v3207_v46 = vpop.f32.mrb[82].mxu1 }
 0x6c3   :  { %v1890_v47 = vpack.c.bf16 %v3207_v46, %v3206_v43  ;;  %v1821_v48 = vpop.f32.mrb[83].mxu1  ;;  %v4529_v43 = vld [vmem:[#allocation17] ss:$0 sm:$0xff] }
 0x6c4   :  { %v1889_v0 = vpack.c.bf16 %v1821_v48, %v1818_v44 }
 0x6c6   :  { %2905 = vmatprep.subr.bf16.mxu1 %v1889_v0 }
 0x6c7   :  { %2906 = vmatpush3.bf16.msra.mxu1 %v1881_v18  ;;  %v3437_v18 = vld [vmem:[#allocation5 + $0x90] ss:$8 sps:$4 sm:$0xff]  }
 0x6c8   :  { %2907 = vmatprep.subr.bf16.mxu1 %v1890_v47 }
 0x6cb   :  { %2908 = vmatpush3.bf16.msra.mxu1 %v1882_v16  ;;  %v3435_v16 = vld [vmem:[#allocation5 + $0x80] ss:$8 sps:$4 sm:$0xff]  }
 0x6d0   :  { %v3210_v10 = vpop.f32.mrb[84].mxu1 }
 0x6d1   :  { %v1834_v37 = vpop.f32.mrb[85].mxu1 }
 0x6d2   :  { %v3211_v38 = vpop.f32.mrb[86].mxu1 }
 0x6d3   :  { %v1892_v41 = vpack.c.bf16 %v3211_v38, %v3210_v10  ;;  %v1837_v42 = vpop.f32.mrb[87].mxu1 }
 0x6d4   :  { %v1891_v45 = vpack.c.bf16 %v1837_v42, %v1834_v37  ;;  %v4532_v37 = vld [vmem:[#allocation23] ss:$0 sm:$0xff] }
 0x6d6   :  { %2909 = vmatprep.subr.bf16.mxu1 %v1891_v45 }
 0x6d7   :  { %2910 = vmatpush3.bf16.msra.mxu1 %v1883_v25  ;;  %v3442_v25 = vld [vmem:[#allocation5 + $0xc4] ss:$8 sps:$4 sm:$0xff]  }
 0x6d8   :  { %2911 = vmatprep.subr.bf16.mxu1 %v1892_v41 }
 0x6db   :  { %2912 = vmatpush3.bf16.msra.mxu1 %v1884_v22  ;;  %v3413_v22 = vld [vmem:[#allocation13 + $0x18] sm:$0xff]  }
 0x6dc   :  { %3226 = vmatprep.subr.bf16.mxu0 %v3413_v22 }
 0x6dd   :  { %3227 = vmatpush3.bf16.msra.mxu0 %v3413_v22 }
 0x6de   :  { %3228 = vmatprep.subr.bf16.mxu0 %v3414_v26 }
 0x6e0   :  { %v3214_v49 = vpop.f32.mrb[88].mxu1 }
 0x6e1   :  { %v1850_v51 = vpop.f32.mrb[89].mxu1  ;;  %3229 = vmatpush3.bf16.msra.mxu0 %v3414_v26 }
 0x6e2   :  { %v3215_v52 = vpop.f32.mrb[90].mxu1  ;;  %3230 = vmatprep.subr.bf16.mxu0 %v3415_v27 }
 0x6e3   :  { %v1894_v53 = vpack.c.bf16 %v3215_v52, %v3214_v49  ;;  %v1853_v54 = vpop.f32.mrb[91].mxu1  ;;  %v4536_v52 = vld [vmem:[#allocation28] ss:$0 sm:$0xff] }
 0x6e4   :  { %v1893_v55 = vpack.c.bf16 %v1853_v54, %v1850_v51 }
 0x6e5   :  { %3231 = vmatpush3.bf16.msra.mxu0 %v3415_v27 }
 0x6e6   :  { %2913 = vmatprep.subr.bf16.mxu1 %v1893_v55  ;;  %3232 = vmatprep.subr.bf16.mxu0 %v3416_v29 }
 0x6e7   :  { %2914 = vmatpush3.bf16.msra.mxu1 %v1885_v30  ;;  %v3417_v30 = vld [vmem:[#allocation13 + $0x38] sm:$0xff]  }
 0x6e8   :  { %2915 = vmatprep.subr.bf16.mxu1 %v1894_v53 }
 0x6e9   :  { %3233 = vmatpush3.bf16.msra.mxu0 %v3416_v29 }
 0x6ea   :  { %3234 = vmatprep.subr.bf16.mxu0 %v3417_v30 }
 0x6eb   :  { %2916 = vmatpush3.bf16.msra.mxu1 %v1886_v32  ;;  %v3444_v32 = vld [vmem:[#allocation5 + $0xd4] ss:$8 sps:$4 sm:$0xff]  }
 0x6ed   :  { %3235 = vmatpush3.bf16.msra.mxu0 %v3417_v30 }
 0x6f0   :  { %v3218_v56 = vpop.f32.mrb[92].mxu1 }
 0x6f1   :  { %v1866_v58 = vpop.f32.mrb[93].mxu1 }
 0x6f2   :  { %v3219_v59 = vpop.f32.mrb[94].mxu1 }
 0x6f3   :  { %v1896_v60 = vpack.c.bf16 %v3219_v59, %v3218_v56  ;;  %v1869_v61 = vpop.f32.mrb[95].mxu1 }
 0x6f4   :  { %v1895_v50 = vpack.c.bf16 %v1869_v61, %v1866_v58 }
 0x6f6   :  { %2917 = vmatprep.subr.bf16.mxu1 %v1895_v50 }
 0x6f7   :  { %2918 = vmatpush3.bf16.msra.mxu1 %v1887_v40 }
 0x6f8   :  { %2919 = vmatprep.subr.bf16.mxu1 %v1896_v60 }
 0x6fb   :  { %2920 = vmatpush3.bf16.msra.mxu1 %v1888_v36  ;;  %v3448_v36 = vld [vmem:[#allocation5 + $0xf4] ss:$8 sps:$4 sm:$0xff]  }
 0x6fe   :  { %1937 = vmatmul.mubr.bf16.vlgmr.msra.gmra.mrb[96].mxu1 %v3419_v5 }
 0x6ff   :  { %1944 = vmatprep.mubr.bf16.mxu1 %v3420_v6 }
 0x706   :  { %1945 = vmatmul.mubr.bf16.gmra.mrb[100].mxu1 %v3421_v62 }
 0x707   :  { %1952 = vmatprep.mubr.bf16.mxu1 %v3422_v63 }
 0x70e   :  { %1953 = vmatmul.mubr.bf16.gmra.mrb[104].mxu1 %v3423_v7 }
 0x70f   :  { %1960 = vmatprep.mubr.bf16.mxu1 %v3424_v8 }
 0x716   :  { %1961 = vmatmul.mubr.bf16.gmra.mrb[108].mxu1 %v3425_v9 }
 0x717   :  { %1968 = vmatprep.mubr.bf16.mxu1 %v3426_v34 }
 0x71e   :  { %1969 = vmatmul.mubr.bf16.gmra.mrb[112].mxu1 %v3427_v57 }
 0x71f   :  { %1976 = vmatprep.mubr.bf16.mxu1 %v3428_v24 }
 0x726   :  { %1977 = vmatmul.mubr.bf16.gmra.mrb[116].mxu1 %v3429_v4 }
 0x727   :  { %1984 = vmatprep.mubr.bf16.mxu1 %v3430_v11 }
 0x72e   :  { %1985 = vmatmul.mubr.bf16.gmra.mrb[120].mxu1 %v3431_v12 }
 0x72f   :  { %1992 = vmatprep.mubr.bf16.mxu1 %v3432_v13 }
 0x736   :  { %1993 = vmatmul.mubr.bf16.gmra.mrb[124].mxu1 %v3433_v14 }
 0x737   :  { %2000 = vmatprep.mubr.bf16.mxu1 %v3434_v15 }
 0x73e   :  { %2001 = vmatmul.mubr.bf16.gmra.mrb[128].mxu1 %v3435_v16 }
 0x73f   :  { %2008 = vmatprep.mubr.bf16.mxu1 %v3436_v17 }
 0x746   :  { %2009 = vmatmul.mubr.bf16.gmra.mrb[132].mxu1 %v3437_v18 }
 0x747   :  { %2016 = vmatprep.mubr.bf16.mxu1 %v3438_v19 }
 0x74e   :  { %2017 = vmatmul.mubr.bf16.gmra.mrb[136].mxu1 %v3439_v20 }
 0x74f   :  { %2024 = vmatprep.mubr.bf16.mxu1 %v3440_v21 }
 0x756   :  { %2025 = vmatmul.mubr.bf16.gmra.mrb[140].mxu1 %v3441_v23 }
 0x757   :  { %2032 = vmatprep.mubr.bf16.mxu1 %v3442_v25 }
 0x75e   :  { %2033 = vmatmul.mubr.bf16.gmra.mrb[144].mxu1 %v3443_v28 }
 0x75f   :  { %2040 = vmatprep.mubr.bf16.mxu1 %v3444_v32 }
 0x766   :  { %2041 = vmatmul.mubr.bf16.gmra.mrb[148].mxu1 %v3445_v31 }
 0x767   :  { %2048 = vmatprep.mubr.bf16.mxu1 %v3446_v33 }
 0x76e   :  { %2049 = vmatmul.mubr.bf16.gmra.mrb[152].mxu1 %v3447_v35 }
 0x76f   :  { %2056 = vmatprep.mubr.bf16.mxu1 %v3448_v36 }
 0x776   :  { %2057 = vmatmul.mubr.bf16.gmra.mrb[156].mxu1 %v3449_v39 }
 0x7d1   :  { %v2921_v40 = vpop.f32.mrb[96].mxu1 }
 0x7d2   :  { %v2922_v44 = vpop.f32.mrb[97].mxu1 }
 0x7d3   :  { %v2923_v46 = vadd.f32 %v2922_v44, %v2921_v40  ;;  %v2924_v47 = vpop.f32.mrb[98].mxu1 }
 0x7d4   :  { %v2925_v48 = vpop.f32.mrb[99].mxu1 }
 0x7d5   :  { %v1939_v0 = vadd.f32 %v2923_v46, %v4529_v43  ;;  %v2926_v10 = vadd.f32 %v2925_v48, %v2924_v47 }
 0x7d7   :  { %v2065_v38 = vmax.f32 %v1939_v0, 0.0  ;;  %v1942_v41 = vadd.f32 %v2926_v10, %v4529_v43 }
 0x7d9   :  { %v2104_v42 = vmul.f32 %v4532_v37, %v2065_v38  ;;  %v2066_v45 = vmax.f32 %v1942_v41, 0.0  ;;  %v2927_v49 = vpop.f32.mrb[100].mxu1 }
 0x7da   :  { %v2928_v51 = vpop.f32.mrb[101].mxu1 }
 0x7db   :  { %v2105_v53 = vmul.f32 %v4532_v37, %v2066_v45  ;;  %v2929_v54 = vadd.f32 %v2928_v51, %v2927_v49  ;;  %v2930_v55 = vpop.f32.mrb[102].mxu1  ;;  %v2143_v60 = vadd.f32 %v4536_v52, %v2104_v42 }
 0x7dc   :  { %v2931_v56 = vpop.f32.mrb[103].mxu1 }
 0x7dd   :  { %v1947_v58 = vadd.f32 %v2929_v54, %v4529_v43  ;;  %v2932_v59 = vadd.f32 %v2931_v56, %v2930_v55  ;;  %v2144_v61 = vadd.f32 %v4536_v52, %v2105_v53 }
 0x7df   :  { %v2067_v50 = vmax.f32 %v1947_v58, 0.0  ;;  %v1950_v1 = vadd.f32 %v2932_v59, %v4529_v43  ;;  %v2175_v2 = vpack.c.bf16 %v2144_v61, %v2143_v60 }
 0x7e1   :  { %v2106_v3 = vmul.f32 %v4532_v37, %v2067_v50  ;;  %v2068_v5 = vmax.f32 %v1950_v1, 0.0  ;;  %v2933_v6 = vpop.f32.mrb[104].mxu1  ;;  %3236 = vmatprep.mubr.bf16.mxu0 %v2175_v2 }
 0x7e2   :  { %v2934_v62 = vpop.f32.mrb[105].mxu1 }
 0x7e3   :  { %v2107_v63 = vmul.f32 %v4532_v37, %v2068_v5  ;;  %v2935_v7 = vadd.f32 %v2934_v62, %v2933_v6  ;;  %v2936_v8 = vpop.f32.mrb[106].mxu1  ;;  %v2145_v34 = vadd.f32 %v4536_v52, %v2106_v3 }
 0x7e4   :  { %v2937_v9 = vpop.f32.mrb[107].mxu1 }
 0x7e5   :  { %v2146_v57 = vadd.f32 %v4536_v52, %v2107_v63  ;;  %v1955_v24 = vadd.f32 %v2935_v7, %v4529_v43  ;;  %v2938_v4 = vadd.f32 %v2937_v9, %v2936_v8 }
 0x7e7   :  { %v2176_v11 = vpack.c.bf16 %v2146_v57, %v2145_v34  ;;  %v2069_v12 = vmax.f32 %v1955_v24, 0.0  ;;  %v1958_v13 = vadd.f32 %v2938_v4, %v4529_v43 }
 0x7e9   :  { %v2108_v14 = vmul.f32 %v4532_v37, %v2069_v12  ;;  %v2070_v15 = vmax.f32 %v1958_v13, 0.0  ;;  %v2939_v16 = vpop.f32.mrb[108].mxu1  ;;  %3237 = vmatmul.mubr.bf16.vlgmr.msra.gmra.mrb[128].mxu0 %v2176_v11 }
 0x7ea   :  { %v2940_v17 = vpop.f32.mrb[109].mxu1 }
 0x7eb   :  { %v2109_v18 = vmul.f32 %v4532_v37, %v2070_v15  ;;  %v2941_v19 = vadd.f32 %v2940_v17, %v2939_v16  ;;  %v2942_v20 = vpop.f32.mrb[110].mxu1  ;;  %v2147_v25 = vadd.f32 %v4536_v52, %v2108_v14 }
 0x7ec   :  { %v2943_v21 = vpop.f32.mrb[111].mxu1 }
 0x7ed   :  { %v1963_v22 = vadd.f32 %v2941_v19, %v4529_v43  ;;  %v2944_v23 = vadd.f32 %v2943_v21, %v2942_v20  ;;  %v2148_v26 = vadd.f32 %v4536_v52, %v2109_v18 }
 0x7ef   :  { %v2071_v27 = vmax.f32 %v1963_v22, 0.0  ;;  %v1966_v28 = vadd.f32 %v2944_v23, %v4529_v43  ;;  %v2177_v32 = vpack.c.bf16 %v2148_v26, %v2147_v25 }
 0x7f1   :  { %v2110_v29 = vmul.f32 %v4532_v37, %v2071_v27  ;;  %v2072_v30 = vmax.f32 %v1966_v28, 0.0  ;;  %v2945_v31 = vpop.f32.mrb[112].mxu1  ;;  %3240 = vmatprep.mubr.bf16.mxu0 %v2177_v32 }
 0x7f2   :  { %v2946_v33 = vpop.f32.mrb[113].mxu1 }
 0x7f3   :  { %v2111_v35 = vmul.f32 %v4532_v37, %v2072_v30  ;;  %v2947_v36 = vadd.f32 %v2946_v33, %v2945_v31  ;;  %v2948_v39 = vpop.f32.mrb[114].mxu1  ;;  %v2149_v47 = vadd.f32 %v4536_v52, %v2110_v29 }
 0x7f4   :  { %v2949_v40 = vpop.f32.mrb[115].mxu1 }
 0x7f5   :  { %v1971_v44 = vadd.f32 %v2947_v36, %v4529_v43  ;;  %v2950_v46 = vadd.f32 %v2949_v40, %v2948_v39  ;;  %v2150_v48 = vadd.f32 %v4536_v52, %v2111_v35 }
 0x7f7   :  { %v2073_v0 = vmax.f32 %v1971_v44, 0.0  ;;  %v1974_v10 = vadd.f32 %v2950_v46, %v4529_v43  ;;  %v2178_v38 = vpack.c.bf16 %v2150_v48, %v2149_v47 }
 0x7f9   :  { %v2112_v41 = vmul.f32 %v4532_v37, %v2073_v0  ;;  %v2074_v42 = vmax.f32 %v1974_v10, 0.0  ;;  %v2951_v45 = vpop.f32.mrb[116].mxu1  ;;  %3241 = vmatmul.mubr.bf16.gmra.mrb[132].mxu0 %v2178_v38 }
 0x7fa   :  { %v2952_v49 = vpop.f32.mrb[117].mxu1 }
 0x7fb   :  { %v2113_v51 = vmul.f32 %v4532_v37, %v2074_v42  ;;  %v2953_v53 = vadd.f32 %v2952_v49, %v2951_v45  ;;  %v2954_v54 = vpop.f32.mrb[118].mxu1  ;;  %v2151_v59 = vadd.f32 %v4536_v52, %v2112_v41 }
 0x7fc   :  { %v2955_v55 = vpop.f32.mrb[119].mxu1 }
 0x7fd   :  { %v1979_v56 = vadd.f32 %v2953_v53, %v4529_v43  ;;  %v2956_v58 = vadd.f32 %v2955_v55, %v2954_v54  ;;  %v2152_v60 = vadd.f32 %v4536_v52, %v2113_v51 }
 0x7ff   :  { %v2075_v61 = vmax.f32 %v1979_v56, 0.0  ;;  %v1982_v50 = vadd.f32 %v2956_v58, %v4529_v43  ;;  %v2179_v1 = vpack.c.bf16 %v2152_v60, %v2151_v59 }
 0x801   :  { %v2114_v2 = vmul.f32 %v4532_v37, %v2075_v61  ;;  %v2076_v3 = vmax.f32 %v1982_v50, 0.0  ;;  %v2957_v5 = vpop.f32.mrb[120].mxu1  ;;  %3244 = vmatprep.mubr.bf16.mxu0 %v2179_v1 }
 0x802   :  { %v2958_v6 = vpop.f32.mrb[121].mxu1 }
 0x803   :  { %v2115_v62 = vmul.f32 %v4532_v37, %v2076_v3  ;;  %v2959_v63 = vadd.f32 %v2958_v6, %v2957_v5  ;;  %v2960_v7 = vpop.f32.mrb[122].mxu1  ;;  %v2153_v57 = vadd.f32 %v4536_v52, %v2114_v2 }
 0x804   :  { %v2961_v8 = vpop.f32.mrb[123].mxu1 }
 0x805   :  { %v1987_v9 = vadd.f32 %v2959_v63, %v4529_v43  ;;  %v2962_v34 = vadd.f32 %v2961_v8, %v2960_v7  ;;  %v2154_v24 = vadd.f32 %v4536_v52, %v2115_v62 }
 0x807   :  { %v2077_v4 = vmax.f32 %v1987_v9, 0.0  ;;  %v1990_v11 = vadd.f32 %v2962_v34, %v4529_v43  ;;  %v2180_v12 = vpack.c.bf16 %v2154_v24, %v2153_v57 }
 0x809   :  { %v2116_v13 = vmul.f32 %v4532_v37, %v2077_v4  ;;  %v2078_v14 = vmax.f32 %v1990_v11, 0.0  ;;  %v2963_v15 = vpop.f32.mrb[124].mxu1  ;;  %3245 = vmatmul.mubr.bf16.gmra.mrb[136].mxu0 %v2180_v12 }
 0x80a   :  { %v2964_v16 = vpop.f32.mrb[125].mxu1 }
 0x80b   :  { %v2117_v17 = vmul.f32 %v4532_v37, %v2078_v14  ;;  %v2965_v18 = vadd.f32 %v2964_v16, %v2963_v15  ;;  %v2966_v19 = vpop.f32.mrb[126].mxu1  ;;  %v2155_v23 = vadd.f32 %v4536_v52, %v2116_v13 }
 0x80c   :  { %v2967_v20 = vpop.f32.mrb[127].mxu1 }
 0x80d   :  { %v1995_v21 = vadd.f32 %v2965_v18, %v4529_v43  ;;  %v2968_v22 = vadd.f32 %v2967_v20, %v2966_v19  ;;  %v2156_v25 = vadd.f32 %v4536_v52, %v2117_v17 }
 0x80f   :  { %v2079_v26 = vmax.f32 %v1995_v21, 0.0  ;;  %v1998_v27 = vadd.f32 %v2968_v22, %v4529_v43  ;;  %v2181_v28 = vpack.c.bf16 %v2156_v25, %v2155_v23 }
 0x811   :  { %v2118_v32 = vmul.f32 %v4532_v37, %v2079_v26  ;;  %v2080_v29 = vmax.f32 %v1998_v27, 0.0  ;;  %v2969_v30 = vpop.f32.mrb[128].mxu1  ;;  %3248 = vmatprep.mubr.bf16.mxu0 %v2181_v28 }
 0x812   :  { %v2970_v31 = vpop.f32.mrb[129].mxu1 }
 0x813   :  { %v2119_v33 = vmul.f32 %v4532_v37, %v2080_v29  ;;  %v2971_v35 = vadd.f32 %v2970_v31, %v2969_v30  ;;  %v2972_v36 = vpop.f32.mrb[130].mxu1  ;;  %v2157_v46 = vadd.f32 %v4536_v52, %v2118_v32 }
 0x814   :  { %v2973_v39 = vpop.f32.mrb[131].mxu1 }
 0x815   :  { %v2003_v40 = vadd.f32 %v2971_v35, %v4529_v43  ;;  %v2974_v44 = vadd.f32 %v2973_v39, %v2972_v36  ;;  %v2158_v47 = vadd.f32 %v4536_v52, %v2119_v33 }
 0x817   :  { %v2081_v48 = vmax.f32 %v2003_v40, 0.0  ;;  %v2006_v0 = vadd.f32 %v2974_v44, %v4529_v43  ;;  %v2182_v10 = vpack.c.bf16 %v2158_v47, %v2157_v46 }
 0x819   :  { %v2120_v38 = vmul.f32 %v4532_v37, %v2081_v48  ;;  %v2082_v41 = vmax.f32 %v2006_v0, 0.0  ;;  %v2975_v42 = vpop.f32.mrb[132].mxu1  ;;  %3249 = vmatmul.mubr.bf16.gmra.mrb[140].mxu0 %v2182_v10 }
 0x81a   :  { %v2976_v45 = vpop.f32.mrb[133].mxu1 }
 0x81b   :  { %v2121_v49 = vmul.f32 %v4532_v37, %v2082_v41  ;;  %v2977_v51 = vadd.f32 %v2976_v45, %v2975_v42  ;;  %v2978_v53 = vpop.f32.mrb[134].mxu1  ;;  %v2159_v58 = vadd.f32 %v4536_v52, %v2120_v38 }
 0x81c   :  { %v2979_v54 = vpop.f32.mrb[135].mxu1 }
 0x81d   :  { %v2011_v55 = vadd.f32 %v2977_v51, %v4529_v43  ;;  %v2980_v56 = vadd.f32 %v2979_v54, %v2978_v53  ;;  %v2160_v59 = vadd.f32 %v4536_v52, %v2121_v49 }
 0x81f   :  { %v2083_v60 = vmax.f32 %v2011_v55, 0.0  ;;  %v2014_v61 = vadd.f32 %v2980_v56, %v4529_v43  ;;  %v2183_v50 = vpack.c.bf16 %v2160_v59, %v2159_v58 }
 0x821   :  { %v2122_v1 = vmul.f32 %v4532_v37, %v2083_v60  ;;  %v2084_v2 = vmax.f32 %v2014_v61, 0.0  ;;  %v2981_v3 = vpop.f32.mrb[136].mxu1  ;;  %3252 = vmatprep.mubr.bf16.mxu0 %v2183_v50 }
 0x822   :  { %v2982_v5 = vpop.f32.mrb[137].mxu1 }
 0x823   :  { %v2123_v6 = vmul.f32 %v4532_v37, %v2084_v2  ;;  %v2983_v62 = vadd.f32 %v2982_v5, %v2981_v3  ;;  %v2984_v63 = vpop.f32.mrb[138].mxu1  ;;  %v2161_v34 = vadd.f32 %v4536_v52, %v2122_v1 }
 0x824   :  { %v2985_v7 = vpop.f32.mrb[139].mxu1 }
 0x825   :  { %v2019_v8 = vadd.f32 %v2983_v62, %v4529_v43  ;;  %v2986_v9 = vadd.f32 %v2985_v7, %v2984_v63  ;;  %v2162_v57 = vadd.f32 %v4536_v52, %v2123_v6 }
 0x827   :  { %v2085_v24 = vmax.f32 %v2019_v8, 0.0  ;;  %v2022_v4 = vadd.f32 %v2986_v9, %v4529_v43  ;;  %v2184_v11 = vpack.c.bf16 %v2162_v57, %v2161_v34 }
 0x829   :  { %v2124_v12 = vmul.f32 %v4532_v37, %v2085_v24  ;;  %v2086_v13 = vmax.f32 %v2022_v4, 0.0  ;;  %v2987_v14 = vpop.f32.mrb[140].mxu1  ;;  %3253 = vmatmul.mubr.bf16.gmra.mrb[144].mxu0 %v2184_v11 }
 0x82a   :  { %v2988_v15 = vpop.f32.mrb[141].mxu1 }
 0x82b   :  { %v2125_v16 = vmul.f32 %v4532_v37, %v2086_v13  ;;  %v2989_v17 = vadd.f32 %v2988_v15, %v2987_v14  ;;  %v2990_v18 = vpop.f32.mrb[142].mxu1  ;;  %v2163_v22 = vadd.f32 %v4536_v52, %v2124_v12 }
 0x82c   :  { %v2991_v19 = vpop.f32.mrb[143].mxu1 }
 0x82d   :  { %v2027_v20 = vadd.f32 %v2989_v17, %v4529_v43  ;;  %v2992_v21 = vadd.f32 %v2991_v19, %v2990_v18  ;;  %v2164_v23 = vadd.f32 %v4536_v52, %v2125_v16 }
 0x82f   :  { %v2087_v25 = vmax.f32 %v2027_v20, 0.0  ;;  %v2030_v26 = vadd.f32 %v2992_v21, %v4529_v43  ;;  %v2185_v27 = vpack.c.bf16 %v2164_v23, %v2163_v22 }
 0x831   :  { %v2126_v28 = vmul.f32 %v4532_v37, %v2087_v25  ;;  %v2088_v32 = vmax.f32 %v2030_v26, 0.0  ;;  %v2993_v29 = vpop.f32.mrb[144].mxu1  ;;  %3256 = vmatprep.mubr.bf16.mxu0 %v2185_v27 }
 0x832   :  { %v2994_v30 = vpop.f32.mrb[145].mxu1 }
 0x833   :  { %v2127_v31 = vmul.f32 %v4532_v37, %v2088_v32  ;;  %v2995_v33 = vadd.f32 %v2994_v30, %v2993_v29  ;;  %v2996_v35 = vpop.f32.mrb[146].mxu1  ;;  %v2165_v44 = vadd.f32 %v4536_v52, %v2126_v28 }
 0x834   :  { %v2997_v36 = vpop.f32.mrb[147].mxu1 }
 0x835   :  { %v2035_v39 = vadd.f32 %v2995_v33, %v4529_v43  ;;  %v2998_v40 = vadd.f32 %v2997_v36, %v2996_v35  ;;  %v2166_v46 = vadd.f32 %v4536_v52, %v2127_v31  ;;  %v2417_v33 = vld [vmem:[#allocation7 + $0x8] sm:$0xff] }
 0x837   :  { %v2089_v47 = vmax.f32 %v2035_v39, 0.0  ;;  %v2038_v48 = vadd.f32 %v2998_v40, %v4529_v43  ;;  %v2186_v0 = vpack.c.bf16 %v2166_v46, %v2165_v44 }
 0x839   :  { %v2128_v10 = vmul.f32 %v4532_v37, %v2089_v47  ;;  %v2090_v38 = vmax.f32 %v2038_v48, 0.0  ;;  %v2999_v41 = vpop.f32.mrb[148].mxu1  ;;  %3257 = vmatmul.mubr.bf16.gmra.mrb[148].mxu0 %v2186_v0 }
 0x83a   :  { %v3000_v42 = vpop.f32.mrb[149].mxu1 }
 0x83b   :  { %v2129_v45 = vmul.f32 %v4532_v37, %v2090_v38  ;;  %v3001_v49 = vadd.f32 %v3000_v42, %v2999_v41  ;;  %v3002_v51 = vpop.f32.mrb[150].mxu1  ;;  %v2167_v56 = vadd.f32 %v4536_v52, %v2128_v10 }
 0x83c   :  { %v3003_v53 = vpop.f32.mrb[151].mxu1 }
 0x83d   :  { %v2043_v54 = vadd.f32 %v3001_v49, %v4529_v43  ;;  %v3004_v55 = vadd.f32 %v3003_v53, %v3002_v51  ;;  %v2168_v58 = vadd.f32 %v4536_v52, %v2129_v45 }
 0x83f   :  { %v2091_v59 = vmax.f32 %v2043_v54, 0.0  ;;  %v2046_v60 = vadd.f32 %v3004_v55, %v4529_v43  ;;  %v2187_v61 = vpack.c.bf16 %v2168_v58, %v2167_v56 }
 0x841   :  { %v2130_v50 = vmul.f32 %v4532_v37, %v2091_v59  ;;  %v2092_v1 = vmax.f32 %v2046_v60, 0.0  ;;  %v3005_v2 = vpop.f32.mrb[152].mxu1  ;;  %3260 = vmatprep.mubr.bf16.mxu0 %v2187_v61 }
 0x842   :  { %v3006_v3 = vpop.f32.mrb[153].mxu1 }
 0x843   :  { %v2131_v5 = vmul.f32 %v4532_v37, %v2092_v1  ;;  %v3007_v6 = vadd.f32 %v3006_v3, %v3005_v2  ;;  %v3008_v62 = vpop.f32.mrb[154].mxu1  ;;  %v2169_v9 = vadd.f32 %v4536_v52, %v2130_v50 }
 0x844   :  { %v3009_v63 = vpop.f32.mrb[155].mxu1 }
 0x845   :  { %v2051_v7 = vadd.f32 %v3007_v6, %v4529_v43  ;;  %v3010_v8 = vadd.f32 %v3009_v63, %v3008_v62  ;;  %v2170_v34 = vadd.f32 %v4536_v52, %v2131_v5 }
 0x847   :  { %v2093_v57 = vmax.f32 %v2051_v7, 0.0  ;;  %v2054_v24 = vadd.f32 %v3010_v8, %v4529_v43  ;;  %v2188_v4 = vpack.c.bf16 %v2170_v34, %v2169_v9 }
 0x849   :  { %v2132_v11 = vmul.f32 %v4532_v37, %v2093_v57  ;;  %v2094_v12 = vmax.f32 %v2054_v24, 0.0  ;;  %v3011_v13 = vpop.f32.mrb[156].mxu1  ;;  %3261 = vmatmul.mubr.bf16.gmra.mrb[152].mxu0 %v2188_v4 }
 0x84a   :  { %v3012_v14 = vpop.f32.mrb[157].mxu1 }
 0x84b   :  { %v2133_v15 = vmul.f32 %v4532_v37, %v2094_v12  ;;  %v3013_v16 = vadd.f32 %v3012_v14, %v3011_v13  ;;  %v3014_v17 = vpop.f32.mrb[158].mxu1  ;;  %v2171_v21 = vadd.f32 %v4536_v52, %v2132_v11 }
 0x84c   :  { %v3015_v18 = vpop.f32.mrb[159].mxu1 }
 0x84d   :  { %v2059_v19 = vadd.f32 %v3013_v16, %v4529_v43  ;;  %v3016_v20 = vadd.f32 %v3015_v18, %v3014_v17  ;;  %v2172_v22 = vadd.f32 %v4536_v52, %v2133_v15  ;;  %v2416_v17 = vld [vmem:[#allocation7] sm:$0xff] }
 0x84f   :  { %v2095_v23 = vmax.f32 %v2059_v19, 0.0  ;;  %v2062_v25 = vadd.f32 %v3016_v20, %v4529_v43  ;;  %v2189_v26 = vpack.c.bf16 %v2172_v22, %v2171_v21  ;;  %v2608_v19 = vld [vmem:[#allocation19] ss:$0 sm:$0xff] }
 0x851   :  { %v2134_v27 = vmul.f32 %v4532_v37, %v2095_v23  ;;  %v2096_v28 = vmax.f32 %v2062_v25, 0.0  ;;  %3264 = vmatprep.mubr.bf16.mxu0 %v2189_v26 }
 0x853   :  { %v2135_v32 = vmul.f32 %v4532_v37, %v2096_v28  ;;  %v2173_v29 = vadd.f32 %v4536_v52, %v2134_v27 }
 0x855   :  { %v2174_v30 = vadd.f32 %v4536_v52, %v2135_v32 }
 0x857   :  { %v2190_v31 = vpack.c.bf16 %v2174_v30, %v2173_v29 }
 0x859   :  { %3265 = vmatmul.mubr.bf16.gmra.mrb[156].mxu0 %v2190_v31 }
 0x85a   :  { %2489 = vmatprep.mubr.f32.mxu0 %v2417_v33 }
 0x8bc   :  { %v3238_v35 = vpop.f32.mrb[128].mxu0 }
 0x8bd   :  { %v2289_v36 = vpop.f32.mrb[129].mxu0 }
 0x8be   :  { %v3239_v39 = vpop.f32.mrb[130].mxu0 }
 0x8bf   :  { %v3274_v40 = vpack.c.bf16 %v3239_v39, %v3238_v35  ;;  %v2292_v43 = vpop.f32.mrb[131].mxu0 }
 0x8c0   :  { %v3270_v44 = vpack.c.bf16 %v2292_v43, %v2289_v36 }
 0x8cc   :  { %v3242_v46 = vpop.f32.mrb[132].mxu0 }
 0x8cd   :  { %v2305_v47 = vpop.f32.mrb[133].mxu0 }
 0x8ce   :  { %v3243_v48 = vpop.f32.mrb[134].mxu0 }
 0x8cf   :  { %v3282_v0 = vpack.c.bf16 %v3243_v48, %v3242_v46  ;;  %v2308_v10 = vpop.f32.mrb[135].mxu0 }
 0x8d0   :  { %v3278_v37 = vpack.c.bf16 %v2308_v10, %v2305_v47 }
 0x8dc   :  { %v3246_v38 = vpop.f32.mrb[136].mxu0 }
 0x8dd   :  { %v2321_v41 = vpop.f32.mrb[137].mxu0 }
 0x8de   :  { %v3247_v42 = vpop.f32.mrb[138].mxu0 }
 0x8df   :  { %v3290_v52 = vpack.c.bf16 %v3247_v42, %v3246_v38  ;;  %v2324_v45 = vpop.f32.mrb[139].mxu0 }
 0x8e0   :  { %v3286_v49 = vpack.c.bf16 %v2324_v45, %v2321_v41 }
 0x8ec   :  { %v3250_v51 = vpop.f32.mrb[140].mxu0 }
 0x8ed   :  { %v2337_v53 = vpop.f32.mrb[141].mxu0 }
 0x8ee   :  { %v3251_v54 = vpop.f32.mrb[142].mxu0 }
 0x8ef   :  { %v3298_v55 = vpack.c.bf16 %v3251_v54, %v3250_v51  ;;  %v2340_v56 = vpop.f32.mrb[143].mxu0 }
 0x8f0   :  { %v3294_v58 = vpack.c.bf16 %v2340_v56, %v2337_v53 }
 0x8fc   :  { %v3254_v59 = vpop.f32.mrb[144].mxu0 }
 0x8fd   :  { %v2353_v60 = vpop.f32.mrb[145].mxu0 }
 0x8fe   :  { %v3255_v61 = vpop.f32.mrb[146].mxu0 }
 0x8ff   :  { %v3272_v50 = vpack.c.bf16 %v3255_v61, %v3254_v59  ;;  %v2356_v1 = vpop.f32.mrb[147].mxu0 }
 0x900   :  { %v3268_v2 = vpack.c.bf16 %v2356_v1, %v2353_v60 }
 0x902   :  { %3269 = vmatprep.subr.bf16.mxu0 %v3268_v2 }
 0x903   :  { %3271 = vmatpush3.bf16.msra.mxu0 %v3270_v44 }
 0x904   :  { %3273 = vmatprep.subr.bf16.mxu0 %v3272_v50 }
 0x907   :  { %3275 = vmatpush3.bf16.msra.mxu0 %v3274_v40 }
 0x90c   :  { %v3258_v3 = vpop.f32.mrb[148].mxu0 }
 0x90d   :  { %v2369_v5 = vpop.f32.mrb[149].mxu0 }
 0x90e   :  { %v3259_v6 = vpop.f32.mrb[150].mxu0 }
 0x90f   :  { %v3280_v62 = vpack.c.bf16 %v3259_v6, %v3258_v3  ;;  %v2372_v63 = vpop.f32.mrb[151].mxu0 }
 0x910   :  { %v3276_v7 = vpack.c.bf16 %v2372_v63, %v2369_v5 }
 0x912   :  { %3277 = vmatprep.subr.bf16.mxu0 %v3276_v7 }
 0x913   :  { %3279 = vmatpush3.bf16.msra.mxu0 %v3278_v37 }
 0x914   :  { %3281 = vmatprep.subr.bf16.mxu0 %v3280_v62 }
 0x917   :  { %3283 = vmatpush3.bf16.msra.mxu0 %v3282_v0 }
 0x91c   :  { %v3262_v8 = vpop.f32.mrb[152].mxu0 }
 0x91d   :  { %v2385_v9 = vpop.f32.mrb[153].mxu0 }
 0x91e   :  { %v3263_v34 = vpop.f32.mrb[154].mxu0 }
 0x91f   :  { %v3288_v57 = vpack.c.bf16 %v3263_v34, %v3262_v8  ;;  %v2388_v24 = vpop.f32.mrb[155].mxu0 }
 0x920   :  { %v3284_v4 = vpack.c.bf16 %v2388_v24, %v2385_v9 }
 0x922   :  { %3285 = vmatprep.subr.bf16.mxu0 %v3284_v4 }
 0x923   :  { %3287 = vmatpush3.bf16.msra.mxu0 %v3286_v49 }
 0x924   :  { %3289 = vmatprep.subr.bf16.mxu0 %v3288_v57 }
 0x927   :  { %3291 = vmatpush3.bf16.msra.mxu0 %v3290_v52 }
 0x92c   :  { %v3266_v11 = vpop.f32.mrb[156].mxu0 }
 0x92d   :  { %v2401_v12 = vpop.f32.mrb[157].mxu0 }
 0x92e   :  { %v3267_v13 = vpop.f32.mrb[158].mxu0 }
 0x92f   :  { %v3296_v14 = vpack.c.bf16 %v3267_v13, %v3266_v11  ;;  %v2404_v15 = vpop.f32.mrb[159].mxu0 }
 0x930   :  { %v3292_v16 = vpack.c.bf16 %v2404_v15, %v2401_v12 }
 0x932   :  { %3293 = vmatprep.subr.bf16.mxu0 %v3292_v16 }
 0x933   :  { %3295 = vmatpush3.bf16.msra.mxu0 %v3294_v58 }
 0x934   :  { %3297 = vmatprep.subr.bf16.mxu0 %v3296_v14 }
 0x937   :  { %3299 = vmatpush3.bf16.msra.mxu0 %v3298_v55 }
 0x93a   :  { %2490 = vmatmul.mubr.f32.vlgmr.msra.gmra.mrb[160].mxu0 %v2416_v17 }
 0xa0d   :  { %v3073_v18 = vpop.f32.mrb[160].mxu0 }
 0xa0e   :  { %v3074_v20 = vpop.f32.mrb[161].mxu0 }
 0xa0f   :  { %v3075_v21 = vadd.f32 %v3074_v20, %v3073_v18 }
 0xa11   :  { %v2492_v22 = vadd.f32 %v3075_v21, %v2608_v19 }
 0xa13   :  { %2495 = vst [vmem:[#allocation29] sm:$0xff] %v2492_v22 }
 0xa14   :  { %3835 = shalt.err (!%p3832_p0)
}
 0xa15   :  { %s4672_s6 = sld [smem:[#allocation43_spill]] }
 0xa1b   :  { %s3836_s28 = scalar_lea.hbm %s4672_s6, 128 }
 0xa1c   :  { %p3837_p1 = scmp.ne.s32.totalorder %s4672_s6, %s3836_s28  ;;  %p3840_p2 = scmp.lt.u32.totalorder %s3836_s28, %s4672_s6 }
 0xa1e   :  { %p3842_p3 = pnand %p3840_p2, %p3837_p1 }
 0xa20   :  { %3845 = shalt.err (!%p3842_p3)
}
 0xa21   :  { %2505 = dma.vmem_to_hbm [thread:$0]  %s2503_s15, 128, %s4672_s6, [#allocation4]  }
 0xa22   :  { %3864 = dma.done.wait [#allocation4], 128  }
 0xa23   :  { %3865 = vsyncadd [#allocation4], 4294967168 }
 0xa24   :  { %2509 = vsyncpa [#allocation3], 1 }
 0xa25   :  { %2510 = vsyncpa [#allocation6], 1 }
 0xa26   :  { %2511 = vsyncpa [#allocation9], 1 }
 0xa27   :  { %2512 = vsyncpa [#allocation12], 1 }
 0xa28   :  { %2513 = vsyncpa [#allocation15], 1 }
 0xa29   :  { %2514 = vsyncpa [#allocation18], 1 }
 0xa2a   :  { %2515 = vsyncpa [#allocation21], 1 }
 0xa2b   :  { %2516 = vsyncpa [#allocation24], 1 }
 0xa2c   :  { %2517 = vsyncpa [#allocation27], 1 }
 0xa2d   :  { %2518 = vsyncpa [#allocation4], 1 }

</bundles_post_ra>
